<compile_context>
chip_gen: v5e
topology: v5e:2x2
jax: 0.10.0
libtpu: 0.0.40
codegen_flags: <defaults>
</compile_context>

<pallas_src>
import functools

import jax
import jax.numpy as jnp
from jax import lax
from jax.experimental import pallas as pl
from jax.experimental.pallas import tpu as pltpu


def _round_up(x, m):
    return (x + m - 1) // m * m


def _pick_th(Ho, Wo, max_rows=128):
    """Largest divisor th of Ho with th*Wo a sublane multiple and <= max_rows rows
    (so the per-step f32 accumulator stays register-resident, ~16 vregs)."""
    best = None
    for d in range(1, Ho + 1):
        if Ho % d:
            continue
        rows = d * Wo
        if not (rows % 8 == 0 or d == Ho):
            continue
        if best is None or rows <= max_rows:
            best = d
    return best if best is not None else Ho


# ----------------------------------------------------------------------------
# Pallas kernel: relu'd, dilated/padded, dx-folded input -> kH matmuls, one store
# ----------------------------------------------------------------------------
def _reverse_conv_kernel(x_ref, w_ref, o_ref, *, kH, th, Wo):
    """x_ref: (Hp, Wo, Kp)  bf16  dx-folded (K = kW*Cin, padded) per-image input.
       w_ref: (kH, Kp, Coutp) bf16 per-dy forward-conv weights.
       o_ref: (th*Wo, Coutp) f32  output rows for this (image, row-block)."""
    Kp = x_ref.shape[-1]
    h0 = pl.program_id(1) * th

    def tap(dy):
        # leading-dim slice of whole (Wo, Kp) planes -> no sublane misalignment
        lhs = x_ref[pl.ds(h0 + dy, th), :, :].reshape(th * Wo, Kp)
        return jnp.dot(lhs, w_ref[dy], preferred_element_type=jnp.float32)

    # accumulate all kH taps in a local (register-resident) value; store once
    acc = tap(0)
    for dy in range(1, kH):
        acc = acc + tap(dy)
    o_ref[...] = acc


def reverse_conv_pallas(x, wt, stride, padding, output_padding, relu_in=True):
    """out = ConvTranspose2d(relu(x), wt) with PyTorch semantics (bias=False).

    x : (N, Cin, H, W) float32 (NCHW, like PyTorch)
    wt: (Cin, Cout, kH, kW)    (PyTorch ConvTranspose2d weight layout)
    """
    N, Cin, H, W = x.shape
    Cin_w, Cout, kH, kW = wt.shape
    assert Cin == Cin_w, (Cin, Cin_w)
    s = stride

    # transposed conv == stride-1 correlation over the zero-dilated, zero-padded input
    Hd, Wd = (H - 1) * s + 1, (W - 1) * s + 1
    ph0, ph1 = kH - 1 - padding, kH - 1 - padding + output_padding
    pw0, pw1 = kW - 1 - padding, kW - 1 - padding + output_padding
    assert min(ph0, ph1, pw0, pw1) >= 0, "negative effective padding not supported"
    Hp, Wp = Hd + ph0 + ph1, Wd + pw0 + pw1
    Ho, Wo = Hp - kH + 1, Wp - kW + 1

    # --- thin jnp glue (small tensors, fused by XLA): relu once, NHWC, dilate, pad
    xr = jnp.maximum(x, 0.0) if relu_in else x          # single f32 ReLU (exact)
    x_nhwc = jnp.transpose(xr, (0, 2, 3, 1)).astype(jnp.float32)
    xd = jnp.zeros((N, Hd, Wd, Cin), jnp.float32).at[:, ::s, ::s, :].set(x_nhwc)
    xp = jnp.pad(xd, ((0, 0), (ph0, ph1), (pw0, pw1), (0, 0)))

    # fold the kW dx-taps into the channel/K axis:
    #   xsh[n, h, w, dx*Cin + c] = xp[n, h, w + dx, c]
    xsh = jnp.concatenate([xp[:, :, dx:dx + Wo, :] for dx in range(kW)], axis=-1)
    K = kW * Cin
    Kp = _round_up(K, 128)
    Coutp = _round_up(Cout, 128)
    xsh = jnp.pad(xsh, ((0, 0), (0, 0), (0, 0), (0, Kp - K))).astype(jnp.bfloat16)

    # per-dy forward-conv weights: flip spatially, flatten (kW, Cin) -> K, pad, bf16
    #   w_taps[dy, dx*Cin + cin, cout] = wt[cin, cout, kH-1-dy, kW-1-dx]
    w_taps = jnp.transpose(wt[:, :, ::-1, ::-1], (2, 3, 0, 1)).reshape(kH, K, Cout)
    w_taps = jnp.pad(w_taps.astype(jnp.float32),
                     ((0, 0), (0, Kp - K), (0, Coutp - Cout))).astype(jnp.bfloat16)

    th = _pick_th(Ho, Wo)
    nH = Ho // th
    if N * nH < 2:                     # make sure both v7x TensorCores get work
        for d in range(th - 1, 0, -1):
            if Ho % d == 0 and (d * Wo) % 8 == 0 and Ho // d >= 2:
                th, nH = d, Ho // d
                break

    out = pl.pallas_call(
        functools.partial(_reverse_conv_kernel, kH=kH, th=th, Wo=Wo),
        out_shape=jax.ShapeDtypeStruct((N, Ho * Wo, Coutp), jnp.float32),
        grid_spec=pltpu.PrefetchScalarGridSpec(
            num_scalar_prefetch=0,
            grid=(N, nH),
            in_specs=[
                # whole per-image dx-folded input, resident across the h axis
                pl.BlockSpec((None, Hp, Wo, Kp), lambda n, h: (n, 0, 0, 0)),
                # all per-dy weights, resident across the whole grid
                pl.BlockSpec((kH, Kp, Coutp), lambda n, h: (0, 0, 0)),
            ],
            out_specs=pl.BlockSpec((None, th * Wo, Coutp), lambda n, h: (n, h, 0)),
        ),
        compiler_params=pltpu.CompilerParams(
            dimension_semantics=("parallel", "parallel")),
    )(xsh, w_taps)

    # TODO(synk): for much larger Ho*Wo, emit bf16 output / channels-major layout to
    # cut the Coutp padding writeback; at these sizes the lane-dense 128 is right.
    out = out.reshape(N, Ho, Wo, Coutp)[:, :, :, :Cout]
    return jnp.transpose(out, (0, 3, 1, 2))


# ----------------------------------------------------------------------------
# Pure-JAX reference (independent XLA path) for the correctness check
# ----------------------------------------------------------------------------
def reverse_conv_ref(x, wt, stride, padding, output_padding, relu_in=True):
    xr = jnp.maximum(x, 0.0) if relu_in else x
    Cin, Cout, kH, kW = wt.shape
    w_oihw = jnp.transpose(wt[:, :, ::-1, ::-1], (1, 0, 2, 3))   # (Cout, Cin, kH, kW)
    pad = ((kH - 1 - padding, kH - 1 - padding + output_padding),
           (kW - 1 - padding, kW - 1 - padding + output_padding))
    return lax.conv_general_dilated(
        xr, w_oihw, window_strides=(1, 1), padding=pad,
        lhs_dilation=(stride, stride), rhs_dilation=(1, 1),
        dimension_numbers=("NCHW", "OIHW", "NCHW"),
        precision=lax.Precision.HIGHEST)


if __name__ == "__main__":
    key = jax.random.PRNGKey(0)
    kx, kw = jax.random.split(key)

    # Reverse_Conv as used in Reverse_Resnet18: in=64, out=3, k=7, s=2, p=3, op=1
    N, Cin, H, W = 2, 64, 16, 16
    Cout, k, s, p, op = 3, 7, 2, 3, 1

    x = jax.random.normal(kx, (N, Cin, H, W), jnp.float32)
    wt = (jax.random.normal(kw, (Cin, Cout, k, k), jnp.float32)
          / jnp.sqrt(jnp.float32(Cin * k * k)))

    fwd = jax.jit(functools.partial(reverse_conv_pallas,
                                    stride=s, padding=p, output_padding=op))
    fwd_ref = jax.jit(functools.partial(reverse_conv_ref,
                                        stride=s, padding=p, output_padding=op))

    y = jax.block_until_ready(fwd(x, wt))
    assert y.shape == (N, Cout, 32, 32), y.shape

    y_ref = jax.block_until_ready(fwd_ref(x, wt))
    err = float(jnp.max(jnp.abs(y - y_ref)) / (jnp.max(jnp.abs(y_ref)) + 1e-6))
    assert err < 2e-2, f"mismatch vs pure-JAX reference: {err}"

    print("KERNEL_OK")
</pallas_src>

<mosaic_0001>
module attributes {stable_mosaic.version = 11 : i64} {
  func.func @_reverse_conv_kernel(%arg0: i32, %arg1: i32, %arg2: memref<1x38x32x512xbf16, #tpu.memory_space<vmem>>, %arg3: memref<7x512x128xbf16, #tpu.memory_space<vmem>>, %arg4: memref<1x128x128xf32, #tpu.memory_space<vmem>>) attributes {dimension_semantics = [#tpu.dimension_semantics<parallel>, #tpu.dimension_semantics<parallel>], iteration_bounds = array<i64: 2, 8>, scalar_prefetch = 0 : i64, scratch_operands = 0 : i64, tpu.core_type = #tpu.core_type<tc>, window_params = [{transform_indices = @transform_0, window_bounds = array<i64: 1, 38, 32, 512>}, {pipeline_mode = #tpu.pipeline_mode<synchronous>, transform_indices = @transform_1, window_bounds = array<i64: 7, 512, 128>}, {transform_indices = @transform_2, window_bounds = array<i64: 1, 128, 128>}]} {
    %c4_i32 = arith.constant 4 : i32
    %0 = arith.muli %arg1, %c4_i32 : i32
    %c0_i32 = arith.constant 0 : i32
    %1 = arith.addi %0, %c0_i32 : i32
    %c0 = arith.constant 0 : index
    %2 = arith.index_cast %1 : i32 to index
    %c0_0 = arith.constant 0 : index
    %c0_1 = arith.constant 0 : index
    %3 = vector.load %arg2[%c0, %2, %c0_0, %c0_1] : memref<1x38x32x512xbf16, #tpu.memory_space<vmem>>, vector<1x4x32x512xbf16>
    %4 = vector.shape_cast %3 : vector<1x4x32x512xbf16> to vector<4x32x512xbf16>
    %5 = vector.shape_cast %4 : vector<4x32x512xbf16> to vector<128x512xbf16>
    %c0_2 = arith.constant 0 : index
    %c0_3 = arith.constant 0 : index
    %c0_4 = arith.constant 0 : index
    %6 = vector.load %arg3[%c0_2, %c0_3, %c0_4] : memref<7x512x128xbf16, #tpu.memory_space<vmem>>, vector<1x512x128xbf16>
    %7 = vector.shape_cast %6 : vector<1x512x128xbf16> to vector<512x128xbf16>
    %cst = arith.constant dense<0.000000e+00> : vector<128x128xf32>
    %8 = tpu.matmul %5, %7, %cst {dimension_numbers = #tpu.dot_dimension_numbers<[1], [0], [0], [1], [0, 0, 1, 1], [], []>} : vector<128x512xbf16>, vector<512x128xbf16>, vector<128x128xf32> -> vector<128x128xf32>
    %c1_i32 = arith.constant 1 : i32
    %9 = arith.addi %0, %c1_i32 : i32
    %c0_5 = arith.constant 0 : index
    %10 = arith.index_cast %9 : i32 to index
    %c0_6 = arith.constant 0 : index
    %c0_7 = arith.constant 0 : index
    %11 = vector.load %arg2[%c0_5, %10, %c0_6, %c0_7] : memref<1x38x32x512xbf16, #tpu.memory_space<vmem>>, vector<1x4x32x512xbf16>
    %12 = vector.shape_cast %11 : vector<1x4x32x512xbf16> to vector<4x32x512xbf16>
    %13 = vector.shape_cast %12 : vector<4x32x512xbf16> to vector<128x512xbf16>
    %c1 = arith.constant 1 : index
    %c0_8 = arith.constant 0 : index
    %c0_9 = arith.constant 0 : index
    %14 = vector.load %arg3[%c1, %c0_8, %c0_9] : memref<7x512x128xbf16, #tpu.memory_space<vmem>>, vector<1x512x128xbf16>
    %15 = vector.shape_cast %14 : vector<1x512x128xbf16> to vector<512x128xbf16>
    %cst_10 = arith.constant dense<0.000000e+00> : vector<128x128xf32>
    %16 = tpu.matmul %13, %15, %cst_10 {dimension_numbers = #tpu.dot_dimension_numbers<[1], [0], [0], [1], [0, 0, 1, 1], [], []>} : vector<128x512xbf16>, vector<512x128xbf16>, vector<128x128xf32> -> vector<128x128xf32>
    %17 = arith.addf %8, %16 : vector<128x128xf32>
    %c2_i32 = arith.constant 2 : i32
    %18 = arith.addi %0, %c2_i32 : i32
    %c0_11 = arith.constant 0 : index
    %19 = arith.index_cast %18 : i32 to index
    %c0_12 = arith.constant 0 : index
    %c0_13 = arith.constant 0 : index
    %20 = vector.load %arg2[%c0_11, %19, %c0_12, %c0_13] : memref<1x38x32x512xbf16, #tpu.memory_space<vmem>>, vector<1x4x32x512xbf16>
    %21 = vector.shape_cast %20 : vector<1x4x32x512xbf16> to vector<4x32x512xbf16>
    %22 = vector.shape_cast %21 : vector<4x32x512xbf16> to vector<128x512xbf16>
    %c2 = arith.constant 2 : index
    %c0_14 = arith.constant 0 : index
    %c0_15 = arith.constant 0 : index
    %23 = vector.load %arg3[%c2, %c0_14, %c0_15] : memref<7x512x128xbf16, #tpu.memory_space<vmem>>, vector<1x512x128xbf16>
    %24 = vector.shape_cast %23 : vector<1x512x128xbf16> to vector<512x128xbf16>
    %cst_16 = arith.constant dense<0.000000e+00> : vector<128x128xf32>
    %25 = tpu.matmul %22, %24, %cst_16 {dimension_numbers = #tpu.dot_dimension_numbers<[1], [0], [0], [1], [0, 0, 1, 1], [], []>} : vector<128x512xbf16>, vector<512x128xbf16>, vector<128x128xf32> -> vector<128x128xf32>
    %26 = arith.addf %17, %25 : vector<128x128xf32>
    %c3_i32 = arith.constant 3 : i32
    %27 = arith.addi %0, %c3_i32 : i32
    %c0_17 = arith.constant 0 : index
    %28 = arith.index_cast %27 : i32 to index
    %c0_18 = arith.constant 0 : index
    %c0_19 = arith.constant 0 : index
    %29 = vector.load %arg2[%c0_17, %28, %c0_18, %c0_19] : memref<1x38x32x512xbf16, #tpu.memory_space<vmem>>, vector<1x4x32x512xbf16>
    %30 = vector.shape_cast %29 : vector<1x4x32x512xbf16> to vector<4x32x512xbf16>
    %31 = vector.shape_cast %30 : vector<4x32x512xbf16> to vector<128x512xbf16>
    %c3 = arith.constant 3 : index
    %c0_20 = arith.constant 0 : index
    %c0_21 = arith.constant 0 : index
    %32 = vector.load %arg3[%c3, %c0_20, %c0_21] : memref<7x512x128xbf16, #tpu.memory_space<vmem>>, vector<1x512x128xbf16>
    %33 = vector.shape_cast %32 : vector<1x512x128xbf16> to vector<512x128xbf16>
    %cst_22 = arith.constant dense<0.000000e+00> : vector<128x128xf32>
    %34 = tpu.matmul %31, %33, %cst_22 {dimension_numbers = #tpu.dot_dimension_numbers<[1], [0], [0], [1], [0, 0, 1, 1], [], []>} : vector<128x512xbf16>, vector<512x128xbf16>, vector<128x128xf32> -> vector<128x128xf32>
    %35 = arith.addf %26, %34 : vector<128x128xf32>
    %c4_i32_23 = arith.constant 4 : i32
    %36 = arith.addi %0, %c4_i32_23 : i32
    %c0_24 = arith.constant 0 : index
    %37 = arith.index_cast %36 : i32 to index
    %c0_25 = arith.constant 0 : index
    %c0_26 = arith.constant 0 : index
    %38 = vector.load %arg2[%c0_24, %37, %c0_25, %c0_26] : memref<1x38x32x512xbf16, #tpu.memory_space<vmem>>, vector<1x4x32x512xbf16>
    %39 = vector.shape_cast %38 : vector<1x4x32x512xbf16> to vector<4x32x512xbf16>
    %40 = vector.shape_cast %39 : vector<4x32x512xbf16> to vector<128x512xbf16>
    %c4 = arith.constant 4 : index
    %c0_27 = arith.constant 0 : index
    %c0_28 = arith.constant 0 : index
    %41 = vector.load %arg3[%c4, %c0_27, %c0_28] : memref<7x512x128xbf16, #tpu.memory_space<vmem>>, vector<1x512x128xbf16>
    %42 = vector.shape_cast %41 : vector<1x512x128xbf16> to vector<512x128xbf16>
    %cst_29 = arith.constant dense<0.000000e+00> : vector<128x128xf32>
    %43 = tpu.matmul %40, %42, %cst_29 {dimension_numbers = #tpu.dot_dimension_numbers<[1], [0], [0], [1], [0, 0, 1, 1], [], []>} : vector<128x512xbf16>, vector<512x128xbf16>, vector<128x128xf32> -> vector<128x128xf32>
    %44 = arith.addf %35, %43 : vector<128x128xf32>
    %c5_i32 = arith.constant 5 : i32
    %45 = arith.addi %0, %c5_i32 : i32
    %c0_30 = arith.constant 0 : index
    %46 = arith.index_cast %45 : i32 to index
    %c0_31 = arith.constant 0 : index
    %c0_32 = arith.constant 0 : index
    %47 = vector.load %arg2[%c0_30, %46, %c0_31, %c0_32] : memref<1x38x32x512xbf16, #tpu.memory_space<vmem>>, vector<1x4x32x512xbf16>
    %48 = vector.shape_cast %47 : vector<1x4x32x512xbf16> to vector<4x32x512xbf16>
    %49 = vector.shape_cast %48 : vector<4x32x512xbf16> to vector<128x512xbf16>
    %c5 = arith.constant 5 : index
    %c0_33 = arith.constant 0 : index
    %c0_34 = arith.constant 0 : index
    %50 = vector.load %arg3[%c5, %c0_33, %c0_34] : memref<7x512x128xbf16, #tpu.memory_space<vmem>>, vector<1x512x128xbf16>
    %51 = vector.shape_cast %50 : vector<1x512x128xbf16> to vector<512x128xbf16>
    %cst_35 = arith.constant dense<0.000000e+00> : vector<128x128xf32>
    %52 = tpu.matmul %49, %51, %cst_35 {dimension_numbers = #tpu.dot_dimension_numbers<[1], [0], [0], [1], [0, 0, 1, 1], [], []>} : vector<128x512xbf16>, vector<512x128xbf16>, vector<128x128xf32> -> vector<128x128xf32>
    %53 = arith.addf %44, %52 : vector<128x128xf32>
    %c6_i32 = arith.constant 6 : i32
    %54 = arith.addi %0, %c6_i32 : i32
    %c0_36 = arith.constant 0 : index
    %55 = arith.index_cast %54 : i32 to index
    %c0_37 = arith.constant 0 : index
    %c0_38 = arith.constant 0 : index
    %56 = vector.load %arg2[%c0_36, %55, %c0_37, %c0_38] : memref<1x38x32x512xbf16, #tpu.memory_space<vmem>>, vector<1x4x32x512xbf16>
    %57 = vector.shape_cast %56 : vector<1x4x32x512xbf16> to vector<4x32x512xbf16>
    %58 = vector.shape_cast %57 : vector<4x32x512xbf16> to vector<128x512xbf16>
    %c6 = arith.constant 6 : index
    %c0_39 = arith.constant 0 : index
    %c0_40 = arith.constant 0 : index
    %59 = vector.load %arg3[%c6, %c0_39, %c0_40] : memref<7x512x128xbf16, #tpu.memory_space<vmem>>, vector<1x512x128xbf16>
    %60 = vector.shape_cast %59 : vector<1x512x128xbf16> to vector<512x128xbf16>
    %cst_41 = arith.constant dense<0.000000e+00> : vector<128x128xf32>
    %61 = tpu.matmul %58, %60, %cst_41 {dimension_numbers = #tpu.dot_dimension_numbers<[1], [0], [0], [1], [0, 0, 1, 1], [], []>} : vector<128x512xbf16>, vector<512x128xbf16>, vector<128x128xf32> -> vector<128x128xf32>
    %62 = arith.addf %53, %61 : vector<128x128xf32>
    %c0_42 = arith.constant 0 : index
    %c0_43 = arith.constant 0 : index
    %c0_44 = arith.constant 0 : index
    %63 = vector.load %arg4[%c0_42, %c0_43, %c0_44] : memref<1x128x128xf32, #tpu.memory_space<vmem>>, vector<1x128x128xf32>
    %64 = vector.shape_cast %63 : vector<1x128x128xf32> to vector<128x128xf32>
    %65 = vector.shape_cast %62 : vector<128x128xf32> to vector<1x128x128xf32>
    tpu.vector_store %arg4[%c0_42, %c0_43, %c0_44], %65 {strides = array<i32>} : memref<1x128x128xf32, #tpu.memory_space<vmem>>, vector<1x128x128xf32>,
    return
  }
  func.func @transform_0(%arg0: i32, %arg1: i32) -> (i32, i32, i32, i32) {
    %c0_i32 = arith.constant 0 : i32
    %c0_i32_0 = arith.constant 0 : i32
    %c0_i32_1 = arith.constant 0 : i32
    %c0_i32_2 = arith.constant 0 : i32
    return %arg0, %c0_i32, %c0_i32_0, %c0_i32_1 : i32, i32, i32, i32
  }
  func.func @transform_1(%arg0: i32, %arg1: i32) -> (i32, i32, i32) {
    %c0_i32 = arith.constant 0 : i32
    %c0_i32_0 = arith.constant 0 : i32
    %c0_i32_1 = arith.constant 0 : i32
    %c0_i32_2 = arith.constant 0 : i32
    return %c0_i32, %c0_i32_0, %c0_i32_1 : i32, i32, i32
  }
  func.func @transform_2(%arg0: i32, %arg1: i32) -> (i32, i32, i32) {
    %c0_i32 = arith.constant 0 : i32
    %c0_i32_0 = arith.constant 0 : i32
    return %arg0, %arg1, %c0_i32 : i32, i32, i32
  }
}

</mosaic_0001>

<bundles_post_ra>
// kernel: reverse_conv_pallas.1
= control target key start
LH: loop header
LB: loop body
LE: loop exit
PB: predicated region body
PF: predicated region fallthrough
CT: control target
= control target key end

     0   :  { %s7861_s9 = smov 0   ;;  %s7863_s10 = smov 0   ;;  %s9352_s0 = inlined_call_operand.vmem [shape: bf16[2,38,32,512], index: 0, kind: input, shape index: {}]   ;;  %s9353_s1 = inlined_call_operand.vmem [shape: bf16[7,512,128], index: 1, kind: input, shape index: {}]   ;;  %s9354_s2 = inlined_call_operand.vmem [shape: f32[2,1024,128], index: 2, kind: output, shape index: {}]  }
   0x1   :  { %s7865_s11 = smov 0   ;;  %s7867_s12 = smov 0  }
   0x2   :  { %s7869_s13 = smov 0  }
   0x3 LB: > { %s21_s14 = sadd.s32 1, %s7836_s11  ;;  %s24_s15 = sadd.s32 1, %s7840_s12  ;;  %s7844_s13 = sphi %s7869_s13, %s12_s13   ;;  %s7840_s12 = sphi %s7867_s12, %s9358_s12   ;;  %s7836_s11 = sphi %s7865_s11, %s9357_s11   ;;  %s7832_s10 = sphi %s7863_s10, %s9356_s10   ;;  %s7828_s9 = sphi %s7861_s9, %s9355_s9  }
   0x4   : > { %p22_p0 = scmp.ge.s32.totalorder %s21_s14, 8  ;;  %p4919_p1 = scmp.ge.s32.totalorder %s7844_s13, 1 }
   0x5   : > { %p126_p2 = scmp.lt.s32.totalorder %s7844_s13, 17 }
   0x6   : > { %s9360_s14 = smov (%p22_p0, %s21_s14), 0  ;;  %s9362_s15 = smov (!%p22_p0, %s24_s15), %s7840_s12 }
   0x7   : > { %p127_p3 = pnand %p4919_p1, %p126_p2  ;;  %p26_p4 = scmp.ge.s32.totalorder %s9362_s15, 2 }
   0x8   : > { %p152_p5 = scmp.lt.s32.totalorder (!%p127_p3), %s7832_s10, 1  ;;  %s7310_s26 = sshll.u32 (!%p127_p3), %s7828_s9, 8 }
   0x9   : > { %s9364_s15 = smov (%p26_p4, %s9362_s15), 0  ;;  %130 = sbr.rel (%p127_p3) target bundleno = 1075 (0x433), region = 28 }
   0xe   : > { %v7415_v0 = vld [vmem:[%s9353_s1 + $0x138] sm:$0xff]  ;;  %v7414_v4 = vld [vmem:[%s9353_s1 + $0x130] sm:$0xff]  ;;  %v7413_v8 = vld [vmem:[%s9353_s1 + $0x128] sm:$0xff]  ;;  %s9366_s10 = smov (!%p152_p5, %s7832_s10), 1 }
   0xf   : > { %v7423_v1 = vld [vmem:[%s9353_s1 + $0x178] sm:$0xff]  ;;  %720 = vmatpush.bf16.msra.mxu0 %v7415_v0  ;;  %v7422_v5 = vld [vmem:[%s9353_s1 + $0x170] sm:$0xff]  ;;  %v7421_v9 = vld [vmem:[%s9353_s1 + $0x168] sm:$0xff]  ;;  %s7765_s7 = smul.u32 2432, %s9366_s10  ;;  %s4922_s27 = sshll.u32 %s9366_s10, 7 }
  0x10   : > { %v7431_v2 = vld [vmem:[%s9353_s1 + $0x1b8] sm:$0xff]  ;;  %769 = vmatpush.bf16.msra.mxu1 %v7423_v1  ;;  %v7430_v6 = vld [vmem:[%s9353_s1 + $0x1b0] sm:$0xff]  ;;  %v7429_v10 = vld [vmem:[%s9353_s1 + $0x1a8] sm:$0xff] }
  0x11   : > { %v7439_v3 = vld [vmem:[%s9353_s1 + $0x1f8] sm:$0xff]  ;;  %818 = vmatpush.bf16.msra.mxu2 %v7431_v2  ;;  %v7438_v7 = vld [vmem:[%s9353_s1 + $0x1f0] sm:$0xff]  ;;  %v7437_v11 = vld [vmem:[%s9353_s1 + $0x1e8] sm:$0xff]  ;;  %s156_s25 = scalar_lea.vmem %s9352_s0, %s7765_s7 }
  0x12   : > { %867 = vmatpush.bf16.msra.mxu3 %v7439_v3  ;;  %v7412_v12 = vld [vmem:[%s9353_s1 + $0x120] sm:$0xff]  ;;  %v7411_v16 = vld [vmem:[%s9353_s1 + $0x118] sm:$0xff]  ;;  %v7410_v20 = vld [vmem:[%s9353_s1 + $0x110] sm:$0xff]  ;;  %s7982_s3 = scalar_lea.vmem %s156_s25, %s7310_s26 }
  0x13   : > { %721 = vmatpush.bf16.msra.mxu0 %v7414_v4  ;;  %v7420_v13 = vld [vmem:[%s9353_s1 + $0x160] sm:$0xff]  ;;  %v7419_v17 = vld [vmem:[%s9353_s1 + $0x158] sm:$0xff]  ;;  %v7418_v21 = vld [vmem:[%s9353_s1 + $0x150] sm:$0xff] }
  0x14   : > { %770 = vmatpush.bf16.msra.mxu1 %v7422_v5  ;;  %v7428_v14 = vld [vmem:[%s9353_s1 + $0x1a0] sm:$0xff]  ;;  %v7427_v18 = vld [vmem:[%s9353_s1 + $0x198] sm:$0xff]  ;;  %v7426_v22 = vld [vmem:[%s9353_s1 + $0x190] sm:$0xff] }
  0x15   : > { %819 = vmatpush.bf16.msra.mxu2 %v7430_v6  ;;  %v7436_v15 = vld [vmem:[%s9353_s1 + $0x1e0] sm:$0xff]  ;;  %v7435_v19 = vld [vmem:[%s9353_s1 + $0x1d8] sm:$0xff]  ;;  %v7434_v23 = vld [vmem:[%s9353_s1 + $0x1d0] sm:$0xff] }
  0x16   : > { %868 = vmatpush.bf16.msra.mxu3 %v7438_v7  ;;  %v7409_v24 = vld [vmem:[%s9353_s1 + $0x108] sm:$0xff]  ;;  %v7408_v28 = vld [vmem:[%s9353_s1 + $0x100] sm:$0xff]  ;;  %v7378_v33 = vld [vmem:[%s7982_s3 + $0x4c] sm:$0xf0] }
  0x17   : > { %722 = vmatpush.bf16.msra.mxu0 %v7413_v8  ;;  %v7417_v25 = vld [vmem:[%s9353_s1 + $0x148] sm:$0xff]  ;;  %v7416_v29 = vld [vmem:[%s9353_s1 + $0x140] sm:$0xff]  ;;  %v5029_v35 = vld [vmem:[%s7982_s3 + $0x50] sm:$0xf0] }
  0x18   : > { %771 = vmatpush.bf16.msra.mxu1 %v7421_v9  ;;  %v7425_v26 = vld [vmem:[%s9353_s1 + $0x188] sm:$0xff]  ;;  %v7424_v30 = vld [vmem:[%s9353_s1 + $0x180] sm:$0xff]  ;;  %v7379_v37 = vld [vmem:[%s7982_s3 + $0x54] sm:$0xf0] }
  0x19   : > { %820 = vmatpush.bf16.msra.mxu2 %v7429_v10  ;;  %v7433_v27 = vld [vmem:[%s9353_s1 + $0x1c8] sm:$0xff]  ;;  %v7432_v31 = vld [vmem:[%s9353_s1 + $0x1c0] sm:$0xff]  ;;  %v5037_v39 = vld [vmem:[%s7982_s3 + $0x58] sm:$0xf0] }
  0x1a   : > { %869 = vmatpush.bf16.msra.mxu3 %v7437_v11  ;;  %v5027_v32 = vld [vmem:[%s7982_s3 + $0x40] sm:$0xf]  ;;  %v7376_v34 = vld [vmem:[%s7982_s3 + $0x44] sm:$0xf]  ;;  %v5035_v36 = vld [vmem:[%s7982_s3 + $0x48] sm:$0xf] }
  0x1b   : > { %723 = vmatpush.bf16.msra.mxu0 %v7412_v12  ;;  %v7377_v38 = vld [vmem:[%s7982_s3 + $0x4c] sm:$0xf]  ;;  %v7366_v40 = vld [vmem:[%s9353_s1 + $0xb8] sm:$0xff]  ;;  %v5028_v42 = vor.u32 %v7378_v33, %v5027_v32  ;;  %v5032_v43 = vor.u32 %v7376_v34, %v5029_v35  ;;  %v5036_v44 = vor.u32 %v7379_v37, %v5035_v36  ;;  %v7365_v48 = vld [vmem:[%s9353_s1 + $0xb0] sm:$0xff] }
  0x1c   : > { %772 = vmatpush.bf16.msra.mxu1 %v7420_v13  ;;  %v7374_v41 = vld [vmem:[%s9353_s1 + $0xf8] sm:$0xff]  ;;  %v5040_v45 = vor.u32 %v7377_v38, %v5037_v39  ;;  %v7373_v49 = vld [vmem:[%s9353_s1 + $0xf0] sm:$0xff]  ;;  %v7364_v52 = vld [vmem:[%s9353_s1 + $0xa8] sm:$0xff] }
  0x1d   : > { %821 = vmatpush.bf16.msra.mxu2 %v7428_v14  ;;  %v7350_v46 = vld [vmem:[%s9353_s1 + $0x38] sm:$0xff]  ;;  %v7349_v50 = vld [vmem:[%s9353_s1 + $0x30] sm:$0xff]  ;;  %v7372_v53 = vld [vmem:[%s9353_s1 + $0xe8] sm:$0xff] }
  0x1e   : > { %870 = vmatpush.bf16.msra.mxu3 %v7436_v15  ;;  %v7358_v47 = vld [vmem:[%s9353_s1 + $0x78] sm:$0xff]  ;;  %v7357_v51 = vld [vmem:[%s9353_s1 + $0x70] sm:$0xff]  ;;  %v7348_v54 = vld [vmem:[%s9353_s1 + $0x28] sm:$0xff] }
  0x1f   : > { %724 = vmatpush.bf16.msra.mxu0 %v7411_v16  ;;  %v7356_v55 = vld [vmem:[%s9353_s1 + $0x68] sm:$0xff]  ;;  %v5043_v56 = vld [vmem:[%s7982_s3 + $0x60] sm:$0xf]  ;;  %v7382_v57 = vld [vmem:[%s7982_s3 + $0x6c] sm:$0xf0] }
  0x20   : > { %773 = vmatpush.bf16.msra.mxu1 %v7419_v17  ;;  %v7380_v58 = vld [vmem:[%s7982_s3 + $0x64] sm:$0xf]  ;;  %v5045_v59 = vld [vmem:[%s7982_s3 + $0x70] sm:$0xf0]  ;;  %v5051_v60 = vld [vmem:[%s7982_s3 + $0x68] sm:$0xf]  ;;  %v5044_v0 = vor.u32 %v7382_v57, %v5043_v56 }
  0x21   : > { %822 = vmatpush.bf16.msra.mxu2 %v7427_v18  ;;  %v7383_v61 = vld [vmem:[%s7982_s3 + $0x74] sm:$0xf0]  ;;  %v7381_v62 = vld [vmem:[%s7982_s3 + $0x6c] sm:$0xf]  ;;  %v5053_v63 = vld [vmem:[%s7982_s3 + $0x78] sm:$0xf0]  ;;  %v5048_v1 = vor.u32 %v7380_v58, %v5045_v59 }
  0x22   : > { %871 = vmatpush.bf16.msra.mxu3 %v7435_v19  ;;  %v5052_v2 = vor.u32 %v7383_v61, %v5051_v60  ;;  %v5056_v3 = vor.u32 %v7381_v62, %v5053_v63  ;;  %v7363_v4 = vld [vmem:[%s9353_s1 + $0xa0] sm:$0xff]  ;;  %v7386_v9 = vld [vmem:[%s7982_s3 + $0x8c] sm:$0xf0]  ;;  %v5061_v11 = vld [vmem:[%s7982_s3 + $0x90] sm:$0xf0] }
  0x23   : > { %725 = vmatpush.bf16.msra.mxu0 %v7410_v20  ;;  %v7371_v5 = vld [vmem:[%s9353_s1 + $0xe0] sm:$0xff]  ;;  %v5067_v12 = vld [vmem:[%s7982_s3 + $0x88] sm:$0xf]  ;;  %v7387_v13 = vld [vmem:[%s7982_s3 + $0x94] sm:$0xf0] }
  0x24   : > { %774 = vmatpush.bf16.msra.mxu1 %v7418_v21  ;;  %v7347_v6 = vld [vmem:[%s9353_s1 + $0x20] sm:$0xff]  ;;  %v7385_v14 = vld [vmem:[%s7982_s3 + $0x8c] sm:$0xf]  ;;  %v5069_v15 = vld [vmem:[%s7982_s3 + $0x98] sm:$0xf0]  ;;  %v5068_v18 = vor.u32 %v7387_v13, %v5067_v12 }
  0x25   : > { %823 = vmatpush.bf16.msra.mxu2 %v7426_v22  ;;  %v7355_v7 = vld [vmem:[%s9353_s1 + $0x60] sm:$0xff]  ;;  %v5072_v19 = vor.u32 %v7385_v14, %v5069_v15  ;;  %v7362_v20 = vld [vmem:[%s9353_s1 + $0x98] sm:$0xff]  ;;  %v7361_v36 = vld [vmem:[%s9353_s1 + $0x90] sm:$0xff] }
  0x26   : > { %872 = vmatpush.bf16.msra.mxu3 %v7434_v23  ;;  %v5059_v8 = vld [vmem:[%s7982_s3 + $0x80] sm:$0xf]  ;;  %v7384_v10 = vld [vmem:[%s7982_s3 + $0x84] sm:$0xf]  ;;  %v7370_v21 = vld [vmem:[%s9353_s1 + $0xd8] sm:$0xff] }
  0x27   : > { %726 = vmatpush.bf16.msra.mxu0 %v7409_v24  ;;  %v5060_v16 = vor.u32 %v7386_v9, %v5059_v8  ;;  %v5064_v17 = vor.u32 %v7384_v10, %v5061_v11  ;;  %v7346_v22 = vld [vmem:[%s9353_s1 + $0x18] sm:$0xff]  ;;  %v5075_v24 = vld [vmem:[%s7982_s3 + $0xa0] sm:$0xf]  ;;  %v7369_v37 = vld [vmem:[%s9353_s1 + $0xd0] sm:$0xff] }
  0x28   : > { %775 = vmatpush.bf16.msra.mxu1 %v7417_v25  ;;  %v7354_v23 = vld [vmem:[%s9353_s1 + $0x58] sm:$0xff]  ;;  %v7390_v25 = vld [vmem:[%s7982_s3 + $0xac] sm:$0xf0]  ;;  %v5107_v56 = vld [vmem:[%s7982_s3 + $0xe0] sm:$0xf] }
  0x29   : > { %824 = vmatpush.bf16.msra.mxu2 %v7425_v26  ;;  %v7388_v26 = vld [vmem:[%s7982_s3 + $0xa4] sm:$0xf]  ;;  %v5076_v32 = vor.u32 %v7390_v25, %v5075_v24  ;;  %v7345_v38 = vld [vmem:[%s9353_s1 + $0x10] sm:$0xff]  ;;  %v5115_v60 = vld [vmem:[%s7982_s3 + $0xe8] sm:$0xf] }
  0x2a   : > { %873 = vmatpush.bf16.msra.mxu3 %v7433_v27  ;;  %v5077_v27 = vld [vmem:[%s7982_s3 + $0xb0] sm:$0xf0]  ;;  %v7398_v57 = vld [vmem:[%s7982_s3 + $0xec] sm:$0xf0]  ;;  %v7396_v58 = vld [vmem:[%s7982_s3 + $0xe4] sm:$0xf] }
  0x2b   : > { %727 = vmatpush.bf16.msra.mxu0 %v7408_v28  ;;  %v5083_v28 = vld [vmem:[%s7982_s3 + $0xa8] sm:$0xf]  ;;  %v5080_v33 = vor.u32 %v7388_v26, %v5077_v27  ;;  %v7353_v39 = vld [vmem:[%s9353_s1 + $0x50] sm:$0xff]  ;;  %v7399_v61 = vld [vmem:[%s7982_s3 + $0xf4] sm:$0xf0] }
  0x2c   : > { %776 = vmatpush.bf16.msra.mxu1 %v7416_v29  ;;  %v7391_v29 = vld [vmem:[%s7982_s3 + $0xb4] sm:$0xf0]  ;;  %v5109_v59 = vld [vmem:[%s7982_s3 + $0xf0] sm:$0xf0]  ;;  %v7397_v62 = vld [vmem:[%s7982_s3 + $0xec] sm:$0xf] }
  0x2d   : > { %825 = vmatpush.bf16.msra.mxu2 %v7424_v30  ;;  %v7389_v30 = vld [vmem:[%s7982_s3 + $0xac] sm:$0xf]  ;;  %v5084_v34 = vor.u32 %v7391_v29, %v5083_v28  ;;  %v5117_v63 = vld [vmem:[%s7982_s3 + $0xf8] sm:$0xf0]  ;;  %v5123_v8 = vld [vmem:[%s7982_s3 + $0x100] sm:$0xf] }
  0x2e   : > { %874 = vmatpush.bf16.msra.mxu3 %v7432_v31  ;;  %728 = vmatmul.bf16.vlgmr.msra.gmra.mxu0 %v5028_v42  ;;  %v5085_v31 = vld [vmem:[%s7982_s3 + $0xb8] sm:$0xf0]  ;;  %v7392_v42 = vld [vmem:[%s7982_s3 + $0xc4] sm:$0xf]  ;;  %v7402_v9 = vld [vmem:[%s7982_s3 + $0x10c] sm:$0xf0] }
  0x2f   : > { %777 = vmatmul.bf16.vlgmr.msra.gmra.mxu1 %v5032_v43  ;;  %1268 = vmatpush.bf16.msrb.mxu0 %v7350_v46  ;;  %v5088_v35 = vor.u32 %v7389_v30, %v5085_v31  ;;  %v5093_v43 = vld [vmem:[%s7982_s3 + $0xd0] sm:$0xf0]  ;;  %v7393_v46 = vld [vmem:[%s7982_s3 + $0xcc] sm:$0xf]  ;;  %v7400_v10 = vld [vmem:[%s7982_s3 + $0x104] sm:$0xf] }
  0x30   : > { %826 = vmatmul.bf16.vlgmr.msra.gmra.mxu2 %v5036_v44  ;;  %1317 = vmatpush.bf16.msrb.mxu1 %v7358_v47  ;;  %v5099_v44 = vld [vmem:[%s7982_s3 + $0xc8] sm:$0xf]  ;;  %v5101_v47 = vld [vmem:[%s7982_s3 + $0xd8] sm:$0xf0]  ;;  %v5125_v11 = vld [vmem:[%s7982_s3 + $0x110] sm:$0xf0] }
  0x31   : > { %1366 = vmatpush.bf16.msrb.mxu2 %v7366_v40  ;;  %875 = vmatmul.bf16.vlgmr.msra.gmra.mxu3 %v5040_v45  ;;  %v5091_v40 = vld [vmem:[%s7982_s3 + $0xc0] sm:$0xf]  ;;  %v7395_v45 = vld [vmem:[%s7982_s3 + $0xd4] sm:$0xf0]  ;;  %v5131_v12 = vld [vmem:[%s7982_s3 + $0x108] sm:$0xf] }
  0x32   : > { %1415 = vmatpush.bf16.msrb.mxu3 %v7374_v41  ;;  %v7394_v41 = vld [vmem:[%s7982_s3 + $0xcc] sm:$0xf0]  ;;  %v7403_v13 = vld [vmem:[%s7982_s3 + $0x114] sm:$0xf0]  ;;  %v7401_v14 = vld [vmem:[%s7982_s3 + $0x10c] sm:$0xf] }
  0x33   : > { %1269 = vmatpush.bf16.msrb.mxu0 %v7349_v50  ;;  %v5100_v50 = vor.u32 %v7395_v45, %v5099_v44  ;;  %v5133_v15 = vld [vmem:[%s7982_s3 + $0x118] sm:$0xf0]  ;;  %v5139_v24 = vld [vmem:[%s7982_s3 + $0x120] sm:$0xf]  ;;  %v7406_v25 = vld [vmem:[%s7982_s3 + $0x12c] sm:$0xf0] }
  0x34   : > { %1318 = vmatpush.bf16.msrb.mxu1 %v7357_v51  ;;  %v5104_v51 = vor.u32 %v7393_v46, %v5101_v47  ;;  %v7404_v26 = vld [vmem:[%s7982_s3 + $0x124] sm:$0xf]  ;;  %v5141_v27 = vld [vmem:[%s7982_s3 + $0x130] sm:$0xf0]  ;;  %v5147_v28 = vld [vmem:[%s7982_s3 + $0x128] sm:$0xf] }
  0x35   : > { %1367 = vmatpush.bf16.msrb.mxu2 %v7365_v48  ;;  %v5092_v48 = vor.u32 %v7394_v41, %v5091_v40  ;;  %v7407_v29 = vld [vmem:[%s7982_s3 + $0x134] sm:$0xf0]  ;;  %v7405_v30 = vld [vmem:[%s7982_s3 + $0x12c] sm:$0xf]  ;;  %v5149_v31 = vld [vmem:[%s7982_s3 + $0x138] sm:$0xf0] }
  0x36   : > { %1416 = vmatpush.bf16.msrb.mxu3 %v7373_v49  ;;  %v5096_v49 = vor.u32 %v7392_v42, %v5093_v43  ;;  %v5283_v40 = vld [vmem:[%s7982_s3] sm:$0xf]  ;;  %v7313_v41 = vld [vmem:[%s7982_s3 + $0xc] sm:$0xf0]  ;;  %v7311_v42 = vld [vmem:[%s7982_s3 + $0x4] sm:$0xf] }
  0x37   : > { %1270 = vmatpush.bf16.msrb.mxu0 %v7348_v54  ;;  %v7344_v54 = vld [vmem:[%s9353_s1 + $0x8] sm:$0xff]  ;;  %v5285_v43 = vld [vmem:[%s7982_s3 + $0x10] sm:$0xf0]  ;;  %v7314_v45 = vld [vmem:[%s7982_s3 + $0x14] sm:$0xf0] }
  0x38   : > { %1319 = vmatpush.bf16.msrb.mxu1 %v7356_v55  ;;  %v7352_v55 = vld [vmem:[%s9353_s1 + $0x48] sm:$0xff]  ;;  %v5293_v47 = vld [vmem:[%s7982_s3 + $0x18] sm:$0xf0] }
  0x39   : > { %1368 = vmatpush.bf16.msrb.mxu2 %v7364_v52  ;;  %v7360_v52 = vld [vmem:[%s9353_s1 + $0x88] sm:$0xff] }
  0x3a   : > { %1417 = vmatpush.bf16.msrb.mxu3 %v7372_v53  ;;  %v7368_v53 = vld [vmem:[%s9353_s1 + $0xc8] sm:$0xff] }
  0x3b   : > { %1271 = vmatpush.bf16.msrb.mxu0 %v7347_v6  ;;  %v7343_v6 = vld [vmem:[%s9353_s1] sm:$0xff]  ;;  %v5291_v44 = vld [vmem:[%s7982_s3 + $0x8] sm:$0xf]  ;;  %v7312_v46 = vld [vmem:[%s7982_s3 + $0xc] sm:$0xf] }
  0x3c   : > { %1320 = vmatpush.bf16.msrb.mxu1 %v7355_v7  ;;  %v7351_v7 = vld [vmem:[%s9353_s1 + $0x40] sm:$0xff] }
  0x3d   : > { %1369 = vmatpush.bf16.msrb.mxu2 %v7363_v4  ;;  %v7359_v4 = vld [vmem:[%s9353_s1 + $0x80] sm:$0xff] }
  0x3e   : > { %733 = vmatmul.bf16.gmra.mxu0 %v5044_v0  ;;  %1418 = vmatpush.bf16.msrb.mxu3 %v7371_v5  ;;  %v5108_v0 = vor.u32 %v7398_v57, %v5107_v56  ;;  %v7367_v5 = vld [vmem:[%s9353_s1 + $0xc0] sm:$0xff]  ;;  %v7502_v56 = vld [vmem:[%s9353_s1 + $0x2e8] sm:$0xff] }
  0x3f   : > { %782 = vmatmul.bf16.gmra.mxu1 %v5048_v1  ;;  %1272 = vmatpush.bf16.msrb.mxu0 %v7346_v22  ;;  %v5112_v1 = vor.u32 %v7396_v58, %v5109_v59  ;;  %v7480_v22 = vld [vmem:[%s9353_s1 + $0x238] sm:$0xff] }
  0x40   : > { %831 = vmatmul.bf16.gmra.mxu2 %v5052_v2  ;;  %1321 = vmatpush.bf16.msrb.mxu1 %v7354_v23  ;;  %v5116_v2 = vor.u32 %v7399_v61, %v5115_v60  ;;  %v7488_v23 = vld [vmem:[%s9353_s1 + $0x278] sm:$0xff] }
  0x41   : > { %880 = vmatmul.bf16.gmra.mxu3 %v5056_v3  ;;  %1370 = vmatpush.bf16.msrb.mxu2 %v7362_v20  ;;  %v5120_v3 = vor.u32 %v7397_v62, %v5117_v63  ;;  %v7496_v20 = vld [vmem:[%s9353_s1 + $0x2b8] sm:$0xff] }
  0x42   : > { %1419 = vmatpush.bf16.msrb.mxu3 %v7370_v21  ;;  %v7504_v21 = vld [vmem:[%s9353_s1 + $0x2f8] sm:$0xff] }
  0x43   : > { %1273 = vmatpush.bf16.msrb.mxu0 %v7345_v38  ;;  %v7479_v38 = vld [vmem:[%s9353_s1 + $0x230] sm:$0xff] }
  0x44   : > { %1322 = vmatpush.bf16.msrb.mxu1 %v7353_v39  ;;  %v7487_v39 = vld [vmem:[%s9353_s1 + $0x270] sm:$0xff] }
  0x45   : > { %1371 = vmatpush.bf16.msrb.mxu2 %v7361_v36  ;;  %v7495_v36 = vld [vmem:[%s9353_s1 + $0x2b0] sm:$0xff] }
  0x46   : > { %1420 = vmatpush.bf16.msrb.mxu3 %v7369_v37  ;;  %v7503_v37 = vld [vmem:[%s9353_s1 + $0x2f0] sm:$0xff] }
  0x47   : > { %1274 = vmatpush.bf16.msrb.mxu0 %v7344_v54 }
  0x48   : > { %1323 = vmatpush.bf16.msrb.mxu1 %v7352_v55  ;;  %v7494_v55 = vld [vmem:[%s9353_s1 + $0x2a8] sm:$0xff] }
  0x49   : > { %1372 = vmatpush.bf16.msrb.mxu2 %v7360_v52  ;;  %v5292_v52 = vor.u32 %v7314_v45, %v5291_v44 }
  0x4a   : > { %1421 = vmatpush.bf16.msrb.mxu3 %v7368_v53  ;;  %v5296_v53 = vor.u32 %v7312_v46, %v5293_v47 }
  0x4b   : > { %1275 = vmatpush.bf16.msrb.mxu0 %v7343_v6  ;;  %v5307_v6 = vld [vmem:[%s7982_s3 + $0x28] sm:$0xf] }
  0x4c   : > { %1324 = vmatpush.bf16.msrb.mxu1 %v7351_v7  ;;  %v7318_v7 = vld [vmem:[%s7982_s3 + $0x34] sm:$0xf0] }
  0x4d   : > { %1373 = vmatpush.bf16.msrb.mxu2 %v7359_v4  ;;  %v7315_v4 = vld [vmem:[%s7982_s3 + $0x24] sm:$0xf] }
  0x4e   : > { %738 = vmatmul.bf16.gmra.mxu0 %v5060_v16  ;;  %1422 = vmatpush.bf16.msrb.mxu3 %v7367_v5  ;;  %v5124_v16 = vor.u32 %v7402_v9, %v5123_v8  ;;  %v5301_v5 = vld [vmem:[%s7982_s3 + $0x30] sm:$0xf0]  ;;  %v7316_v8 = vld [vmem:[%s7982_s3 + $0x2c] sm:$0xf]  ;;  %v5309_v9 = vld [vmem:[%s7982_s3 + $0x38] sm:$0xf0] }
  0x4f   : > { %787 = vmatmul.bf16.gmra.mxu1 %v5064_v17  ;;  %v5128_v17 = vor.u32 %v7400_v10, %v5125_v11  ;;  %1917 = vmatpush.bf16.msra.mxu0 %v7480_v22  ;;  %v7501_v22 = vld [vmem:[%s9353_s1 + $0x2e0] sm:$0xff] }
  0x50   : > { %836 = vmatmul.bf16.gmra.mxu2 %v5068_v18  ;;  %v5132_v18 = vor.u32 %v7403_v13, %v5131_v12  ;;  %1966 = vmatpush.bf16.msra.mxu1 %v7488_v23  ;;  %v5304_v13 = vor.u32 %v7315_v4, %v5301_v5  ;;  %v7326_v4 = vld [vmem:[%s7982_s3 + $0x74] sm:$0xf0]  ;;  %v7324_v5 = vld [vmem:[%s7982_s3 + $0x6c] sm:$0xf] }
  0x51   : > { %885 = vmatmul.bf16.gmra.mxu3 %v5072_v19  ;;  %v5136_v19 = vor.u32 %v7401_v14, %v5133_v15  ;;  %2015 = vmatpush.bf16.msra.mxu2 %v7496_v20 }
  0x52   : > { %2064 = vmatpush.bf16.msra.mxu3 %v7504_v21  ;;  %v7493_v21 = vld [vmem:[%s9353_s1 + $0x2a0] sm:$0xff] }
  0x53   : > { %1918 = vmatpush.bf16.msra.mxu0 %v7479_v38  ;;  %v7320_v38 = vld [vmem:[%s7982_s3 + $0x4c] sm:$0xf] }
  0x54   : > { %1967 = vmatpush.bf16.msra.mxu1 %v7487_v39  ;;  %v5325_v39 = vld [vmem:[%s7982_s3 + $0x58] sm:$0xf0] }
  0x55   : > { %2016 = vmatpush.bf16.msra.mxu2 %v7495_v36  ;;  %v5323_v36 = vld [vmem:[%s7982_s3 + $0x48] sm:$0xf] }
  0x56   : > { %2065 = vmatpush.bf16.msra.mxu3 %v7503_v37  ;;  %v7322_v37 = vld [vmem:[%s7982_s3 + $0x54] sm:$0xf0] }
  0x57   : > { %v5324_v47 = vor.u32 %v7322_v37, %v5323_v36  ;;  %v7330_v36 = vld [vmem:[%s7982_s3 + $0x94] sm:$0xf0]  ;;  %v7328_v37 = vld [vmem:[%s7982_s3 + $0x8c] sm:$0xf] }
  0x59   : > { %2017 = vmatpush.bf16.msra.mxu2 %v7494_v55 }
  0x5a   : > { %2066 = vmatpush.bf16.msra.mxu3 %v7502_v56 }
  0x5d   : > { %2018 = vmatpush.bf16.msra.mxu2 %v7493_v21 }
  0x5e   : > { %743 = vmatmul.bf16.gmra.mxu0 %v5076_v32  ;;  %v5140_v32 = vor.u32 %v7406_v25, %v5139_v24  ;;  %2067 = vmatpush.bf16.msra.mxu3 %v7501_v22 }
  0x5f   : > { %792 = vmatmul.bf16.gmra.mxu1 %v5080_v33  ;;  %v5144_v33 = vor.u32 %v7404_v26, %v5141_v27 }
  0x60   : > { %841 = vmatmul.bf16.gmra.mxu2 %v5084_v34  ;;  %v5148_v34 = vor.u32 %v7407_v29, %v5147_v28 }
  0x61   : > { %890 = vmatmul.bf16.gmra.mxu3 %v5088_v35  ;;  %v5152_v35 = vor.u32 %v7405_v30, %v5149_v31  ;;  %v7477_v30 = vld [vmem:[%s9353_s1 + $0x220] sm:$0xff] }
  0x62   : > { %v7485_v31 = vld [vmem:[%s9353_s1 + $0x260] sm:$0xff] }
  0x6e   : > { %748 = vmatmul.bf16.gmra.mxu0 %v5092_v48  ;;  %v5284_v48 = vor.u32 %v7313_v41, %v5283_v40 }
  0x6f   : > { %797 = vmatmul.bf16.gmra.mxu1 %v5096_v49  ;;  %v5288_v49 = vor.u32 %v7311_v42, %v5285_v43 }
  0x70   : > { %846 = vmatmul.bf16.gmra.mxu2 %v5100_v50 }
  0x71   : > { %895 = vmatmul.bf16.gmra.mxu3 %v5104_v51 }
  0x7e   : > { %753 = vmatmul.bf16.gmra.mxu0 %v5108_v0  ;;  %v7478_v0 = vld [vmem:[%s9353_s1 + $0x228] sm:$0xff] }
  0x7f   : > { %802 = vmatmul.bf16.gmra.mxu1 %v5112_v1  ;;  %v7486_v1 = vld [vmem:[%s9353_s1 + $0x268] sm:$0xff]  ;;  %1919 = vmatpush.bf16.msra.mxu0 %v7478_v0  ;;  %v7325_v0 = vld [vmem:[%s7982_s3 + $0x6c] sm:$0xf0] }
  0x80   : > { %851 = vmatmul.bf16.gmra.mxu2 %v5116_v2  ;;  %v5299_v2 = vld [vmem:[%s7982_s3 + $0x20] sm:$0xf]  ;;  %1968 = vmatpush.bf16.msra.mxu1 %v7486_v1  ;;  %v7323_v1 = vld [vmem:[%s7982_s3 + $0x64] sm:$0xf] }
  0x81   : > { %900 = vmatmul.bf16.gmra.mxu3 %v5120_v3  ;;  %v7317_v3 = vld [vmem:[%s7982_s3 + $0x2c] sm:$0xf0] }
  0x82   : > { %v5300_v12 = vor.u32 %v7317_v3, %v5299_v2  ;;  %v5333_v2 = vld [vmem:[%s7982_s3 + $0x70] sm:$0xf0]  ;;  %v5339_v3 = vld [vmem:[%s7982_s3 + $0x68] sm:$0xf] }
  0x83   : > { %1920 = vmatpush.bf16.msra.mxu0 %v7477_v30  ;;  %v7483_v30 = vld [vmem:[%s9353_s1 + $0x250] sm:$0xff] }
  0x84   : > { %1969 = vmatpush.bf16.msra.mxu1 %v7485_v31  ;;  %v5347_v31 = vld [vmem:[%s7982_s3 + $0x80] sm:$0xf] }
  0x8e   : > { %758 = vmatmul.bf16.gmra.mxu0 %v5124_v16 }
  0x8f   : > { %807 = vmatmul.bf16.gmra.mxu1 %v5128_v17  ;;  %v5308_v17 = vor.u32 %v7318_v7, %v5307_v6  ;;  %v5341_v6 = vld [vmem:[%s7982_s3 + $0x78] sm:$0xf0] }
  0x90   : > { %856 = vmatmul.bf16.gmra.mxu2 %v5132_v18  ;;  %v5312_v18 = vor.u32 %v7316_v8, %v5309_v9 }
  0x91   : > { %905 = vmatmul.bf16.gmra.mxu3 %v5136_v19 }
  0x9e   : > { %763 = vmatmul.bf16.gmra.mxu0 %v5140_v32  ;;  %v5315_v32 = vld [vmem:[%s7982_s3 + $0x40] sm:$0xf] }
  0x9f   : > { %812 = vmatmul.bf16.gmra.mxu1 %v5144_v33  ;;  %v7321_v33 = vld [vmem:[%s7982_s3 + $0x4c] sm:$0xf0] }
  0xa0   : > { %861 = vmatmul.bf16.gmra.mxu2 %v5148_v34  ;;  %v7319_v34 = vld [vmem:[%s7982_s3 + $0x44] sm:$0xf]  ;;  %v5316_v42 = vor.u32 %v7321_v33, %v5315_v32  ;;  %v7329_v32 = vld [vmem:[%s7982_s3 + $0x8c] sm:$0xf0] }
  0xa1   : > { %910 = vmatmul.bf16.gmra.mxu3 %v5152_v35  ;;  %v5317_v35 = vld [vmem:[%s7982_s3 + $0x50] sm:$0xf0]  ;;  %v7327_v33 = vld [vmem:[%s7982_s3 + $0x84] sm:$0xf] }
  0xa2   : > { %v5320_v43 = vor.u32 %v7319_v34, %v5317_v35  ;;  %v5349_v34 = vld [vmem:[%s7982_s3 + $0x90] sm:$0xf0]  ;;  %v5355_v35 = vld [vmem:[%s7982_s3 + $0x88] sm:$0xf] }
  0xab   : > { %v729_v50 = vpop.f32.mrf.mxu0 }
  0xac   : > { %v778_v51 = vpop.f32.mrf.mxu1 }
  0xad   : > { %v779_v54 = vadd.f32 %v778_v51, %v729_v50  ;;  %v7492_v51 = vld [vmem:[%s9353_s1 + $0x298] sm:$0xff] }
  0xae   : > { %1276 = vmatmul.bf16.vlgmr.msrb.gmra.mxu0 %v5284_v48  ;;  %v5328_v48 = vor.u32 %v7320_v38, %v5325_v39  ;;  %2019 = vmatpush.bf16.msra.mxu2 %v7492_v51  ;;  %v5357_v38 = vld [vmem:[%s7982_s3 + $0x98] sm:$0xf0]  ;;  %v7490_v51 = vld [vmem:[%s9353_s1 + $0x288] sm:$0xff] }
  0xaf   : > { %1325 = vmatmul.bf16.vlgmr.msrb.gmra.mxu1 %v5288_v49 }
  0xb0   : > { %1374 = vmatmul.bf16.vlgmr.msrb.gmra.mxu2 %v5292_v52  ;;  %v7500_v52 = vld [vmem:[%s9353_s1 + $0x2d8] sm:$0xff] }
  0xb1   : > { %1423 = vmatmul.bf16.vlgmr.msrb.gmra.mxu3 %v5296_v53 }
  0xb2   : > { %2068 = vmatpush.bf16.msra.mxu3 %v7500_v52  ;;  %v7498_v52 = vld [vmem:[%s9353_s1 + $0x2c8] sm:$0xff] }
  0xb3   : > { %v827_v57 = vpop.f32.mrf.mxu2  ;;  %v731_v60 = vpop.f32.mrf.mxu0 }
  0xb4   : > { %v876_v58 = vpop.f32.mrf.mxu3  ;;  %v828_v59 = vadd.f32 %v827_v57, %v779_v54  ;;  %v780_v61 = vpop.f32.mrf.mxu1 }
  0xb5   : > { %v781_v62 = vadd.f32 %v780_v61, %v731_v60  ;;  %v7476_v60 = vld [vmem:[%s9353_s1 + $0x218] sm:$0xff] }
  0xb6   : > { %v8200_v63 = vadd.f32 %v876_v58, %v828_v59  ;;  %v7484_v61 = vld [vmem:[%s9353_s1 + $0x258] sm:$0xff]  ;;  %1921 = vmatpush.bf16.msra.mxu0 %v7476_v60 }
  0xb7   : > { %1970 = vmatpush.bf16.msra.mxu1 %v7484_v61  ;;  %v7474_v61 = vld [vmem:[%s9353_s1 + $0x208] sm:$0xff] }
  0xbb   : > { %v829_v10 = vpop.f32.mrf.mxu2  ;;  %v734_v15 = vpop.f32.mrf.mxu0  ;;  %1971 = vmatpush.bf16.msra.mxu1 %v7483_v30 }
  0xbc   : > { %v878_v11 = vpop.f32.mrf.mxu3  ;;  %v830_v14 = vadd.f32 %v829_v10, %v781_v62  ;;  %v783_v16 = vpop.f32.mrf.mxu1  ;;  %v5331_v62 = vld [vmem:[%s7982_s3 + $0x60] sm:$0xf]  ;;  %v5336_v10 = vor.u32 %v7323_v1, %v5333_v2  ;;  %v7333_v1 = vld [vmem:[%s7982_s3 + $0xac] sm:$0xf0]  ;;  %v7331_v2 = vld [vmem:[%s7982_s3 + $0xa4] sm:$0xf] }
  0xbd   : > { %v784_v19 = vadd.f32 %v783_v16, %v734_v15  ;;  %v5332_v9 = vor.u32 %v7325_v0, %v5331_v62  ;;  %v5344_v15 = vor.u32 %v7324_v5, %v5341_v6  ;;  %v7482_v62 = vld [vmem:[%s9353_s1 + $0x248] sm:$0xff]  ;;  %v5363_v0 = vld [vmem:[%s7982_s3 + $0xa0] sm:$0xf]  ;;  %v7334_v5 = vld [vmem:[%s7982_s3 + $0xb4] sm:$0xf0] }
  0xbe   : > { %v8216_v20 = vadd.f32 %v878_v11, %v830_v14  ;;  %1281 = vmatmul.bf16.gmra.mxu0 %v5300_v12  ;;  %v5340_v14 = vor.u32 %v7326_v4, %v5339_v3  ;;  %v5365_v3 = vld [vmem:[%s7982_s3 + $0xb0] sm:$0xf0]  ;;  %v5371_v4 = vld [vmem:[%s7982_s3 + $0xa8] sm:$0xf]  ;;  %v7332_v6 = vld [vmem:[%s7982_s3 + $0xac] sm:$0xf] }
  0xbf   : > { %1330 = vmatmul.bf16.gmra.mxu1 %v5304_v13 }
  0xc0   : > { %1379 = vmatmul.bf16.gmra.mxu2 %v5308_v17  ;;  %1972 = vmatpush.bf16.msra.mxu1 %v7482_v62 }
  0xc1   : > { %1428 = vmatmul.bf16.gmra.mxu3 %v5312_v18  ;;  %v7491_v18 = vld [vmem:[%s9353_s1 + $0x290] sm:$0xff] }
  0xc2   : > { %2020 = vmatpush.bf16.msra.mxu2 %v7491_v18 }
  0xc3   : > { %v832_v23 = vpop.f32.mrf.mxu2  ;;  %v736_v26 = vpop.f32.mrf.mxu0 }
  0xc4   : > { %v881_v24 = vpop.f32.mrf.mxu3  ;;  %v833_v25 = vadd.f32 %v832_v23, %v784_v19  ;;  %v785_v27 = vpop.f32.mrf.mxu1  ;;  %v7499_v19 = vld [vmem:[%s9353_s1 + $0x2d0] sm:$0xff] }
  0xc5   : > { %v786_v28 = vadd.f32 %v785_v27, %v736_v26  ;;  %2069 = vmatpush.bf16.msra.mxu3 %v7499_v19 }
  0xc6   : > { %v8224_v29 = vadd.f32 %v881_v24, %v833_v25  ;;  %2021 = vmatpush.bf16.msra.mxu2 %v7490_v51 }
  0xc9   : > { %2070 = vmatpush.bf16.msra.mxu3 %v7498_v52 }
  0xcb   : > { %v834_v40 = vpop.f32.mrf.mxu2  ;;  %v739_v45 = vpop.f32.mrf.mxu0 }
  0xcc   : > { %v883_v41 = vpop.f32.mrf.mxu3  ;;  %v835_v44 = vadd.f32 %v834_v40, %v786_v28  ;;  %v788_v46 = vpop.f32.mrf.mxu1  ;;  %v7475_v28 = vld [vmem:[%s9353_s1 + $0x210] sm:$0xff] }
  0xcd   : > { %v789_v49 = vadd.f32 %v788_v46, %v739_v45  ;;  %1922 = vmatpush.bf16.msra.mxu0 %v7475_v28  ;;  %v5356_v46 = vor.u32 %v7330_v36, %v5355_v35  ;;  %v7337_v35 = vld [vmem:[%s7982_s3 + $0xcc] sm:$0xf0]  ;;  %v7335_v36 = vld [vmem:[%s7982_s3 + $0xc4] sm:$0xf] }
  0xce   : > { %v8240_v50 = vadd.f32 %v883_v41, %v835_v44  ;;  %1286 = vmatmul.bf16.gmra.mxu0 %v5316_v42  ;;  %v5348_v41 = vor.u32 %v7329_v32, %v5347_v31  ;;  %v5352_v42 = vor.u32 %v7327_v33, %v5349_v34  ;;  %v7473_v32 = vld [vmem:[%s9353_s1 + $0x200] sm:$0xff] }
  0xcf   : > { %1335 = vmatmul.bf16.gmra.mxu1 %v5320_v43  ;;  %v7481_v33 = vld [vmem:[%s9353_s1 + $0x240] sm:$0xff] }
  0xd0   : > { %1384 = vmatmul.bf16.gmra.mxu2 %v5324_v47  ;;  %v5360_v47 = vor.u32 %v7328_v37, %v5357_v38  ;;  %v5379_v34 = vld [vmem:[%s7982_s3 + $0xc0] sm:$0xf]  ;;  %v5381_v37 = vld [vmem:[%s7982_s3 + $0xd0] sm:$0xf0]  ;;  %v5387_v38 = vld [vmem:[%s7982_s3 + $0xc8] sm:$0xf]  ;;  %1973 = vmatpush.bf16.msra.mxu1 %v7481_v33 }
  0xd1   : > { %1433 = vmatmul.bf16.gmra.mxu3 %v5328_v48  ;;  %1923 = vmatpush.bf16.msra.mxu0 %v7474_v61 }
  0xd3   : > { %v837_v53 = vpop.f32.mrf.mxu2  ;;  %v741_v56 = vpop.f32.mrf.mxu0 }
  0xd4   : > { %v886_v54 = vpop.f32.mrf.mxu3  ;;  %v838_v55 = vadd.f32 %v837_v53, %v789_v49  ;;  %v790_v57 = vpop.f32.mrf.mxu1 }
  0xd5   : > { %v791_v58 = vadd.f32 %v790_v57, %v741_v56  ;;  %1924 = vmatpush.bf16.msra.mxu0 %v7473_v32 }
  0xd6   : > { %v8248_v59 = vadd.f32 %v886_v54, %v838_v55 }
  0xdb   : > { %v839_v7 = vpop.f32.mrf.mxu2  ;;  %v744_v12 = vpop.f32.mrf.mxu0 }
  0xdc   : > { %v888_v8 = vpop.f32.mrf.mxu3  ;;  %v840_v11 = vadd.f32 %v839_v7, %v791_v58  ;;  %v793_v13 = vpop.f32.mrf.mxu1  ;;  %v5373_v7 = vld [vmem:[%s7982_s3 + $0xb8] sm:$0xf0] }
  0xdd   : > { %v794_v16 = vadd.f32 %v793_v13, %v744_v12 }
  0xde   : > { %v8264_v17 = vadd.f32 %v888_v8, %v840_v11  ;;  %1291 = vmatmul.bf16.gmra.mxu0 %v5332_v9  ;;  %v5368_v11 = vor.u32 %v7331_v2, %v5365_v3  ;;  %v7545_v3 = vld [vmem:[%s9353_s1 + $0x338] sm:$0xff] }
  0xdf   : > { %1340 = vmatmul.bf16.gmra.mxu1 %v5336_v10  ;;  %v5364_v10 = vor.u32 %v7333_v1, %v5363_v0  ;;  %2582 = vmatpush.bf16.msrb.mxu0 %v7545_v3 }
  0xe0   : > { %1389 = vmatmul.bf16.gmra.mxu2 %v5340_v14 }
  0xe1   : > { %1438 = vmatmul.bf16.gmra.mxu3 %v5344_v15  ;;  %v5372_v15 = vor.u32 %v7334_v5, %v5371_v4  ;;  %v7553_v4 = vld [vmem:[%s9353_s1 + $0x378] sm:$0xff]  ;;  %v5395_v5 = vld [vmem:[%s7982_s3 + $0xe0] sm:$0xf] }
  0xe2   : > { %2631 = vmatpush.bf16.msrb.mxu1 %v7553_v4  ;;  %v7559_v4 = vld [vmem:[%s9353_s1 + $0x3a8] sm:$0xff] }
  0xe3   : > { %v842_v21 = vpop.f32.mrf.mxu2  ;;  %v746_v24 = vpop.f32.mrf.mxu0 }
  0xe4   : > { %v891_v22 = vpop.f32.mrf.mxu3  ;;  %v843_v23 = vadd.f32 %v842_v21, %v794_v16  ;;  %v795_v25 = vpop.f32.mrf.mxu1  ;;  %v5376_v16 = vor.u32 %v7332_v6, %v5373_v7  ;;  %v7489_v21 = vld [vmem:[%s9353_s1 + $0x280] sm:$0xff]  ;;  %v7341_v6 = vld [vmem:[%s7982_s3 + $0xec] sm:$0xf0] }
  0xe5   : > { %v796_v26 = vadd.f32 %v795_v25, %v746_v24  ;;  %2022 = vmatpush.bf16.msra.mxu2 %v7489_v21  ;;  %v7339_v7 = vld [vmem:[%s7982_s3 + $0xe4] sm:$0xf] }
  0xe6   : > { %v8272_v27 = vadd.f32 %v891_v22, %v843_v23  ;;  %v7497_v22 = vld [vmem:[%s9353_s1 + $0x2c0] sm:$0xff] }
  0xe7   : > { %2071 = vmatpush.bf16.msra.mxu3 %v7497_v22 }
  0xeb   : > { %v844_v39 = vpop.f32.mrf.mxu2  ;;  %v749_v44 = vpop.f32.mrf.mxu0 }
  0xec   : > { %v893_v40 = vpop.f32.mrf.mxu3  ;;  %v845_v43 = vadd.f32 %v844_v39, %v796_v26  ;;  %v798_v45 = vpop.f32.mrf.mxu1  ;;  %v7338_v39 = vld [vmem:[%s7982_s3 + $0xd4] sm:$0xf0] }
  0xed   : > { %v799_v48 = vadd.f32 %v798_v45, %v749_v44  ;;  %v5380_v44 = vor.u32 %v7337_v35, %v5379_v34  ;;  %v5384_v45 = vor.u32 %v7335_v36, %v5381_v37  ;;  %v5388_v51 = vor.u32 %v7338_v39, %v5387_v38  ;;  %v7544_v39 = vld [vmem:[%s9353_s1 + $0x330] sm:$0xff] }
  0xee   : > { %v8288_v49 = vadd.f32 %v893_v40, %v845_v43  ;;  %1296 = vmatmul.bf16.gmra.mxu0 %v5348_v41  ;;  %v7336_v40 = vld [vmem:[%s7982_s3 + $0xcc] sm:$0xf]  ;;  %v5389_v41 = vld [vmem:[%s7982_s3 + $0xd8] sm:$0xf0] }
  0xef   : > { %1345 = vmatmul.bf16.gmra.mxu1 %v5352_v42  ;;  %v5392_v52 = vor.u32 %v7336_v40, %v5389_v41  ;;  %v7552_v40 = vld [vmem:[%s9353_s1 + $0x370] sm:$0xff]  ;;  %v5637_v41 = vld [vmem:[%s7982_s3 + $0x80] sm:$0xf]  ;;  %2583 = vmatpush.bf16.msrb.mxu0 %v7544_v39 }
  0xf0   : > { %1394 = vmatmul.bf16.gmra.mxu2 %v5356_v46  ;;  %2632 = vmatpush.bf16.msrb.mxu1 %v7552_v40 }
  0xf1   : > { %1443 = vmatmul.bf16.gmra.mxu3 %v5360_v47 }
  0xf3   : > { %v847_v53 = vpop.f32.mrf.mxu2  ;;  %v751_v56 = vpop.f32.mrf.mxu0 }
  0xf4   : > { %v896_v54 = vpop.f32.mrf.mxu3  ;;  %v848_v55 = vadd.f32 %v847_v53, %v799_v48  ;;  %v800_v57 = vpop.f32.mrf.mxu1 }
  0xf5   : > { %v801_v58 = vadd.f32 %v800_v57, %v751_v56  ;;  %v7569_v56 = vld [vmem:[%s9353_s1 + $0x3f8] sm:$0xff] }
  0xf6   : > { %v8296_v60 = vadd.f32 %v896_v54, %v848_v55  ;;  %v7561_v55 = vld [vmem:[%s9353_s1 + $0x3b8] sm:$0xff]  ;;  %2729 = vmatpush.bf16.msrb.mxu3 %v7569_v56 }
  0xf7   : > { %2680 = vmatpush.bf16.msrb.mxu2 %v7561_v55 }
  0xfb   : > { %v849_v8 = vpop.f32.mrf.mxu2  ;;  %v754_v13 = vpop.f32.mrf.mxu0 }
  0xfc   : > { %v898_v9 = vpop.f32.mrf.mxu3  ;;  %v850_v12 = vadd.f32 %v849_v8, %v801_v58  ;;  %v803_v14 = vpop.f32.mrf.mxu1  ;;  %v5397_v8 = vld [vmem:[%s7982_s3 + $0xf0] sm:$0xf0] }
  0xfd   : > { %v804_v18 = vadd.f32 %v803_v14, %v754_v13 }
  0xfe   : > { %v8312_v19 = vadd.f32 %v898_v9, %v850_v12  ;;  %1301 = vmatmul.bf16.gmra.mxu0 %v5364_v10  ;;  %v5403_v9 = vld [vmem:[%s7982_s3 + $0xe8] sm:$0xf]  ;;  %v7342_v10 = vld [vmem:[%s7982_s3 + $0xf4] sm:$0xf0]  ;;  %v5405_v12 = vld [vmem:[%s7982_s3 + $0xf8] sm:$0xf0] }
  0xff   : > { %1350 = vmatmul.bf16.gmra.mxu1 %v5368_v11  ;;  %v7340_v11 = vld [vmem:[%s7982_s3 + $0xec] sm:$0xf] }
 0x100   : > { %1399 = vmatmul.bf16.gmra.mxu2 %v5372_v15  ;;  %v5396_v15 = vor.u32 %v7341_v6, %v5395_v5  ;;  %v7567_v5 = vld [vmem:[%s9353_s1 + $0x3e8] sm:$0xff] }
 0x101   : > { %1448 = vmatmul.bf16.gmra.mxu3 %v5376_v16  ;;  %v5400_v16 = vor.u32 %v7339_v7, %v5397_v8 }
 0x103   : > { %v852_v23 = vpop.f32.mrf.mxu2  ;;  %v756_v26 = vpop.f32.mrf.mxu0 }
 0x104   : > { %v901_v24 = vpop.f32.mrf.mxu3  ;;  %v853_v25 = vadd.f32 %v852_v23, %v804_v18  ;;  %v805_v28 = vpop.f32.mrf.mxu1  ;;  %v5404_v23 = vor.u32 %v7342_v10, %v5403_v9 }
 0x105   : > { %v806_v30 = vadd.f32 %v805_v28, %v756_v26  ;;  %v7560_v28 = vld [vmem:[%s9353_s1 + $0x3b0] sm:$0xff] }
 0x106   : > { %v8320_v31 = vadd.f32 %v901_v24, %v853_v25  ;;  %v5408_v24 = vor.u32 %v7340_v11, %v5405_v12  ;;  %2681 = vmatpush.bf16.msrb.mxu2 %v7560_v28  ;;  %v7543_v12 = vld [vmem:[%s9353_s1 + $0x328] sm:$0xff] }
 0x107   : > { %2584 = vmatpush.bf16.msrb.mxu0 %v7543_v12 }
 0x10a   : > { %2682 = vmatpush.bf16.msrb.mxu2 %v7559_v4 }
 0x10b   : > { %v854_v42 = vpop.f32.mrf.mxu2  ;;  %v759_v47 = vpop.f32.mrf.mxu0 }
 0x10c   : > { %v903_v43 = vpop.f32.mrf.mxu3  ;;  %v855_v46 = vadd.f32 %v854_v42, %v806_v30  ;;  %v808_v48 = vpop.f32.mrf.mxu1  ;;  %v7568_v30 = vld [vmem:[%s9353_s1 + $0x3f0] sm:$0xff] }
 0x10d   : > { %v809_v53 = vadd.f32 %v808_v48, %v759_v47  ;;  %2730 = vmatpush.bf16.msrb.mxu3 %v7568_v30  ;;  %v7443_v42 = vld [vmem:[%s7982_s3 + $0x8c] sm:$0xf0]  ;;  %v7442_v47 = vld [vmem:[%s7982_s3 + $0x8c] sm:$0xf]  ;;  %v5647_v48 = vld [vmem:[%s7982_s3 + $0x98] sm:$0xf0] }
 0x10e   : > { %v8336_v54 = vadd.f32 %v903_v43, %v855_v46  ;;  %1306 = vmatmul.bf16.gmra.mxu0 %v5380_v44  ;;  %v7441_v43 = vld [vmem:[%s7982_s3 + $0x84] sm:$0xf]  ;;  %v5639_v44 = vld [vmem:[%s7982_s3 + $0x90] sm:$0xf0]  ;;  %v7444_v46 = vld [vmem:[%s7982_s3 + $0x94] sm:$0xf0] }
 0x10f   : > { %1355 = vmatmul.bf16.gmra.mxu1 %v5384_v45  ;;  %v5645_v45 = vld [vmem:[%s7982_s3 + $0x88] sm:$0xf]  ;;  %v5642_v55 = vor.u32 %v7441_v43, %v5639_v44  ;;  %v7566_v43 = vld [vmem:[%s9353_s1 + $0x3e0] sm:$0xff] }
 0x110   : > { %1404 = vmatmul.bf16.gmra.mxu2 %v5388_v51 }
 0x111   : > { %1453 = vmatmul.bf16.gmra.mxu3 %v5392_v52 }
 0x112   : > { %2731 = vmatpush.bf16.msrb.mxu3 %v7567_v5 }
 0x113   : > { %v857_v57 = vpop.f32.mrf.mxu2  ;;  %v761_v62 = vpop.f32.mrf.mxu0 }
 0x114   : > { %v906_v58 = vpop.f32.mrf.mxu3  ;;  %v858_v61 = vadd.f32 %v857_v57, %v809_v53  ;;  %v810_v0 = vpop.f32.mrf.mxu1  ;;  %v5638_v53 = vor.u32 %v7443_v42, %v5637_v41  ;;  %v7558_v42 = vld [vmem:[%s9353_s1 + $0x3a0] sm:$0xff] }
 0x115   : > { %v811_v1 = vadd.f32 %v810_v0, %v761_v62  ;;  %v5650_v62 = vor.u32 %v7442_v47, %v5647_v48  ;;  %2683 = vmatpush.bf16.msrb.mxu2 %v7558_v42 }
 0x116   : > { %v8344_v2 = vadd.f32 %v906_v58, %v858_v61  ;;  %v5646_v61 = vor.u32 %v7444_v46, %v5645_v45  ;;  %2732 = vmatpush.bf16.msrb.mxu3 %v7566_v43 }
 0x11b   : > { %v859_v13 = vpop.f32.mrf.mxu2  ;;  %v764_v21 = vpop.f32.mrf.mxu0 }
 0x11c   : > { %v908_v14 = vpop.f32.mrf.mxu3  ;;  %v860_v18 = vadd.f32 %v859_v13, %v811_v1  ;;  %v813_v22 = vpop.f32.mrf.mxu1  ;;  %v7551_v13 = vld [vmem:[%s9353_s1 + $0x368] sm:$0xff] }
 0x11d   : > { %v814_v25 = vadd.f32 %v813_v22, %v764_v21  ;;  %v5655_v21 = vld [vmem:[%s7982_s3 + $0xb0] sm:$0xf0]  ;;  %v5661_v22 = vld [vmem:[%s7982_s3 + $0xa8] sm:$0xf]  ;;  %2633 = vmatpush.bf16.msrb.mxu1 %v7551_v13 }
 0x11e   : > { %v8360_v26 = vadd.f32 %v908_v14, %v860_v18  ;;  %1311 = vmatmul.bf16.gmra.mxu0 %v5396_v15  ;;  %v5653_v15 = vld [vmem:[%s7982_s3 + $0xa0] sm:$0xf]  ;;  %v7445_v18 = vld [vmem:[%s7982_s3 + $0xa4] sm:$0xf] }
 0x11f   : > { %1360 = vmatmul.bf16.gmra.mxu1 %v5400_v16  ;;  %v7447_v16 = vld [vmem:[%s7982_s3 + $0xac] sm:$0xf0] }
 0x120   : > { %1409 = vmatmul.bf16.gmra.mxu2 %v5404_v23  ;;  %v7448_v23 = vld [vmem:[%s7982_s3 + $0xb4] sm:$0xf0]  ;;  %v5654_v30 = vor.u32 %v7447_v16, %v5653_v15 }
 0x121   : > { %1458 = vmatmul.bf16.gmra.mxu3 %v5408_v24  ;;  %v5663_v24 = vld [vmem:[%s7982_s3 + $0xb8] sm:$0xf0] }
 0x122   : > { %v7557_v16 = vld [vmem:[%s9353_s1 + $0x398] sm:$0xff] }
 0x123   : > { %v862_v32 = vpop.f32.mrf.mxu2  ;;  %v766_v35 = vpop.f32.mrf.mxu0  ;;  %2684 = vmatpush.bf16.msrb.mxu2 %v7557_v16 }
 0x124   : > { %v911_v33 = vpop.f32.mrf.mxu3  ;;  %v863_v34 = vadd.f32 %v862_v32, %v814_v25  ;;  %v815_v36 = vpop.f32.mrf.mxu1  ;;  %v5658_v32 = vor.u32 %v7445_v18, %v5655_v21  ;;  %v7565_v18 = vld [vmem:[%s9353_s1 + $0x3d8] sm:$0xff] }
 0x125   : > { %v816_v37 = vadd.f32 %v815_v36, %v766_v35  ;;  %v5662_v36 = vor.u32 %v7448_v23, %v5661_v22  ;;  %2733 = vmatpush.bf16.msrb.mxu3 %v7565_v18 }
 0x126   : > { %v8368_v38 = vadd.f32 %v911_v33, %v863_v34 }
 0x12b   : > { %v864_v51 = vpop.f32.mrf.mxu2  ;;  %v1277_v57 = vpop.f32.mrf.mxu0 }
 0x12c   : > { %v913_v52 = vpop.f32.mrf.mxu3  ;;  %v865_v56 = vadd.f32 %v864_v51, %v816_v37  ;;  %v1326_v58 = vpop.f32.mrf.mxu1  ;;  %v1278_v0 = vadd.f32 %v1277_v57, %v8200_v63  ;;  %v7451_v57 = vld [vmem:[%s7982_s3 + $0xcc] sm:$0xf0] }
 0x12e   : > { %v8385_v1 = vadd.f32 %v913_v52, %v865_v56  ;;  %v1327_v3 = vadd.f32 %v1326_v58, %v1278_v0  ;;  %1925 = vmatmul.bf16.vlgmr.msra.gmra.mxu0 %v5638_v53  ;;  %v7542_v52 = vld [vmem:[%s9353_s1 + $0x320] sm:$0xff]  ;;  %v7452_v0 = vld [vmem:[%s7982_s3 + $0xd4] sm:$0xf0] }
 0x12f   : > { %1974 = vmatmul.bf16.vlgmr.msra.gmra.mxu1 %v5642_v55  ;;  %v7550_v53 = vld [vmem:[%s9353_s1 + $0x360] sm:$0xff]  ;;  %2585 = vmatpush.bf16.msrb.mxu0 %v7542_v52 }
 0x130   : > { %2023 = vmatmul.bf16.vlgmr.msra.gmra.mxu2 %v5646_v61  ;;  %v5669_v56 = vld [vmem:[%s7982_s3 + $0xc0] sm:$0xf]  ;;  %v7449_v58 = vld [vmem:[%s7982_s3 + $0xc4] sm:$0xf]  ;;  %v5671_v61 = vld [vmem:[%s7982_s3 + $0xd0] sm:$0xf0]  ;;  %2634 = vmatpush.bf16.msrb.mxu1 %v7550_v53 }
 0x131   : > { %2072 = vmatmul.bf16.vlgmr.msra.gmra.mxu3 %v5650_v62  ;;  %v5677_v62 = vld [vmem:[%s7982_s3 + $0xc8] sm:$0xf] }
 0x133   : > { %v1375_v63 = vpop.f32.mrf.mxu2  ;;  %v1279_v8 = vpop.f32.mrf.mxu0 }
 0x134   : > { %v1424_v6 = vpop.f32.mrf.mxu3  ;;  %v1376_v7 = vadd.f32 %v1375_v63, %v1327_v3  ;;  %v1328_v9 = vpop.f32.mrf.mxu1  ;;  %v1280_v10 = vadd.f32 %v1279_v8, %v8216_v20  ;;  %v7446_v20 = vld [vmem:[%s7982_s3 + $0xac] sm:$0xf]  ;;  %v5679_v3 = vld [vmem:[%s7982_s3 + $0xd8] sm:$0xf0]  ;;  %v5670_v63 = vor.u32 %v7451_v57, %v5669_v56  ;;  %v7556_v57 = vld [vmem:[%s9353_s1 + $0x390] sm:$0xff] }
 0x135   : > { %v5666_v37 = vor.u32 %v7446_v20, %v5663_v24  ;;  %2685 = vmatpush.bf16.msrb.mxu2 %v7556_v57 }
 0x136   : > { %v8394_v11 = vadd.f32 %v1424_v6, %v1376_v7  ;;  %v1329_v14 = vadd.f32 %v1328_v9, %v1280_v10  ;;  %v5674_v6 = vor.u32 %v7449_v58, %v5671_v61  ;;  %v5678_v10 = vor.u32 %v7452_v0, %v5677_v62  ;;  %v7564_v58 = vld [vmem:[%s9353_s1 + $0x3d0] sm:$0xff] }
 0x137   : > { %2734 = vmatpush.bf16.msrb.mxu3 %v7564_v58 }
 0x13b   : > { %v1377_v25 = vpop.f32.mrf.mxu2  ;;  %v1282_v34 = vpop.f32.mrf.mxu0 }
 0x13c   : > { %v1426_v28 = vpop.f32.mrf.mxu3  ;;  %v1378_v33 = vadd.f32 %v1377_v25, %v1329_v14  ;;  %v1331_v35 = vpop.f32.mrf.mxu1  ;;  %v1283_v39 = vadd.f32 %v1282_v34, %v8224_v29  ;;  %v7455_v34 = vld [vmem:[%s7982_s3 + $0xec] sm:$0xf0] }
 0x13e   : > { %v8411_v40 = vadd.f32 %v1426_v28, %v1378_v33  ;;  %v1332_v41 = vadd.f32 %v1331_v35, %v1283_v39  ;;  %1930 = vmatmul.bf16.gmra.mxu0 %v5654_v30  ;;  %v7541_v28 = vld [vmem:[%s9353_s1 + $0x318] sm:$0xff]  ;;  %v5685_v33 = vld [vmem:[%s7982_s3 + $0xe0] sm:$0xf]  ;;  %v7453_v35 = vld [vmem:[%s7982_s3 + $0xe4] sm:$0xf] }
 0x13f   : > { %1979 = vmatmul.bf16.gmra.mxu1 %v5658_v32  ;;  %v7549_v30 = vld [vmem:[%s9353_s1 + $0x358] sm:$0xff]  ;;  %2586 = vmatpush.bf16.msrb.mxu0 %v7541_v28 }
 0x140   : > { %2028 = vmatmul.bf16.gmra.mxu2 %v5662_v36  ;;  %v5687_v36 = vld [vmem:[%s7982_s3 + $0xf0] sm:$0xf0]  ;;  %2635 = vmatpush.bf16.msrb.mxu1 %v7549_v30  ;;  %v7456_v39 = vld [vmem:[%s7982_s3 + $0xf4] sm:$0xf0] }
 0x141   : > { %2077 = vmatmul.bf16.gmra.mxu3 %v5666_v37  ;;  %v5693_v37 = vld [vmem:[%s7982_s3 + $0xe8] sm:$0xf] }
 0x143   : > { %v1380_v29 = vpop.f32.mrf.mxu2  ;;  %v1284_v46 = vpop.f32.mrf.mxu0 }
 0x144   : > { %v1429_v44 = vpop.f32.mrf.mxu3  ;;  %v1381_v45 = vadd.f32 %v1380_v29, %v1332_v41  ;;  %v1333_v47 = vpop.f32.mrf.mxu1  ;;  %v1285_v48 = vadd.f32 %v1284_v46, %v8240_v50  ;;  %v7450_v50 = vld [vmem:[%s7982_s3 + $0xcc] sm:$0xf]  ;;  %v5695_v41 = vld [vmem:[%s7982_s3 + $0xf8] sm:$0xf0]  ;;  %v5686_v29 = vor.u32 %v7455_v34, %v5685_v33 }
 0x145   : > { %v5682_v12 = vor.u32 %v7450_v50, %v5679_v3  ;;  %v7555_v34 = vld [vmem:[%s9353_s1 + $0x388] sm:$0xff] }
 0x146   : > { %v8420_v51 = vadd.f32 %v1429_v44, %v1381_v45  ;;  %v1334_v55 = vadd.f32 %v1333_v47, %v1285_v48  ;;  %v5690_v44 = vor.u32 %v7453_v35, %v5687_v36  ;;  %v5694_v48 = vor.u32 %v7456_v39, %v5693_v37  ;;  %v7563_v35 = vld [vmem:[%s9353_s1 + $0x3c8] sm:$0xff]  ;;  %2686 = vmatpush.bf16.msrb.mxu2 %v7555_v34 }
 0x147   : > { %2735 = vmatpush.bf16.msrb.mxu3 %v7563_v35 }
 0x14b   : > { %v1382_v4 = vpop.f32.mrf.mxu2  ;;  %v1287_v8 = vpop.f32.mrf.mxu0 }
 0x14c   : > { %v1431_v5 = vpop.f32.mrf.mxu3  ;;  %v1383_v7 = vadd.f32 %v1382_v4, %v1334_v55  ;;  %v1336_v9 = vpop.f32.mrf.mxu1  ;;  %v1288_v13 = vadd.f32 %v1287_v8, %v8248_v59  ;;  %v7459_v8 = vld [vmem:[%s7982_s3 + $0x10c] sm:$0xf0] }
 0x14e   : > { %v8437_v14 = vadd.f32 %v1431_v5, %v1383_v7  ;;  %v1337_v15 = vadd.f32 %v1336_v9, %v1288_v13  ;;  %1935 = vmatmul.bf16.gmra.mxu0 %v5670_v63  ;;  %v7540_v5 = vld [vmem:[%s9353_s1 + $0x310] sm:$0xff]  ;;  %v5701_v7 = vld [vmem:[%s7982_s3 + $0x100] sm:$0xf]  ;;  %v7457_v9 = vld [vmem:[%s7982_s3 + $0x104] sm:$0xf] }
 0x14f   : > { %1984 = vmatmul.bf16.gmra.mxu1 %v5674_v6  ;;  %v7548_v63 = vld [vmem:[%s9353_s1 + $0x350] sm:$0xff]  ;;  %2587 = vmatpush.bf16.msrb.mxu0 %v7540_v5  ;;  %v7460_v13 = vld [vmem:[%s7982_s3 + $0x114] sm:$0xf0] }
 0x150   : > { %2033 = vmatmul.bf16.gmra.mxu2 %v5678_v10  ;;  %v5703_v10 = vld [vmem:[%s7982_s3 + $0x110] sm:$0xf0]  ;;  %2636 = vmatpush.bf16.msrb.mxu1 %v7548_v63 }
 0x151   : > { %2082 = vmatmul.bf16.gmra.mxu3 %v5682_v12  ;;  %v5709_v12 = vld [vmem:[%s7982_s3 + $0x108] sm:$0xf] }
 0x153   : > { %v1385_v59 = vpop.f32.mrf.mxu2  ;;  %v1289_v23 = vpop.f32.mrf.mxu0 }
 0x154   : > { %v1434_v21 = vpop.f32.mrf.mxu3  ;;  %v1386_v22 = vadd.f32 %v1385_v59, %v1337_v15  ;;  %v1338_v20 = vpop.f32.mrf.mxu1  ;;  %v1290_v24 = vadd.f32 %v1289_v23, %v8264_v17  ;;  %v7454_v17 = vld [vmem:[%s7982_s3 + $0xec] sm:$0xf]  ;;  %v5711_v15 = vld [vmem:[%s7982_s3 + $0x118] sm:$0xf0]  ;;  %v5702_v59 = vor.u32 %v7459_v8, %v5701_v7  ;;  %v7554_v8 = vld [vmem:[%s9353_s1 + $0x380] sm:$0xff] }
 0x155   : > { %v5698_v52 = vor.u32 %v7454_v17, %v5695_v41  ;;  %2687 = vmatpush.bf16.msrb.mxu2 %v7554_v8  ;;  %v5759_v8 = vld [vmem:[%s7982_s3 + $0x178] sm:$0xf0] }
 0x156   : > { %v8446_v25 = vadd.f32 %v1434_v21, %v1386_v22  ;;  %v1339_v32 = vadd.f32 %v1338_v20, %v1290_v24  ;;  %v5706_v21 = vor.u32 %v7457_v9, %v5703_v10  ;;  %v5710_v24 = vor.u32 %v7460_v13, %v5709_v12  ;;  %v7562_v9 = vld [vmem:[%s9353_s1 + $0x3c0] sm:$0xff] }
 0x157   : > { %2736 = vmatpush.bf16.msrb.mxu3 %v7562_v9 }
 0x15b   : > { %v1387_v42 = vpop.f32.mrf.mxu2  ;;  %v1292_v46 = vpop.f32.mrf.mxu0 }
 0x15c   : > { %v1436_v43 = vpop.f32.mrf.mxu3  ;;  %v1388_v45 = vadd.f32 %v1387_v42, %v1339_v32  ;;  %v1341_v47 = vpop.f32.mrf.mxu1  ;;  %v1293_v53 = vadd.f32 %v1292_v46, %v8272_v27  ;;  %v7463_v46 = vld [vmem:[%s7982_s3 + $0x12c] sm:$0xf0] }
 0x15e   : > { %v8463_v55 = vadd.f32 %v1436_v43, %v1388_v45  ;;  %v1342_v56 = vadd.f32 %v1341_v47, %v1293_v53  ;;  %1940 = vmatmul.bf16.gmra.mxu0 %v5686_v29  ;;  %v7539_v43 = vld [vmem:[%s9353_s1 + $0x308] sm:$0xff]  ;;  %v5717_v45 = vld [vmem:[%s7982_s3 + $0x120] sm:$0xf]  ;;  %v7461_v47 = vld [vmem:[%s7982_s3 + $0x124] sm:$0xf] }
 0x15f   : > { %1989 = vmatmul.bf16.gmra.mxu1 %v5690_v44  ;;  %v7547_v29 = vld [vmem:[%s9353_s1 + $0x348] sm:$0xff]  ;;  %2588 = vmatpush.bf16.msrb.mxu0 %v7539_v43  ;;  %v7464_v53 = vld [vmem:[%s7982_s3 + $0x134] sm:$0xf0] }
 0x160   : > { %2038 = vmatmul.bf16.gmra.mxu2 %v5694_v48  ;;  %v5719_v48 = vld [vmem:[%s7982_s3 + $0x130] sm:$0xf0]  ;;  %2637 = vmatpush.bf16.msrb.mxu1 %v7547_v29 }
 0x161   : > { %2087 = vmatmul.bf16.gmra.mxu3 %v5698_v52  ;;  %v5725_v52 = vld [vmem:[%s7982_s3 + $0x128] sm:$0xf] }
 0x163   : > { %v1390_v27 = vpop.f32.mrf.mxu2  ;;  %v1294_v0 = vpop.f32.mrf.mxu0 }
 0x164   : > { %v1439_v61 = vpop.f32.mrf.mxu3  ;;  %v1391_v62 = vadd.f32 %v1390_v27, %v1342_v56  ;;  %v1343_v50 = vpop.f32.mrf.mxu1  ;;  %v1295_v3 = vadd.f32 %v1294_v0, %v8288_v49  ;;  %v7458_v49 = vld [vmem:[%s7982_s3 + $0x10c] sm:$0xf]  ;;  %v5727_v56 = vld [vmem:[%s7982_s3 + $0x138] sm:$0xf0]  ;;  %v5718_v27 = vor.u32 %v7463_v46, %v5717_v45 }
 0x165   : > { %v5714_v28 = vor.u32 %v7458_v49, %v5711_v15  ;;  %v7626_v46 = vld [vmem:[%s9353_s1 + $0x4b8] sm:$0xff] }
 0x166   : > { %v8472_v4 = vadd.f32 %v1439_v61, %v1391_v62  ;;  %v1344_v6 = vadd.f32 %v1343_v50, %v1295_v3  ;;  %v5722_v61 = vor.u32 %v7461_v47, %v5719_v48  ;;  %v5726_v3 = vor.u32 %v7464_v53, %v5725_v52  ;;  %3345 = vmatpush.bf16.msra.mxu2 %v7626_v46  ;;  %v6001_v46 = vld [vmem:[%s7982_s3 + $0xd8] sm:$0xf0] }
 0x16b   : > { %v1392_v16 = vpop.f32.mrf.mxu2  ;;  %v1297_v23 = vpop.f32.mrf.mxu0 }
 0x16c   : > { %v1441_v18 = vpop.f32.mrf.mxu3  ;;  %v1393_v22 = vadd.f32 %v1392_v16, %v1344_v6  ;;  %v1346_v20 = vpop.f32.mrf.mxu1  ;;  %v1298_v30 = vadd.f32 %v1297_v23, %v8296_v60  ;;  %v7467_v23 = vld [vmem:[%s7982_s3 + $0x14c] sm:$0xf0] }
 0x16e   : > { %v8489_v32 = vadd.f32 %v1441_v18, %v1393_v22  ;;  %v1347_v33 = vadd.f32 %v1346_v20, %v1298_v30  ;;  %1945 = vmatmul.bf16.gmra.mxu0 %v5702_v59  ;;  %v7538_v18 = vld [vmem:[%s9353_s1 + $0x300] sm:$0xff]  ;;  %v7468_v30 = vld [vmem:[%s7982_s3 + $0x154] sm:$0xf0] }
 0x16f   : > { %1994 = vmatmul.bf16.gmra.mxu1 %v5706_v21  ;;  %v7546_v59 = vld [vmem:[%s9353_s1 + $0x340] sm:$0xff]  ;;  %2589 = vmatpush.bf16.msrb.mxu0 %v7538_v18 }
 0x170   : > { %2043 = vmatmul.bf16.gmra.mxu2 %v5710_v24  ;;  %v5733_v22 = vld [vmem:[%s7982_s3 + $0x140] sm:$0xf]  ;;  %v7465_v20 = vld [vmem:[%s7982_s3 + $0x144] sm:$0xf]  ;;  %v5735_v24 = vld [vmem:[%s7982_s3 + $0x150] sm:$0xf0]  ;;  %2638 = vmatpush.bf16.msrb.mxu1 %v7546_v59 }
 0x171   : > { %2092 = vmatmul.bf16.gmra.mxu3 %v5714_v28  ;;  %v5741_v28 = vld [vmem:[%s7982_s3 + $0x148] sm:$0xf] }
 0x173   : > { %v1395_v60 = vpop.f32.mrf.mxu2  ;;  %v1299_v39 = vpop.f32.mrf.mxu0 }
 0x174   : > { %v1444_v36 = vpop.f32.mrf.mxu3  ;;  %v1396_v37 = vadd.f32 %v1395_v60, %v1347_v33  ;;  %v1348_v17 = vpop.f32.mrf.mxu1  ;;  %v1300_v41 = vadd.f32 %v1299_v39, %v8312_v19  ;;  %v7462_v19 = vld [vmem:[%s7982_s3 + $0x12c] sm:$0xf]  ;;  %v5743_v33 = vld [vmem:[%s7982_s3 + $0x158] sm:$0xf0]  ;;  %v5734_v60 = vor.u32 %v7467_v23, %v5733_v22  ;;  %v7625_v23 = vld [vmem:[%s9353_s1 + $0x4b0] sm:$0xff] }
 0x175   : > { %v5730_v5 = vor.u32 %v7462_v19, %v5727_v56  ;;  %3346 = vmatpush.bf16.msra.mxu2 %v7625_v23  ;;  %v6017_v23 = vld [vmem:[%s7982_s3 + $0xf8] sm:$0xf0] }
 0x176   : > { %v8498_v42 = vadd.f32 %v1444_v36, %v1396_v37  ;;  %v1349_v44 = vadd.f32 %v1348_v17, %v1300_v41  ;;  %v5738_v36 = vor.u32 %v7465_v20, %v5735_v24  ;;  %v5742_v41 = vor.u32 %v7468_v30, %v5741_v28 }
 0x17b   : > { %v1397_v57 = vpop.f32.mrf.mxu2  ;;  %v1302_v0 = vpop.f32.mrf.mxu0 }
 0x17c   : > { %v1446_v58 = vpop.f32.mrf.mxu3  ;;  %v1398_v62 = vadd.f32 %v1397_v57, %v1349_v44  ;;  %v1351_v50 = vpop.f32.mrf.mxu1  ;;  %v1303_v63 = vadd.f32 %v1302_v0, %v8320_v31  ;;  %v5751_v0 = vld [vmem:[%s7982_s3 + $0x170] sm:$0xf0] }
 0x17e   : > { %v8515_v6 = vadd.f32 %v1446_v58, %v1398_v62  ;;  %v1352_v7 = vadd.f32 %v1351_v50, %v1303_v63  ;;  %1950 = vmatmul.bf16.gmra.mxu0 %v5718_v27  ;;  %v5749_v58 = vld [vmem:[%s7982_s3 + $0x160] sm:$0xf]  ;;  %v7469_v62 = vld [vmem:[%s7982_s3 + $0x164] sm:$0xf]  ;;  %v5757_v50 = vld [vmem:[%s7982_s3 + $0x168] sm:$0xf] }
 0x17f   : > { %1999 = vmatmul.bf16.gmra.mxu1 %v5722_v61  ;;  %v7471_v61 = vld [vmem:[%s7982_s3 + $0x16c] sm:$0xf0]  ;;  %v7472_v63 = vld [vmem:[%s7982_s3 + $0x174] sm:$0xf0] }
 0x180   : > { %2048 = vmatmul.bf16.gmra.mxu2 %v5726_v3  ;;  %v7610_v3 = vld [vmem:[%s9353_s1 + $0x438] sm:$0xff] }
 0x181   : > { %2097 = vmatmul.bf16.gmra.mxu3 %v5730_v5  ;;  %v7618_v5 = vld [vmem:[%s9353_s1 + $0x478] sm:$0xff]  ;;  %3247 = vmatpush.bf16.msra.mxu0 %v7610_v3 }
 0x182   : > { %3296 = vmatpush.bf16.msra.mxu1 %v7618_v5 }
 0x183   : > { %v1400_v31 = vpop.f32.mrf.mxu2  ;;  %v1304_v13 = vpop.f32.mrf.mxu0 }
 0x184   : > { %v1449_v10 = vpop.f32.mrf.mxu3  ;;  %v1401_v12 = vadd.f32 %v1400_v31, %v1352_v7  ;;  %v1353_v49 = vpop.f32.mrf.mxu1  ;;  %v1305_v15 = vadd.f32 %v1304_v13, %v8336_v54  ;;  %v7466_v54 = vld [vmem:[%s7982_s3 + $0x14c] sm:$0xf]  ;;  %v5750_v31 = vor.u32 %v7471_v61, %v5749_v58 }
 0x185   : > { %v5746_v43 = vor.u32 %v7466_v54, %v5743_v33  ;;  %v7470_v7 = vld [vmem:[%s7982_s3 + $0x16c] sm:$0xf] }
 0x186   : > { %v8524_v16 = vadd.f32 %v1449_v10, %v1401_v12  ;;  %v1354_v21 = vadd.f32 %v1353_v49, %v1305_v15  ;;  %v5754_v10 = vor.u32 %v7469_v62, %v5751_v0  ;;  %v5758_v15 = vor.u32 %v7472_v63, %v5757_v50  ;;  %v7624_v62 = vld [vmem:[%s9353_s1 + $0x4a8] sm:$0xff] }
 0x187   : > { %v5762_v18 = vor.u32 %v7470_v7, %v5759_v8  ;;  %v7632_v0 = vld [vmem:[%s9353_s1 + $0x4e8] sm:$0xff]  ;;  %3347 = vmatpush.bf16.msra.mxu2 %v7624_v62 }
 0x188   : > { %v7515_v62 = vld [vmem:[%s7982_s3 + $0x10c] sm:$0xf] }
 0x18b   : > { %v1402_v34 = vpop.f32.mrf.mxu2  ;;  %v1307_v39 = vpop.f32.mrf.mxu0 }
 0x18c   : > { %v1451_v35 = vpop.f32.mrf.mxu3  ;;  %v1403_v37 = vadd.f32 %v1402_v34, %v1354_v21  ;;  %v1356_v17 = vpop.f32.mrf.mxu1  ;;  %v1308_v29 = vadd.f32 %v1307_v39, %v8344_v2  ;;  %v7634_v2 = vld [vmem:[%s9353_s1 + $0x4f8] sm:$0xff]  ;;  %v5993_v39 = vld [vmem:[%s7982_s3 + $0xd0] sm:$0xf0] }
 0x18d   : > { %3394 = vmatpush.bf16.msra.mxu3 %v7634_v2 }
 0x18e   : > { %v8541_v44 = vadd.f32 %v1451_v35, %v1403_v37  ;;  %v1357_v45 = vadd.f32 %v1356_v17, %v1308_v29  ;;  %1955 = vmatmul.bf16.gmra.mxu0 %v5734_v60  ;;  %v5991_v35 = vld [vmem:[%s7982_s3 + $0xc0] sm:$0xf]  ;;  %v7506_v37 = vld [vmem:[%s7982_s3 + $0xc4] sm:$0xf]  ;;  %v5999_v17 = vld [vmem:[%s7982_s3 + $0xc8] sm:$0xf] }
 0x18f   : > { %2004 = vmatmul.bf16.gmra.mxu1 %v5738_v36  ;;  %v7508_v36 = vld [vmem:[%s7982_s3 + $0xcc] sm:$0xf0]  ;;  %v7509_v29 = vld [vmem:[%s7982_s3 + $0xd4] sm:$0xf0] }
 0x190   : > { %2053 = vmatmul.bf16.gmra.mxu2 %v5742_v41  ;;  %v7609_v41 = vld [vmem:[%s9353_s1 + $0x430] sm:$0xff] }
 0x191   : > { %2102 = vmatmul.bf16.gmra.mxu3 %v5746_v43  ;;  %v7617_v43 = vld [vmem:[%s9353_s1 + $0x470] sm:$0xff]  ;;  %3248 = vmatpush.bf16.msra.mxu0 %v7609_v41 }
 0x192   : > { %3297 = vmatpush.bf16.msra.mxu1 %v7617_v43 }
 0x193   : > { %v1405_v47 = vpop.f32.mrf.mxu2  ;;  %v1309_v53 = vpop.f32.mrf.mxu0 }
 0x194   : > { %v1454_v48 = vpop.f32.mrf.mxu3  ;;  %v1406_v52 = vadd.f32 %v1405_v47, %v1357_v45  ;;  %v1358_v19 = vpop.f32.mrf.mxu1  ;;  %v1310_v56 = vadd.f32 %v1309_v53, %v8360_v26  ;;  %v7507_v45 = vld [vmem:[%s7982_s3 + $0xcc] sm:$0xf]  ;;  %v5992_v47 = vor.u32 %v7508_v36, %v5991_v35 }
 0x195   : > { %v6004_v58 = vor.u32 %v7507_v45, %v6001_v46 }
 0x196   : > { %v8550_v57 = vadd.f32 %v1454_v48, %v1406_v52  ;;  %v1359_v27 = vadd.f32 %v1358_v19, %v1310_v56  ;;  %v5996_v48 = vor.u32 %v7506_v37, %v5993_v39  ;;  %v6000_v56 = vor.u32 %v7509_v29, %v5999_v17  ;;  %v7623_v39 = vld [vmem:[%s9353_s1 + $0x4a0] sm:$0xff] }
 0x197   : > { %v7631_v17 = vld [vmem:[%s9353_s1 + $0x4e0] sm:$0xff]  ;;  %3348 = vmatpush.bf16.msra.mxu2 %v7623_v39  ;;  %v7519_v39 = vld [vmem:[%s7982_s3 + $0x12c] sm:$0xf] }
 0x19b   : > { %v1407_v26 = vpop.f32.mrf.mxu2  ;;  %v1312_v13 = vpop.f32.mrf.mxu0 }
 0x19c   : > { %v1456_v9 = vpop.f32.mrf.mxu3  ;;  %v1408_v12 = vadd.f32 %v1407_v26, %v1359_v27  ;;  %v1361_v49 = vpop.f32.mrf.mxu1  ;;  %v1313_v59 = vadd.f32 %v1312_v13, %v8368_v38  ;;  %v7633_v38 = vld [vmem:[%s9353_s1 + $0x4f0] sm:$0xff] }
 0x19d   : > { %3395 = vmatpush.bf16.msra.mxu3 %v7633_v38 }
 0x19e   : > { %v8567_v21 = vadd.f32 %v1456_v9, %v1408_v12  ;;  %v1362_v22 = vadd.f32 %v1361_v49, %v1313_v59  ;;  %1960 = vmatmul.bf16.gmra.mxu0 %v5750_v31  ;;  %v6007_v9 = vld [vmem:[%s7982_s3 + $0xe0] sm:$0xf]  ;;  %v7512_v31 = vld [vmem:[%s7982_s3 + $0xec] sm:$0xf0]  ;;  %v6009_v12 = vld [vmem:[%s7982_s3 + $0xf0] sm:$0xf0] }
 0x19f   : > { %2009 = vmatmul.bf16.gmra.mxu1 %v5754_v10  ;;  %v7510_v10 = vld [vmem:[%s7982_s3 + $0xe4] sm:$0xf]  ;;  %v6015_v49 = vld [vmem:[%s7982_s3 + $0xe8] sm:$0xf]  ;;  %v7513_v59 = vld [vmem:[%s7982_s3 + $0xf4] sm:$0xf0] }
 0x1a0   : > { %2058 = vmatmul.bf16.gmra.mxu2 %v5758_v15  ;;  %v7608_v15 = vld [vmem:[%s9353_s1 + $0x428] sm:$0xff] }
 0x1a1   : > { %2107 = vmatmul.bf16.gmra.mxu3 %v5762_v18  ;;  %v7616_v18 = vld [vmem:[%s9353_s1 + $0x468] sm:$0xff]  ;;  %3249 = vmatpush.bf16.msra.mxu0 %v7608_v15  ;;  %v7630_v15 = vld [vmem:[%s9353_s1 + $0x4d8] sm:$0xff] }
 0x1a2   : > { %3396 = vmatpush.bf16.msra.mxu3 %v7632_v0  ;;  %3298 = vmatpush.bf16.msra.mxu1 %v7616_v18  ;;  %v6033_v0 = vld [vmem:[%s7982_s3 + $0x118] sm:$0xf0] }
 0x1a3   : > { %v1410_v20 = vpop.f32.mrf.mxu2  ;;  %v1314_v30 = vpop.f32.mrf.mxu0 }
 0x1a4   : > { %v1459_v24 = vpop.f32.mrf.mxu3  ;;  %v1411_v28 = vadd.f32 %v1410_v20, %v1362_v22  ;;  %v1363_v54 = vpop.f32.mrf.mxu1  ;;  %v1315_v33 = vadd.f32 %v1314_v30, %v8385_v1  ;;  %v7511_v22 = vld [vmem:[%s7982_s3 + $0xec] sm:$0xf] }
 0x1a5   : > { %v6020_v35 = vor.u32 %v7511_v22, %v6017_v23 }
 0x1a6   : > { %v8576_v34 = vadd.f32 %v1459_v24, %v1411_v28  ;;  %v1364_v60 = vadd.f32 %v1363_v54, %v1315_v33  ;;  %v6008_v24 = vor.u32 %v7512_v31, %v6007_v9  ;;  %v6012_v28 = vor.u32 %v7510_v10, %v6009_v12  ;;  %3397 = vmatpush.bf16.msra.mxu3 %v7631_v17  ;;  %v6049_v17 = vld [vmem:[%s7982_s3 + $0x138] sm:$0xf0] }
 0x1a7   : > { %v6016_v33 = vor.u32 %v7513_v59, %v6015_v49  ;;  %v6036_v9 = vor.u32 %v7515_v62, %v6033_v0  ;;  %v7622_v49 = vld [vmem:[%s9353_s1 + $0x498] sm:$0xff] }
 0x1a8   : > { %3349 = vmatpush.bf16.msra.mxu2 %v7622_v49  ;;  %v7523_v49 = vld [vmem:[%s7982_s3 + $0x14c] sm:$0xf] }
 0x1aa   : > { %3398 = vmatpush.bf16.msra.mxu3 %v7630_v15  ;;  %v6065_v15 = vld [vmem:[%s7982_s3 + $0x158] sm:$0xf0] }
 0x1ab   : > { %v1412_v1 = vpop.f32.mrf.mxu2  ;;  %v1926_v53 = vpop.f32.mrf.mxu0 }
 0x1ac   : > { %v1461_v2 = vpop.f32.mrf.mxu3  ;;  %v1413_v52 = vadd.f32 %v1412_v1, %v1364_v60  ;;  %v1975_v19 = vpop.f32.mrf.mxu1 }
 0x1ad   : > { %v1976_v27 = vadd.f32 %v1975_v19, %v1926_v53  ;;  %v6031_v19 = vld [vmem:[%s7982_s3 + $0x108] sm:$0xf] }
 0x1ae   : > { %v8592_v61 = vadd.f32 %v1461_v2, %v1413_v52  ;;  %2590 = vmatmul.bf16.vlgmr.msrb.gmra.mxu0 %v5992_v47  ;;  %v6023_v2 = vld [vmem:[%s7982_s3 + $0x100] sm:$0xf]  ;;  %v7516_v47 = vld [vmem:[%s7982_s3 + $0x10c] sm:$0xf0]  ;;  %v6025_v52 = vld [vmem:[%s7982_s3 + $0x110] sm:$0xf0] }
 0x1af   : > { %2639 = vmatmul.bf16.vlgmr.msrb.gmra.mxu1 %v5996_v48  ;;  %v7514_v48 = vld [vmem:[%s7982_s3 + $0x104] sm:$0xf] }
 0x1b0   : > { %2688 = vmatmul.bf16.vlgmr.msrb.gmra.mxu2 %v6000_v56  ;;  %v7607_v56 = vld [vmem:[%s9353_s1 + $0x420] sm:$0xff] }
 0x1b1   : > { %2737 = vmatmul.bf16.vlgmr.msrb.gmra.mxu3 %v6004_v58  ;;  %v7615_v58 = vld [vmem:[%s9353_s1 + $0x460] sm:$0xff]  ;;  %3250 = vmatpush.bf16.msra.mxu0 %v7607_v56  ;;  %v7629_v56 = vld [vmem:[%s9353_s1 + $0x4d0] sm:$0xff] }
 0x1b2   : > { %3299 = vmatpush.bf16.msra.mxu1 %v7615_v58  ;;  %3399 = vmatpush.bf16.msra.mxu3 %v7629_v56  ;;  %v6081_v56 = vld [vmem:[%s7982_s3 + $0x178] sm:$0xf0] }
 0x1b3   : > { %v2024_v50 = vpop.f32.mrf.mxu2  ;;  %v1928_v63 = vpop.f32.mrf.mxu0 }
 0x1b4   : > { %v2073_v3 = vpop.f32.mrf.mxu3  ;;  %v2025_v5 = vadd.f32 %v2024_v50, %v1976_v27  ;;  %v1977_v7 = vpop.f32.mrf.mxu1  ;;  %v7517_v27 = vld [vmem:[%s7982_s3 + $0x114] sm:$0xf0] }
 0x1b5   : > { %v1978_v8 = vadd.f32 %v1977_v7, %v1928_v63  ;;  %v6028_v63 = vor.u32 %v7514_v48, %v6025_v52 }
 0x1b6   : > { %v2074_v26 = vadd.f32 %v2073_v3, %v2025_v5  ;;  %v6024_v5 = vor.u32 %v7516_v47, %v6023_v2  ;;  %v6052_v2 = vor.u32 %v7519_v39, %v6049_v17 }
 0x1b8   : > { %v8605_v13 = vadd.f32 %v2074_v26, %v8394_v11  ;;  %v6032_v26 = vor.u32 %v7517_v27, %v6031_v19  ;;  %v7621_v19 = vld [vmem:[%s9353_s1 + $0x490] sm:$0xff] }
 0x1b9   : > { %3350 = vmatpush.bf16.msra.mxu2 %v7621_v19  ;;  %v7527_v19 = vld [vmem:[%s7982_s3 + $0x16c] sm:$0xf] }
 0x1bb   : > { %v2026_v38 = vpop.f32.mrf.mxu2  ;;  %v1931_v30 = vpop.f32.mrf.mxu0 }
 0x1bc   : > { %v2075_v20 = vpop.f32.mrf.mxu3  ;;  %v2027_v11 = vadd.f32 %v2026_v38, %v1978_v8  ;;  %v1980_v54 = vpop.f32.mrf.mxu1 }
 0x1bd   : > { %v1981_v60 = vadd.f32 %v1980_v54, %v1931_v30  ;;  %v6041_v30 = vld [vmem:[%s7982_s3 + $0x130] sm:$0xf0] }
 0x1be   : > { %v2076_v36 = vadd.f32 %v2075_v20, %v2027_v11  ;;  %2595 = vmatmul.bf16.gmra.mxu0 %v6008_v24  ;;  %v6039_v24 = vld [vmem:[%s7982_s3 + $0x120] sm:$0xf]  ;;  %v7518_v11 = vld [vmem:[%s7982_s3 + $0x124] sm:$0xf] }
 0x1bf   : > { %2644 = vmatmul.bf16.gmra.mxu1 %v6012_v28  ;;  %v7520_v28 = vld [vmem:[%s7982_s3 + $0x12c] sm:$0xf0] }
 0x1c0   : > { %v8618_v37 = vadd.f32 %v2076_v36, %v8411_v40  ;;  %2693 = vmatmul.bf16.gmra.mxu2 %v6016_v33  ;;  %v6047_v33 = vld [vmem:[%s7982_s3 + $0x128] sm:$0xf]  ;;  %v7521_v36 = vld [vmem:[%s7982_s3 + $0x134] sm:$0xf0] }
 0x1c1   : > { %2742 = vmatmul.bf16.gmra.mxu3 %v6020_v35  ;;  %v7606_v35 = vld [vmem:[%s9353_s1 + $0x418] sm:$0xff] }
 0x1c2   : > { %3251 = vmatpush.bf16.msra.mxu0 %v7606_v35  ;;  %v7628_v35 = vld [vmem:[%s9353_s1 + $0x4c8] sm:$0xff] }
 0x1c3   : > { %v2029_v41 = vpop.f32.mrf.mxu2  ;;  %v1933_v29 = vpop.f32.mrf.mxu0  ;;  %3400 = vmatpush.bf16.msra.mxu3 %v7628_v35  ;;  %v6097_v35 = vld [vmem:[%s7982_s3 + $0x198] sm:$0xf0] }
 0x1c4   : > { %v2078_v40 = vpop.f32.mrf.mxu3  ;;  %v2030_v43 = vadd.f32 %v2029_v41, %v1981_v60  ;;  %v1982_v45 = vpop.f32.mrf.mxu1  ;;  %v7614_v60 = vld [vmem:[%s9353_s1 + $0x458] sm:$0xff] }
 0x1c5   : > { %v1983_v46 = vadd.f32 %v1982_v45, %v1933_v29  ;;  %3300 = vmatpush.bf16.msra.mxu1 %v7614_v60  ;;  %v6044_v29 = vor.u32 %v7518_v11, %v6041_v30 }
 0x1c6   : > { %v2079_v1 = vadd.f32 %v2078_v40, %v2030_v43  ;;  %v6040_v43 = vor.u32 %v7520_v28, %v6039_v24  ;;  %v6068_v24 = vor.u32 %v7523_v49, %v6065_v15 }
 0x1c8   : > { %v8631_v53 = vadd.f32 %v2079_v1, %v8420_v51  ;;  %v6048_v1 = vor.u32 %v7521_v36, %v6047_v33  ;;  %v7620_v33 = vld [vmem:[%s9353_s1 + $0x488] sm:$0xff] }
 0x1c9   : > { %3351 = vmatpush.bf16.msra.mxu2 %v7620_v33  ;;  %v7531_v33 = vld [vmem:[%s7982_s3 + $0x18c] sm:$0xf] }
 0x1cb   : > { %v2031_v50 = vpop.f32.mrf.mxu2  ;;  %v1936_v7 = vpop.f32.mrf.mxu0 }
 0x1cc   : > { %v2080_v3 = vpop.f32.mrf.mxu3  ;;  %v2032_v51 = vadd.f32 %v2031_v50, %v1983_v46  ;;  %v1985_v8 = vpop.f32.mrf.mxu1 }
 0x1cd   : > { %v1986_v31 = vadd.f32 %v1985_v8, %v1936_v7  ;;  %v6057_v7 = vld [vmem:[%s7982_s3 + $0x150] sm:$0xf0] }
 0x1ce   : > { %v2081_v10 = vadd.f32 %v2080_v3, %v2032_v51  ;;  %2600 = vmatmul.bf16.gmra.mxu0 %v6024_v5  ;;  %v6055_v5 = vld [vmem:[%s7982_s3 + $0x140] sm:$0xf]  ;;  %v7522_v51 = vld [vmem:[%s7982_s3 + $0x144] sm:$0xf] }
 0x1cf   : > { %2649 = vmatmul.bf16.gmra.mxu1 %v6028_v63  ;;  %v7524_v63 = vld [vmem:[%s7982_s3 + $0x14c] sm:$0xf0] }
 0x1d0   : > { %v8644_v12 = vadd.f32 %v2081_v10, %v8437_v14  ;;  %2698 = vmatmul.bf16.gmra.mxu2 %v6032_v26  ;;  %v6063_v26 = vld [vmem:[%s7982_s3 + $0x148] sm:$0xf]  ;;  %v7525_v10 = vld [vmem:[%s7982_s3 + $0x154] sm:$0xf0] }
 0x1d1   : > { %2747 = vmatmul.bf16.gmra.mxu3 %v6036_v9  ;;  %v7605_v9 = vld [vmem:[%s9353_s1 + $0x410] sm:$0xff] }
 0x1d2   : > { %3252 = vmatpush.bf16.msra.mxu0 %v7605_v9  ;;  %v7627_v9 = vld [vmem:[%s9353_s1 + $0x4c0] sm:$0xff] }
 0x1d3   : > { %v2034_v18 = vpop.f32.mrf.mxu2  ;;  %v1938_v22 = vpop.f32.mrf.mxu0  ;;  %3401 = vmatpush.bf16.msra.mxu3 %v7627_v9  ;;  %v6113_v9 = vld [vmem:[%s7982_s3 + $0x1b8] sm:$0xf0] }
 0x1d4   : > { %v2083_v14 = vpop.f32.mrf.mxu3  ;;  %v2035_v59 = vadd.f32 %v2034_v18, %v1986_v31  ;;  %v1987_v23 = vpop.f32.mrf.mxu1  ;;  %v7613_v31 = vld [vmem:[%s9353_s1 + $0x450] sm:$0xff] }
 0x1d5   : > { %v1988_v38 = vadd.f32 %v1987_v23, %v1938_v22  ;;  %3301 = vmatpush.bf16.msra.mxu1 %v7613_v31  ;;  %v6060_v22 = vor.u32 %v7522_v51, %v6057_v7 }
 0x1d6   : > { %v2084_v20 = vadd.f32 %v2083_v14, %v2035_v59  ;;  %v6056_v59 = vor.u32 %v7524_v63, %v6055_v5  ;;  %v6084_v5 = vor.u32 %v7527_v19, %v6081_v56 }
 0x1d8   : > { %v8657_v54 = vadd.f32 %v2084_v20, %v8446_v25  ;;  %v6064_v20 = vor.u32 %v7525_v10, %v6063_v26  ;;  %v7619_v26 = vld [vmem:[%s9353_s1 + $0x480] sm:$0xff] }
 0x1d9   : > { %3352 = vmatpush.bf16.msra.mxu2 %v7619_v26  ;;  %v7535_v26 = vld [vmem:[%s7982_s3 + $0x1ac] sm:$0xf] }
 0x1db   : > { %v2036_v41 = vpop.f32.mrf.mxu2  ;;  %v1941_v45 = vpop.f32.mrf.mxu0 }
 0x1dc   : > { %v2085_v40 = vpop.f32.mrf.mxu3  ;;  %v2037_v25 = vadd.f32 %v2036_v41, %v1988_v38  ;;  %v1990_v46 = vpop.f32.mrf.mxu1 }
 0x1dd   : > { %v1991_v47 = vadd.f32 %v1990_v46, %v1941_v45  ;;  %v6073_v45 = vld [vmem:[%s7982_s3 + $0x170] sm:$0xf0] }
 0x1de   : > { %v2086_v48 = vadd.f32 %v2085_v40, %v2037_v25  ;;  %2605 = vmatmul.bf16.gmra.mxu0 %v6040_v43  ;;  %v6071_v43 = vld [vmem:[%s7982_s3 + $0x160] sm:$0xf]  ;;  %v7526_v25 = vld [vmem:[%s7982_s3 + $0x164] sm:$0xf] }
 0x1df   : > { %2654 = vmatmul.bf16.gmra.mxu1 %v6044_v29  ;;  %v7528_v29 = vld [vmem:[%s7982_s3 + $0x16c] sm:$0xf0] }
 0x1e0   : > { %v8670_v52 = vadd.f32 %v2086_v48, %v8463_v55  ;;  %2703 = vmatmul.bf16.gmra.mxu2 %v6048_v1  ;;  %v6079_v1 = vld [vmem:[%s7982_s3 + $0x168] sm:$0xf]  ;;  %v7529_v48 = vld [vmem:[%s7982_s3 + $0x174] sm:$0xf0] }
 0x1e1   : > { %2752 = vmatmul.bf16.gmra.mxu3 %v6052_v2  ;;  %v7604_v2 = vld [vmem:[%s9353_s1 + $0x408] sm:$0xff] }
 0x1e2   : > { %3253 = vmatpush.bf16.msra.mxu0 %v7604_v2  ;;  %v7699_v2 = vld [vmem:[%s9353_s1 + $0x5f8] sm:$0xff] }
 0x1e3   : > { %v2039_v58 = vpop.f32.mrf.mxu2  ;;  %v1943_v62 = vpop.f32.mrf.mxu0  ;;  %4059 = vmatpush.bf16.msrb.mxu3 %v7699_v2  ;;  %v6355_v2 = vld [vmem:[%s7982_s3 + $0x118] sm:$0xf0] }
 0x1e4   : > { %v2088_v55 = vpop.f32.mrf.mxu3  ;;  %v2040_v27 = vadd.f32 %v2039_v58, %v1991_v47  ;;  %v1992_v0 = vpop.f32.mrf.mxu1  ;;  %v7612_v47 = vld [vmem:[%s9353_s1 + $0x448] sm:$0xff] }
 0x1e5   : > { %v1993_v50 = vadd.f32 %v1992_v0, %v1943_v62  ;;  %3302 = vmatpush.bf16.msra.mxu1 %v7612_v47  ;;  %v6076_v62 = vor.u32 %v7526_v25, %v6073_v45 }
 0x1e6   : > { %v2089_v3 = vadd.f32 %v2088_v55, %v2040_v27  ;;  %v6072_v27 = vor.u32 %v7528_v29, %v6071_v43  ;;  %v6100_v43 = vor.u32 %v7531_v33, %v6097_v35 }
 0x1e8   : > { %v8683_v8 = vadd.f32 %v2089_v3, %v8472_v4  ;;  %v6080_v3 = vor.u32 %v7529_v48, %v6079_v1  ;;  %v7691_v1 = vld [vmem:[%s9353_s1 + $0x5b8] sm:$0xff] }
 0x1e9   : > { %4010 = vmatpush.bf16.msrb.mxu2 %v7691_v1  ;;  %v7572_v1 = vld [vmem:[%s7982_s3 + $0x10c] sm:$0xf] }
 0x1eb   : > { %v2041_v18 = vpop.f32.mrf.mxu2  ;;  %v1946_v23 = vpop.f32.mrf.mxu0 }
 0x1ec   : > { %v2090_v14 = vpop.f32.mrf.mxu3  ;;  %v2042_v4 = vadd.f32 %v2041_v18, %v1993_v50  ;;  %v1995_v38 = vpop.f32.mrf.mxu1 }
 0x1ed   : > { %v1996_v28 = vadd.f32 %v1995_v38, %v1946_v23  ;;  %v6089_v23 = vld [vmem:[%s7982_s3 + $0x190] sm:$0xf0] }
 0x1ee   : > { %v2091_v11 = vadd.f32 %v2090_v14, %v2042_v4  ;;  %2610 = vmatmul.bf16.gmra.mxu0 %v6056_v59  ;;  %v6087_v59 = vld [vmem:[%s7982_s3 + $0x180] sm:$0xf]  ;;  %v7530_v4 = vld [vmem:[%s7982_s3 + $0x184] sm:$0xf] }
 0x1ef   : > { %2659 = vmatmul.bf16.gmra.mxu1 %v6060_v22  ;;  %v7532_v22 = vld [vmem:[%s7982_s3 + $0x18c] sm:$0xf0] }
 0x1f0   : > { %v8696_v30 = vadd.f32 %v2091_v11, %v8489_v32  ;;  %2708 = vmatmul.bf16.gmra.mxu2 %v6064_v20  ;;  %v6095_v20 = vld [vmem:[%s7982_s3 + $0x188] sm:$0xf]  ;;  %v7533_v11 = vld [vmem:[%s7982_s3 + $0x194] sm:$0xf0] }
 0x1f1   : > { %2757 = vmatmul.bf16.gmra.mxu3 %v6068_v24  ;;  %v7603_v24 = vld [vmem:[%s9353_s1 + $0x400] sm:$0xff] }
 0x1f2   : > { %3254 = vmatpush.bf16.msra.mxu0 %v7603_v24  ;;  %v7698_v24 = vld [vmem:[%s9353_s1 + $0x5f0] sm:$0xff] }
 0x1f3   : > { %v2044_v60 = vpop.f32.mrf.mxu2  ;;  %v1948_v39 = vpop.f32.mrf.mxu0  ;;  %4060 = vmatpush.bf16.msrb.mxu3 %v7698_v24  ;;  %v6371_v24 = vld [vmem:[%s7982_s3 + $0x138] sm:$0xf0] }
 0x1f4   : > { %v2093_v32 = vpop.f32.mrf.mxu3  ;;  %v2045_v36 = vadd.f32 %v2044_v60, %v1996_v28  ;;  %v1997_v17 = vpop.f32.mrf.mxu1  ;;  %v7611_v28 = vld [vmem:[%s9353_s1 + $0x440] sm:$0xff] }
 0x1f5   : > { %v1998_v41 = vadd.f32 %v1997_v17, %v1948_v39  ;;  %3303 = vmatpush.bf16.msra.mxu1 %v7611_v28  ;;  %v6092_v39 = vor.u32 %v7530_v4, %v6089_v23 }
 0x1f6   : > { %v2094_v40 = vadd.f32 %v2093_v32, %v2045_v36  ;;  %v6088_v36 = vor.u32 %v7532_v22, %v6087_v59  ;;  %v6116_v59 = vor.u32 %v7535_v26, %v6113_v9 }
 0x1f8   : > { %v8709_v46 = vadd.f32 %v2094_v40, %v8498_v42  ;;  %v6096_v40 = vor.u32 %v7533_v11, %v6095_v20  ;;  %v7690_v20 = vld [vmem:[%s9353_s1 + $0x5b0] sm:$0xff] }
 0x1f9   : > { %4011 = vmatpush.bf16.msrb.mxu2 %v7690_v20  ;;  %v7576_v20 = vld [vmem:[%s7982_s3 + $0x12c] sm:$0xf] }
 0x1fb   : > { %v2046_v58 = vpop.f32.mrf.mxu2  ;;  %v1951_v0 = vpop.f32.mrf.mxu0 }
 0x1fc   : > { %v2095_v55 = vpop.f32.mrf.mxu3  ;;  %v2047_v42 = vadd.f32 %v2046_v58, %v1998_v41  ;;  %v2000_v50 = vpop.f32.mrf.mxu1 }
 0x1fd   : > { %v2001_v63 = vadd.f32 %v2000_v50, %v1951_v0  ;;  %v6105_v0 = vld [vmem:[%s7982_s3 + $0x1b0] sm:$0xf0] }
 0x1fe   : > { %v2096_v51 = vadd.f32 %v2095_v55, %v2047_v42  ;;  %2615 = vmatmul.bf16.gmra.mxu0 %v6072_v27  ;;  %v6103_v27 = vld [vmem:[%s7982_s3 + $0x1a0] sm:$0xf]  ;;  %v7534_v42 = vld [vmem:[%s7982_s3 + $0x1a4] sm:$0xf] }
 0x1ff   : > { %2664 = vmatmul.bf16.gmra.mxu1 %v6076_v62  ;;  %v7536_v62 = vld [vmem:[%s7982_s3 + $0x1ac] sm:$0xf0] }
 0x200   : > { %v8722_v7 = vadd.f32 %v2096_v51, %v8515_v6  ;;  %2713 = vmatmul.bf16.gmra.mxu2 %v6080_v3  ;;  %v6111_v3 = vld [vmem:[%s7982_s3 + $0x1a8] sm:$0xf]  ;;  %v7537_v51 = vld [vmem:[%s7982_s3 + $0x1b4] sm:$0xf0] }
 0x201   : > { %2762 = vmatmul.bf16.gmra.mxu3 %v6084_v5  ;;  %v7675_v5 = vld [vmem:[%s9353_s1 + $0x538] sm:$0xff] }
 0x202   : > { %3912 = vmatpush.bf16.msrb.mxu0 %v7675_v5  ;;  %v7697_v5 = vld [vmem:[%s9353_s1 + $0x5e8] sm:$0xff] }
 0x203   : > { %v2049_v31 = vpop.f32.mrf.mxu2  ;;  %v1953_v49 = vpop.f32.mrf.mxu0  ;;  %4061 = vmatpush.bf16.msrb.mxu3 %v7697_v5  ;;  %v6387_v5 = vld [vmem:[%s7982_s3 + $0x158] sm:$0xf0] }
 0x204   : > { %v2098_v6 = vpop.f32.mrf.mxu3  ;;  %v2050_v10 = vadd.f32 %v2049_v31, %v2001_v63  ;;  %v2002_v15 = vpop.f32.mrf.mxu1  ;;  %v7683_v63 = vld [vmem:[%s9353_s1 + $0x578] sm:$0xff] }
 0x205   : > { %v2003_v18 = vadd.f32 %v2002_v15, %v1953_v49  ;;  %3961 = vmatpush.bf16.msrb.mxu1 %v7683_v63  ;;  %v6108_v49 = vor.u32 %v7534_v42, %v6105_v0 }
 0x206   : > { %v2099_v14 = vadd.f32 %v2098_v6, %v2050_v10  ;;  %v6104_v10 = vor.u32 %v7536_v62, %v6103_v27  ;;  %v6358_v27 = vor.u32 %v7572_v1, %v6355_v2 }
 0x208   : > { %v8735_v38 = vadd.f32 %v2099_v14, %v8524_v16  ;;  %v6112_v14 = vor.u32 %v7537_v51, %v6111_v3  ;;  %v7689_v3 = vld [vmem:[%s9353_s1 + $0x5a8] sm:$0xff] }
 0x209   : > { %4012 = vmatpush.bf16.msrb.mxu2 %v7689_v3  ;;  %v7580_v3 = vld [vmem:[%s7982_s3 + $0x14c] sm:$0xf] }
 0x20b   : > { %v2051_v60 = vpop.f32.mrf.mxu2  ;;  %v1956_v17 = vpop.f32.mrf.mxu0 }
 0x20c   : > { %v2100_v32 = vpop.f32.mrf.mxu3  ;;  %v2052_v16 = vadd.f32 %v2051_v60, %v2003_v18  ;;  %v2005_v41 = vpop.f32.mrf.mxu1 }
 0x20d   : > { %v2006_v29 = vadd.f32 %v2005_v41, %v1956_v17  ;;  %v6347_v17 = vld [vmem:[%s7982_s3 + $0x110] sm:$0xf0] }
 0x20e   : > { %v2101_v25 = vadd.f32 %v2100_v32, %v2052_v16  ;;  %2620 = vmatmul.bf16.gmra.mxu0 %v6088_v36  ;;  %v6345_v36 = vld [vmem:[%s7982_s3 + $0x100] sm:$0xf]  ;;  %v7571_v16 = vld [vmem:[%s7982_s3 + $0x104] sm:$0xf] }
 0x20f   : > { %2669 = vmatmul.bf16.gmra.mxu1 %v6092_v39  ;;  %v7573_v39 = vld [vmem:[%s7982_s3 + $0x10c] sm:$0xf0] }
 0x210   : > { %v8748_v45 = vadd.f32 %v2101_v25, %v8541_v44  ;;  %2718 = vmatmul.bf16.gmra.mxu2 %v6096_v40  ;;  %v6353_v40 = vld [vmem:[%s7982_s3 + $0x108] sm:$0xf]  ;;  %v7574_v25 = vld [vmem:[%s7982_s3 + $0x114] sm:$0xf0] }
 0x211   : > { %2767 = vmatmul.bf16.gmra.mxu3 %v6100_v43  ;;  %v7674_v43 = vld [vmem:[%s9353_s1 + $0x530] sm:$0xff] }
 0x212   : > { %3913 = vmatpush.bf16.msrb.mxu0 %v7674_v43  ;;  %v7696_v43 = vld [vmem:[%s9353_s1 + $0x5e0] sm:$0xff] }
 0x213   : > { %v2054_v47 = vpop.f32.mrf.mxu2  ;;  %v1958_v19 = vpop.f32.mrf.mxu0  ;;  %4062 = vmatpush.bf16.msrb.mxu3 %v7696_v43  ;;  %v6403_v43 = vld [vmem:[%s7982_s3 + $0x178] sm:$0xf0] }
 0x214   : > { %v2103_v44 = vpop.f32.mrf.mxu3  ;;  %v2055_v48 = vadd.f32 %v2054_v47, %v2006_v29  ;;  %v2007_v56 = vpop.f32.mrf.mxu1  ;;  %v7682_v29 = vld [vmem:[%s9353_s1 + $0x570] sm:$0xff] }
 0x215   : > { %v2008_v58 = vadd.f32 %v2007_v56, %v1958_v19  ;;  %3962 = vmatpush.bf16.msrb.mxu1 %v7682_v29  ;;  %v6350_v19 = vor.u32 %v7571_v16, %v6347_v17 }
 0x216   : > { %v2104_v55 = vadd.f32 %v2103_v44, %v2055_v48  ;;  %v6346_v48 = vor.u32 %v7573_v39, %v6345_v36  ;;  %v6374_v36 = vor.u32 %v7576_v20, %v6371_v24 }
 0x218   : > { %v8761_v50 = vadd.f32 %v2104_v55, %v8550_v57  ;;  %v6354_v55 = vor.u32 %v7574_v25, %v6353_v40  ;;  %v7688_v40 = vld [vmem:[%s9353_s1 + $0x5a0] sm:$0xff] }
 0x219   : > { %4013 = vmatpush.bf16.msrb.mxu2 %v7688_v40  ;;  %v7584_v40 = vld [vmem:[%s7982_s3 + $0x16c] sm:$0xf] }
 0x21b   : > { %v2056_v31 = vpop.f32.mrf.mxu2  ;;  %v1961_v15 = vpop.f32.mrf.mxu0 }
 0x21c   : > { %v2105_v6 = vpop.f32.mrf.mxu3  ;;  %v2057_v57 = vadd.f32 %v2056_v31, %v2008_v58  ;;  %v2010_v18 = vpop.f32.mrf.mxu1 }
 0x21d   : > { %v2011_v22 = vadd.f32 %v2010_v18, %v1961_v15  ;;  %v6363_v15 = vld [vmem:[%s7982_s3 + $0x130] sm:$0xf0] }
 0x21e   : > { %v2106_v4 = vadd.f32 %v2105_v6, %v2057_v57  ;;  %2625 = vmatmul.bf16.gmra.mxu0 %v6104_v10  ;;  %v6361_v10 = vld [vmem:[%s7982_s3 + $0x120] sm:$0xf]  ;;  %v7575_v57 = vld [vmem:[%s7982_s3 + $0x124] sm:$0xf] }
 0x21f   : > { %2674 = vmatmul.bf16.gmra.mxu1 %v6108_v49  ;;  %v7577_v49 = vld [vmem:[%s7982_s3 + $0x12c] sm:$0xf0] }
 0x220   : > { %v8774_v23 = vadd.f32 %v2106_v4, %v8567_v21  ;;  %2723 = vmatmul.bf16.gmra.mxu2 %v6112_v14  ;;  %v6369_v14 = vld [vmem:[%s7982_s3 + $0x128] sm:$0xf]  ;;  %v7578_v4 = vld [vmem:[%s7982_s3 + $0x134] sm:$0xf0] }
 0x221   : > { %2772 = vmatmul.bf16.gmra.mxu3 %v6116_v59  ;;  %v7673_v59 = vld [vmem:[%s9353_s1 + $0x528] sm:$0xff] }
 0x222   : > { %3914 = vmatpush.bf16.msrb.mxu0 %v7673_v59  ;;  %v7695_v59 = vld [vmem:[%s9353_s1 + $0x5d8] sm:$0xff] }
 0x223   : > { %v2059_v28 = vpop.f32.mrf.mxu2  ;;  %v1963_v33 = vpop.f32.mrf.mxu0  ;;  %4063 = vmatpush.bf16.msrb.mxu3 %v7695_v59  ;;  %v6419_v59 = vld [vmem:[%s7982_s3 + $0x198] sm:$0xf0] }
 0x224   : > { %v2108_v21 = vpop.f32.mrf.mxu3  ;;  %v2060_v11 = vadd.f32 %v2059_v28, %v2011_v22  ;;  %v2012_v35 = vpop.f32.mrf.mxu1  ;;  %v7681_v22 = vld [vmem:[%s9353_s1 + $0x568] sm:$0xff] }
 0x225   : > { %v2013_v60 = vadd.f32 %v2012_v35, %v1963_v33  ;;  %3963 = vmatpush.bf16.msrb.mxu1 %v7681_v22  ;;  %v6366_v33 = vor.u32 %v7575_v57, %v6363_v15 }
 0x226   : > { %v2109_v32 = vadd.f32 %v2108_v21, %v2060_v11  ;;  %v6362_v11 = vor.u32 %v7577_v49, %v6361_v10  ;;  %v6390_v10 = vor.u32 %v7580_v3, %v6387_v5 }
 0x228   : > { %v8787_v41 = vadd.f32 %v2109_v32, %v8576_v34  ;;  %v6370_v32 = vor.u32 %v7578_v4, %v6369_v14  ;;  %v7687_v14 = vld [vmem:[%s9353_s1 + $0x598] sm:$0xff] }
 0x229   : > { %4014 = vmatpush.bf16.msrb.mxu2 %v7687_v14  ;;  %v7588_v14 = vld [vmem:[%s7982_s3 + $0x18c] sm:$0xf] }
 0x22b   : > { %v2061_v47 = vpop.f32.mrf.mxu2  ;;  %v2591_v56 = vpop.f32.mrf.mxu0 }
 0x22c   : > { %v2110_v44 = vpop.f32.mrf.mxu3  ;;  %v2062_v34 = vadd.f32 %v2061_v47, %v2013_v60  ;;  %v2640_v58 = vpop.f32.mrf.mxu1 }
 0x22d   : > { %v2641_v62 = vadd.f32 %v2640_v58, %v2591_v56  ;;  %v6379_v56 = vld [vmem:[%s7982_s3 + $0x150] sm:$0xf0] }
 0x22e   : > { %v2111_v42 = vadd.f32 %v2110_v44, %v2062_v34  ;;  %3255 = vmatmul.bf16.vlgmr.msra.gmra.mxu0 %v6346_v48  ;;  %v6377_v48 = vld [vmem:[%s7982_s3 + $0x140] sm:$0xf]  ;;  %v7579_v34 = vld [vmem:[%s7982_s3 + $0x144] sm:$0xf] }
 0x22f   : > { %3304 = vmatmul.bf16.vlgmr.msra.gmra.mxu1 %v6350_v19  ;;  %v7581_v19 = vld [vmem:[%s7982_s3 + $0x14c] sm:$0xf0] }
 0x230   : > { %v8800_v0 = vadd.f32 %v2111_v42, %v8592_v61  ;;  %3353 = vmatmul.bf16.vlgmr.msra.gmra.mxu2 %v6354_v55  ;;  %v6385_v55 = vld [vmem:[%s7982_s3 + $0x148] sm:$0xf]  ;;  %v7582_v42 = vld [vmem:[%s7982_s3 + $0x154] sm:$0xf0] }
 0x231   : > { %3402 = vmatmul.bf16.vlgmr.msra.gmra.mxu3 %v6358_v27  ;;  %v7672_v27 = vld [vmem:[%s9353_s1 + $0x520] sm:$0xff] }
 0x232   : > { %3915 = vmatpush.bf16.msrb.mxu0 %v7672_v27  ;;  %v7694_v27 = vld [vmem:[%s9353_s1 + $0x5d0] sm:$0xff] }
 0x233   : > { %v2689_v63 = vpop.f32.mrf.mxu2  ;;  %v2593_v26 = vpop.f32.mrf.mxu0  ;;  %4064 = vmatpush.bf16.msrb.mxu3 %v7694_v27  ;;  %v6435_v27 = vld [vmem:[%s7982_s3 + $0x1b8] sm:$0xf0] }
 0x234   : > { %v2738_v61 = vpop.f32.mrf.mxu3  ;;  %v2690_v51 = vadd.f32 %v2689_v63, %v2641_v62  ;;  %v2642_v9 = vpop.f32.mrf.mxu1  ;;  %v7680_v62 = vld [vmem:[%s9353_s1 + $0x560] sm:$0xff] }
 0x235   : > { %v2643_v31 = vadd.f32 %v2642_v9, %v2593_v26  ;;  %3964 = vmatpush.bf16.msrb.mxu1 %v7680_v62  ;;  %v6382_v26 = vor.u32 %v7579_v34, %v6379_v56 }
 0x236   : > { %v2739_v6 = vadd.f32 %v2738_v61, %v2690_v51  ;;  %v6378_v51 = vor.u32 %v7581_v19, %v6377_v48  ;;  %v6406_v48 = vor.u32 %v7584_v40, %v6403_v43 }
 0x238   : > { %v8813_v18 = vadd.f32 %v2739_v6, %v8605_v13  ;;  %v6386_v6 = vor.u32 %v7582_v42, %v6385_v55  ;;  %v7686_v55 = vld [vmem:[%s9353_s1 + $0x590] sm:$0xff] }
 0x239   : > { %4015 = vmatpush.bf16.msrb.mxu2 %v7686_v55  ;;  %v7592_v55 = vld [vmem:[%s7982_s3 + $0x1ac] sm:$0xf] }
 0x23b   : > { %v2691_v28 = vpop.f32.mrf.mxu2  ;;  %v2596_v35 = vpop.f32.mrf.mxu0 }
 0x23c   : > { %v2740_v21 = vpop.f32.mrf.mxu3  ;;  %v2692_v13 = vadd.f32 %v2691_v28, %v2643_v31  ;;  %v2645_v60 = vpop.f32.mrf.mxu1 }
 0x23d   : > { %v2646_v39 = vadd.f32 %v2645_v60, %v2596_v35  ;;  %v6395_v35 = vld [vmem:[%s7982_s3 + $0x170] sm:$0xf0] }
 0x23e   : > { %v2741_v16 = vadd.f32 %v2740_v21, %v2692_v13  ;;  %3260 = vmatmul.bf16.gmra.mxu0 %v6362_v11  ;;  %v6393_v11 = vld [vmem:[%s7982_s3 + $0x160] sm:$0xf]  ;;  %v7583_v13 = vld [vmem:[%s7982_s3 + $0x164] sm:$0xf] }
 0x23f   : > { %3309 = vmatmul.bf16.gmra.mxu1 %v6366_v33  ;;  %v7585_v33 = vld [vmem:[%s7982_s3 + $0x16c] sm:$0xf0] }
 0x240   : > { %v8826_v17 = vadd.f32 %v2741_v16, %v8618_v37  ;;  %3358 = vmatmul.bf16.gmra.mxu2 %v6370_v32  ;;  %v6401_v32 = vld [vmem:[%s7982_s3 + $0x168] sm:$0xf]  ;;  %v7586_v16 = vld [vmem:[%s7982_s3 + $0x174] sm:$0xf0] }
 0x241   : > { %3407 = vmatmul.bf16.gmra.mxu3 %v6374_v36  ;;  %v7671_v36 = vld [vmem:[%s9353_s1 + $0x518] sm:$0xff] }
 0x242   : > { %3916 = vmatpush.bf16.msrb.mxu0 %v7671_v36  ;;  %v7693_v36 = vld [vmem:[%s9353_s1 + $0x5c8] sm:$0xff] }
 0x243   : > { %v2694_v29 = vpop.f32.mrf.mxu2  ;;  %v2598_v1 = vpop.f32.mrf.mxu0  ;;  %4065 = vmatpush.bf16.msrb.mxu3 %v7693_v36  ;;  %v6451_v36 = vld [vmem:[%s7982_s3 + $0x1d8] sm:$0xf0] }
 0x244   : > { %v2743_v37 = vpop.f32.mrf.mxu3  ;;  %v2695_v25 = vadd.f32 %v2694_v29, %v2646_v39  ;;  %v2647_v2 = vpop.f32.mrf.mxu1  ;;  %v7679_v39 = vld [vmem:[%s9353_s1 + $0x558] sm:$0xff] }
 0x245   : > { %v2648_v47 = vadd.f32 %v2647_v2, %v2598_v1  ;;  %3965 = vmatpush.bf16.msrb.mxu1 %v7679_v39  ;;  %v6398_v1 = vor.u32 %v7583_v13, %v6395_v35 }
 0x246   : > { %v2744_v44 = vadd.f32 %v2743_v37, %v2695_v25  ;;  %v6394_v25 = vor.u32 %v7585_v33, %v6393_v11  ;;  %v6422_v11 = vor.u32 %v7588_v14, %v6419_v59 }
 0x248   : > { %v8839_v58 = vadd.f32 %v2744_v44, %v8631_v53  ;;  %v6402_v44 = vor.u32 %v7586_v16, %v6401_v32  ;;  %v7685_v32 = vld [vmem:[%s9353_s1 + $0x588] sm:$0xff] }
 0x249   : > { %4016 = vmatpush.bf16.msrb.mxu2 %v7685_v32  ;;  %v7596_v32 = vld [vmem:[%s7982_s3 + $0x1cc] sm:$0xf] }
 0x24b   : > { %v2696_v63 = vpop.f32.mrf.mxu2  ;;  %v2601_v9 = vpop.f32.mrf.mxu0 }
 0x24c   : > { %v2745_v61 = vpop.f32.mrf.mxu3  ;;  %v2697_v53 = vadd.f32 %v2696_v63, %v2648_v47  ;;  %v2650_v31 = vpop.f32.mrf.mxu1 }
 0x24d   : > { %v2651_v49 = vadd.f32 %v2650_v31, %v2601_v9  ;;  %v6411_v9 = vld [vmem:[%s7982_s3 + $0x190] sm:$0xf0] }
 0x24e   : > { %v2746_v57 = vadd.f32 %v2745_v61, %v2697_v53  ;;  %3265 = vmatmul.bf16.gmra.mxu0 %v6378_v51  ;;  %v6409_v51 = vld [vmem:[%s7982_s3 + $0x180] sm:$0xf]  ;;  %v7587_v53 = vld [vmem:[%s7982_s3 + $0x184] sm:$0xf] }
 0x24f   : > { %3314 = vmatmul.bf16.gmra.mxu1 %v6382_v26  ;;  %v7589_v26 = vld [vmem:[%s7982_s3 + $0x18c] sm:$0xf0] }
 0x250   : > { %v8852_v15 = vadd.f32 %v2746_v57, %v8644_v12  ;;  %3363 = vmatmul.bf16.gmra.mxu2 %v6386_v6  ;;  %v6417_v6 = vld [vmem:[%s7982_s3 + $0x188] sm:$0xf]  ;;  %v7590_v57 = vld [vmem:[%s7982_s3 + $0x194] sm:$0xf0] }
 0x251   : > { %3412 = vmatmul.bf16.gmra.mxu3 %v6390_v10  ;;  %v7670_v10 = vld [vmem:[%s9353_s1 + $0x510] sm:$0xff] }
 0x252   : > { %3917 = vmatpush.bf16.msrb.mxu0 %v7670_v10  ;;  %v7692_v10 = vld [vmem:[%s9353_s1 + $0x5c0] sm:$0xff] }
 0x253   : > { %v2699_v22 = vpop.f32.mrf.mxu2  ;;  %v2603_v20 = vpop.f32.mrf.mxu0  ;;  %4066 = vmatpush.bf16.msrb.mxu3 %v7692_v10  ;;  %v6467_v10 = vld [vmem:[%s7982_s3 + $0x1f8] sm:$0xf0] }
 0x254   : > { %v2748_v12 = vpop.f32.mrf.mxu3  ;;  %v2700_v4 = vadd.f32 %v2699_v22, %v2651_v49  ;;  %v2652_v24 = vpop.f32.mrf.mxu1  ;;  %v7678_v49 = vld [vmem:[%s9353_s1 + $0x550] sm:$0xff] }
 0x255   : > { %v2653_v28 = vadd.f32 %v2652_v24, %v2603_v20  ;;  %3966 = vmatpush.bf16.msrb.mxu1 %v7678_v49  ;;  %v6414_v20 = vor.u32 %v7587_v53, %v6411_v9 }
 0x256   : > { %v2749_v21 = vadd.f32 %v2748_v12, %v2700_v4  ;;  %v6410_v4 = vor.u32 %v7589_v26, %v6409_v51  ;;  %v6438_v51 = vor.u32 %v7592_v55, %v6435_v27 }
 0x258   : > { %v8865_v60 = vadd.f32 %v2749_v21, %v8657_v54  ;;  %v6418_v21 = vor.u32 %v7590_v57, %v6417_v6  ;;  %v7684_v6 = vld [vmem:[%s9353_s1 + $0x580] sm:$0xff] }
 0x259   : > { %4017 = vmatpush.bf16.msrb.mxu2 %v7684_v6  ;;  %v7600_v6 = vld [vmem:[%s7982_s3 + $0x1ec] sm:$0xf] }
 0x25b   : > { %v2701_v29 = vpop.f32.mrf.mxu2  ;;  %v2606_v2 = vpop.f32.mrf.mxu0 }
 0x25c   : > { %v2750_v37 = vpop.f32.mrf.mxu3  ;;  %v2702_v54 = vadd.f32 %v2701_v29, %v2653_v28  ;;  %v2655_v47 = vpop.f32.mrf.mxu1 }
 0x25d   : > { %v2656_v19 = vadd.f32 %v2655_v47, %v2606_v2  ;;  %v6427_v2 = vld [vmem:[%s7982_s3 + $0x1b0] sm:$0xf0] }
 0x25e   : > { %v2751_v34 = vadd.f32 %v2750_v37, %v2702_v54  ;;  %3270 = vmatmul.bf16.gmra.mxu0 %v6394_v25  ;;  %v6425_v25 = vld [vmem:[%s7982_s3 + $0x1a0] sm:$0xf]  ;;  %v7591_v54 = vld [vmem:[%s7982_s3 + $0x1a4] sm:$0xf] }
 0x25f   : > { %3319 = vmatmul.bf16.gmra.mxu1 %v6398_v1  ;;  %v7593_v1 = vld [vmem:[%s7982_s3 + $0x1ac] sm:$0xf0] }
 0x260   : > { %v8878_v56 = vadd.f32 %v2751_v34, %v8670_v52  ;;  %3368 = vmatmul.bf16.gmra.mxu2 %v6402_v44  ;;  %v6433_v44 = vld [vmem:[%s7982_s3 + $0x1a8] sm:$0xf]  ;;  %v7594_v34 = vld [vmem:[%s7982_s3 + $0x1b4] sm:$0xf0] }
 0x261   : > { %3417 = vmatmul.bf16.gmra.mxu3 %v6406_v48  ;;  %v7669_v48 = vld [vmem:[%s9353_s1 + $0x508] sm:$0xff] }
 0x262   : > { %3918 = vmatpush.bf16.msrb.mxu0 %v7669_v48  ;;  %v7764_v48 = vld [vmem:[%s9353_s1 + $0x6f8] sm:$0xff] }
 0x263   : > { %v2704_v62 = vpop.f32.mrf.mxu2  ;;  %v2608_v3 = vpop.f32.mrf.mxu0  ;;  %4724 = vmatpush.bf16.msra.mxu3 %v7764_v48  ;;  %v6709_v48 = vld [vmem:[%s7982_s3 + $0x158] sm:$0xf0] }
 0x264   : > { %v2753_v52 = vpop.f32.mrf.mxu3  ;;  %v2705_v42 = vadd.f32 %v2704_v62, %v2656_v19  ;;  %v2657_v5 = vpop.f32.mrf.mxu1  ;;  %v7677_v19 = vld [vmem:[%s9353_s1 + $0x548] sm:$0xff] }
 0x265   : > { %v2658_v63 = vadd.f32 %v2657_v5, %v2608_v3  ;;  %3967 = vmatpush.bf16.msrb.mxu1 %v7677_v19  ;;  %v6430_v3 = vor.u32 %v7591_v54, %v6427_v2 }
 0x266   : > { %v2754_v61 = vadd.f32 %v2753_v52, %v2705_v42  ;;  %v6426_v42 = vor.u32 %v7593_v1, %v6425_v25  ;;  %v6454_v25 = vor.u32 %v7596_v32, %v6451_v36 }
 0x268   : > { %v8891_v31 = vadd.f32 %v2754_v61, %v8683_v8  ;;  %v6434_v61 = vor.u32 %v7594_v34, %v6433_v44  ;;  %v7756_v44 = vld [vmem:[%s9353_s1 + $0x6b8] sm:$0xff] }
 0x269   : > { %4675 = vmatpush.bf16.msra.mxu2 %v7756_v44  ;;  %v7637_v44 = vld [vmem:[%s7982_s3 + $0x14c] sm:$0xf] }
 0x26b   : > { %v2706_v22 = vpop.f32.mrf.mxu2  ;;  %v2611_v24 = vpop.f32.mrf.mxu0 }
 0x26c   : > { %v2755_v12 = vpop.f32.mrf.mxu3  ;;  %v2707_v8 = vadd.f32 %v2706_v22, %v2658_v63  ;;  %v2660_v28 = vpop.f32.mrf.mxu1 }
 0x26d   : > { %v2661_v33 = vadd.f32 %v2660_v28, %v2611_v24  ;;  %v6443_v24 = vld [vmem:[%s7982_s3 + $0x1d0] sm:$0xf0] }
 0x26e   : > { %v2756_v13 = vadd.f32 %v2755_v12, %v2707_v8  ;;  %3275 = vmatmul.bf16.gmra.mxu0 %v6410_v4  ;;  %v6441_v4 = vld [vmem:[%s7982_s3 + $0x1c0] sm:$0xf]  ;;  %v7595_v8 = vld [vmem:[%s7982_s3 + $0x1c4] sm:$0xf] }
 0x26f   : > { %3324 = vmatmul.bf16.gmra.mxu1 %v6414_v20  ;;  %v7597_v20 = vld [vmem:[%s7982_s3 + $0x1cc] sm:$0xf0] }
 0x270   : > { %v8904_v35 = vadd.f32 %v2756_v13, %v8696_v30  ;;  %3373 = vmatmul.bf16.gmra.mxu2 %v6418_v21  ;;  %v6449_v21 = vld [vmem:[%s7982_s3 + $0x1c8] sm:$0xf]  ;;  %v7598_v13 = vld [vmem:[%s7982_s3 + $0x1d4] sm:$0xf0] }
 0x271   : > { %3422 = vmatmul.bf16.gmra.mxu3 %v6422_v11  ;;  %v7668_v11 = vld [vmem:[%s9353_s1 + $0x500] sm:$0xff] }
 0x272   : > { %3919 = vmatpush.bf16.msrb.mxu0 %v7668_v11  ;;  %v7763_v11 = vld [vmem:[%s9353_s1 + $0x6f0] sm:$0xff] }
 0x273   : > { %v2709_v39 = vpop.f32.mrf.mxu2  ;;  %v2613_v40 = vpop.f32.mrf.mxu0  ;;  %4725 = vmatpush.bf16.msra.mxu3 %v7763_v11  ;;  %v6725_v11 = vld [vmem:[%s7982_s3 + $0x178] sm:$0xf0] }
 0x274   : > { %v2758_v30 = vpop.f32.mrf.mxu3  ;;  %v2710_v16 = vadd.f32 %v2709_v39, %v2661_v33  ;;  %v2662_v43 = vpop.f32.mrf.mxu1  ;;  %v7676_v33 = vld [vmem:[%s9353_s1 + $0x540] sm:$0xff] }
 0x275   : > { %v2663_v29 = vadd.f32 %v2662_v43, %v2613_v40  ;;  %3968 = vmatpush.bf16.msrb.mxu1 %v7676_v33  ;;  %v6446_v40 = vor.u32 %v7595_v8, %v6443_v24 }
 0x276   : > { %v2759_v37 = vadd.f32 %v2758_v30, %v2710_v16  ;;  %v6442_v16 = vor.u32 %v7597_v20, %v6441_v4  ;;  %v6470_v4 = vor.u32 %v7600_v6, %v6467_v10 }
 0x278   : > { %v8917_v47 = vadd.f32 %v2759_v37, %v8709_v46  ;;  %v6450_v37 = vor.u32 %v7598_v13, %v6449_v21  ;;  %v7755_v21 = vld [vmem:[%s9353_s1 + $0x6b0] sm:$0xff] }
 0x279   : > { %4676 = vmatpush.bf16.msra.mxu2 %v7755_v21  ;;  %v7641_v21 = vld [vmem:[%s7982_s3 + $0x16c] sm:$0xf] }
 0x27b   : > { %v2711_v62 = vpop.f32.mrf.mxu2  ;;  %v2616_v5 = vpop.f32.mrf.mxu0 }
 0x27c   : > { %v2760_v52 = vpop.f32.mrf.mxu3  ;;  %v2712_v46 = vadd.f32 %v2711_v62, %v2663_v29  ;;  %v2665_v63 = vpop.f32.mrf.mxu1 }
 0x27d   : > { %v2666_v26 = vadd.f32 %v2665_v63, %v2616_v5  ;;  %v6459_v5 = vld [vmem:[%s7982_s3 + $0x1f0] sm:$0xf0] }
 0x27e   : > { %v2761_v53 = vadd.f32 %v2760_v52, %v2712_v46  ;;  %3280 = vmatmul.bf16.gmra.mxu0 %v6426_v42  ;;  %v6457_v42 = vld [vmem:[%s7982_s3 + $0x1e0] sm:$0xf]  ;;  %v7599_v46 = vld [vmem:[%s7982_s3 + $0x1e4] sm:$0xf] }
 0x27f   : > { %3329 = vmatmul.bf16.gmra.mxu1 %v6430_v3  ;;  %v7601_v3 = vld [vmem:[%s7982_s3 + $0x1ec] sm:$0xf0] }
 0x280   : > { %v8930_v9 = vadd.f32 %v2761_v53, %v8722_v7  ;;  %3378 = vmatmul.bf16.gmra.mxu2 %v6434_v61  ;;  %v6465_v61 = vld [vmem:[%s7982_s3 + $0x1e8] sm:$0xf]  ;;  %v7602_v53 = vld [vmem:[%s7982_s3 + $0x1f4] sm:$0xf0] }
 0x281   : > { %3427 = vmatmul.bf16.gmra.mxu3 %v6438_v51  ;;  %v7740_v51 = vld [vmem:[%s9353_s1 + $0x638] sm:$0xff] }
 0x282   : > { %4577 = vmatpush.bf16.msra.mxu0 %v7740_v51  ;;  %v7762_v51 = vld [vmem:[%s9353_s1 + $0x6e8] sm:$0xff] }
 0x283   : > { %v2714_v49 = vpop.f32.mrf.mxu2  ;;  %v2618_v14 = vpop.f32.mrf.mxu0  ;;  %4726 = vmatpush.bf16.msra.mxu3 %v7762_v51  ;;  %v6741_v51 = vld [vmem:[%s7982_s3 + $0x198] sm:$0xf0] }
 0x284   : > { %v2763_v7 = vpop.f32.mrf.mxu3  ;;  %v2715_v57 = vadd.f32 %v2714_v49, %v2666_v26  ;;  %v2667_v59 = vpop.f32.mrf.mxu1  ;;  %v7748_v26 = vld [vmem:[%s9353_s1 + $0x678] sm:$0xff] }
 0x285   : > { %v2668_v22 = vadd.f32 %v2667_v59, %v2618_v14  ;;  %4626 = vmatpush.bf16.msra.mxu1 %v7748_v26  ;;  %v6462_v14 = vor.u32 %v7599_v46, %v6459_v5 }
 0x286   : > { %v2764_v12 = vadd.f32 %v2763_v7, %v2715_v57  ;;  %v6458_v57 = vor.u32 %v7601_v3, %v6457_v42  ;;  %v6712_v42 = vor.u32 %v7637_v44, %v6709_v48 }
 0x288   : > { %v8943_v28 = vadd.f32 %v2764_v12, %v8735_v38  ;;  %v6466_v12 = vor.u32 %v7602_v53, %v6465_v61  ;;  %v7754_v61 = vld [vmem:[%s9353_s1 + $0x6a8] sm:$0xff] }
 0x289   : > { %4677 = vmatpush.bf16.msra.mxu2 %v7754_v61  ;;  %v7645_v61 = vld [vmem:[%s7982_s3 + $0x18c] sm:$0xf] }
 0x28b   : > { %v2716_v39 = vpop.f32.mrf.mxu2  ;;  %v2621_v43 = vpop.f32.mrf.mxu0 }
 0x28c   : > { %v2765_v30 = vpop.f32.mrf.mxu3  ;;  %v2717_v38 = vadd.f32 %v2716_v39, %v2668_v22  ;;  %v2670_v29 = vpop.f32.mrf.mxu1 }
 0x28d   : > { %v2671_v1 = vadd.f32 %v2670_v29, %v2621_v43  ;;  %v6701_v43 = vld [vmem:[%s7982_s3 + $0x150] sm:$0xf0] }
 0x28e   : > { %v2766_v54 = vadd.f32 %v2765_v30, %v2717_v38  ;;  %3285 = vmatmul.bf16.gmra.mxu0 %v6442_v16  ;;  %v6699_v16 = vld [vmem:[%s7982_s3 + $0x140] sm:$0xf]  ;;  %v7636_v38 = vld [vmem:[%s7982_s3 + $0x144] sm:$0xf] }
 0x28f   : > { %3334 = vmatmul.bf16.gmra.mxu1 %v6446_v40  ;;  %v7638_v40 = vld [vmem:[%s7982_s3 + $0x14c] sm:$0xf0] }
 0x290   : > { %v8956_v2 = vadd.f32 %v2766_v54, %v8748_v45  ;;  %3383 = vmatmul.bf16.gmra.mxu2 %v6450_v37  ;;  %v6707_v37 = vld [vmem:[%s7982_s3 + $0x148] sm:$0xf]  ;;  %v7639_v54 = vld [vmem:[%s7982_s3 + $0x154] sm:$0xf0] }
 0x291   : > { %3432 = vmatmul.bf16.gmra.mxu3 %v6454_v25  ;;  %v7739_v25 = vld [vmem:[%s9353_s1 + $0x630] sm:$0xff] }
 0x292   : > { %4578 = vmatpush.bf16.msra.mxu0 %v7739_v25  ;;  %v7761_v25 = vld [vmem:[%s9353_s1 + $0x6e0] sm:$0xff] }
 0x293   : > { %v2719_v19 = vpop.f32.mrf.mxu2  ;;  %v2623_v55 = vpop.f32.mrf.mxu0  ;;  %4727 = vmatpush.bf16.msra.mxu3 %v7761_v25  ;;  %v6757_v25 = vld [vmem:[%s7982_s3 + $0x1b8] sm:$0xf0] }
 0x294   : > { %v2768_v45 = vpop.f32.mrf.mxu3  ;;  %v2720_v34 = vadd.f32 %v2719_v19, %v2671_v1  ;;  %v2672_v27 = vpop.f32.mrf.mxu1  ;;  %v7747_v1 = vld [vmem:[%s9353_s1 + $0x670] sm:$0xff] }
 0x295   : > { %v2673_v62 = vadd.f32 %v2672_v27, %v2623_v55  ;;  %4627 = vmatpush.bf16.msra.mxu1 %v7747_v1  ;;  %v6704_v55 = vor.u32 %v7636_v38, %v6701_v43 }
 0x296   : > { %v2769_v52 = vadd.f32 %v2768_v45, %v2720_v34  ;;  %v6700_v34 = vor.u32 %v7638_v40, %v6699_v16  ;;  %v6728_v16 = vor.u32 %v7641_v21, %v6725_v11 }
 0x298   : > { %v8969_v63 = vadd.f32 %v2769_v52, %v8761_v50  ;;  %v6708_v52 = vor.u32 %v7639_v54, %v6707_v37  ;;  %v7753_v37 = vld [vmem:[%s9353_s1 + $0x6a0] sm:$0xff] }
 0x299   : > { %4678 = vmatpush.bf16.msra.mxu2 %v7753_v37  ;;  %v7649_v37 = vld [vmem:[%s7982_s3 + $0x1ac] sm:$0xf] }
 0x29b   : > { %v2721_v49 = vpop.f32.mrf.mxu2  ;;  %v2626_v59 = vpop.f32.mrf.mxu0 }
 0x29c   : > { %v2770_v7 = vpop.f32.mrf.mxu3  ;;  %v2722_v50 = vadd.f32 %v2721_v49, %v2673_v62  ;;  %v2675_v22 = vpop.f32.mrf.mxu1 }
 0x29d   : > { %v2676_v20 = vadd.f32 %v2675_v22, %v2626_v59  ;;  %v6717_v59 = vld [vmem:[%s7982_s3 + $0x170] sm:$0xf0] }
 0x29e   : > { %v2771_v8 = vadd.f32 %v2770_v7, %v2722_v50  ;;  %3290 = vmatmul.bf16.gmra.mxu0 %v6458_v57  ;;  %v6715_v57 = vld [vmem:[%s7982_s3 + $0x160] sm:$0xf]  ;;  %v7640_v50 = vld [vmem:[%s7982_s3 + $0x164] sm:$0xf] }
 0x29f   : > { %3339 = vmatmul.bf16.gmra.mxu1 %v6462_v14  ;;  %v7642_v14 = vld [vmem:[%s7982_s3 + $0x16c] sm:$0xf0] }
 0x2a0   : > { %v8982_v24 = vadd.f32 %v2771_v8, %v8774_v23  ;;  %3388 = vmatmul.bf16.gmra.mxu2 %v6466_v12  ;;  %v6723_v12 = vld [vmem:[%s7982_s3 + $0x168] sm:$0xf]  ;;  %v7643_v8 = vld [vmem:[%s7982_s3 + $0x174] sm:$0xf0] }
 0x2a1   : > { %3437 = vmatmul.bf16.gmra.mxu3 %v6470_v4  ;;  %v7738_v4 = vld [vmem:[%s9353_s1 + $0x628] sm:$0xff] }
 0x2a2   : > { %4579 = vmatpush.bf16.msra.mxu0 %v7738_v4  ;;  %v7760_v4 = vld [vmem:[%s9353_s1 + $0x6d8] sm:$0xff] }
 0x2a3   : > { %v2724_v33 = vpop.f32.mrf.mxu2  ;;  %v2628_v32 = vpop.f32.mrf.mxu0  ;;  %4728 = vmatpush.bf16.msra.mxu3 %v7760_v4  ;;  %v6773_v4 = vld [vmem:[%s7982_s3 + $0x1d8] sm:$0xf0] }
 0x2a4   : > { %v2773_v23 = vpop.f32.mrf.mxu3  ;;  %v2725_v13 = vadd.f32 %v2724_v33, %v2676_v20  ;;  %v2677_v36 = vpop.f32.mrf.mxu1  ;;  %v7746_v20 = vld [vmem:[%s9353_s1 + $0x668] sm:$0xff] }
 0x2a5   : > { %v2678_v39 = vadd.f32 %v2677_v36, %v2628_v32  ;;  %4628 = vmatpush.bf16.msra.mxu1 %v7746_v20  ;;  %v6720_v32 = vor.u32 %v7640_v50, %v6717_v59 }
 0x2a6   : > { %v2774_v30 = vadd.f32 %v2773_v23, %v2725_v13  ;;  %v6716_v13 = vor.u32 %v7642_v14, %v6715_v57  ;;  %v6744_v57 = vor.u32 %v7645_v61, %v6741_v51 }
 0x2a8   : > { %v8995_v29 = vadd.f32 %v2774_v30, %v8787_v41  ;;  %v6724_v30 = vor.u32 %v7643_v8, %v6723_v12  ;;  %v7752_v12 = vld [vmem:[%s9353_s1 + $0x698] sm:$0xff] }
 0x2a9   : > { %4679 = vmatpush.bf16.msra.mxu2 %v7752_v12  ;;  %v7653_v12 = vld [vmem:[%s7982_s3 + $0x1cc] sm:$0xf] }
 0x2ab   : > { %v2726_v19 = vpop.f32.mrf.mxu2  ;;  %v3256_v27 = vpop.f32.mrf.mxu0 }
 0x2ac   : > { %v2775_v45 = vpop.f32.mrf.mxu3  ;;  %v2727_v41 = vadd.f32 %v2726_v19, %v2678_v39  ;;  %v3305_v62 = vpop.f32.mrf.mxu1 }
 0x2ad   : > { %v3306_v3 = vadd.f32 %v3305_v62, %v3256_v27  ;;  %v6733_v27 = vld [vmem:[%s7982_s3 + $0x190] sm:$0xf0] }
 0x2ae   : > { %v2776_v46 = vadd.f32 %v2775_v45, %v2727_v41  ;;  %3920 = vmatmul.bf16.vlgmr.msrb.gmra.mxu0 %v6700_v34  ;;  %v6731_v34 = vld [vmem:[%s7982_s3 + $0x180] sm:$0xf]  ;;  %v7644_v41 = vld [vmem:[%s7982_s3 + $0x184] sm:$0xf] }
 0x2af   : > { %3969 = vmatmul.bf16.vlgmr.msrb.gmra.mxu1 %v6704_v55  ;;  %v7646_v55 = vld [vmem:[%s7982_s3 + $0x18c] sm:$0xf0] }
 0x2b0   : > { %v9008_v5 = vadd.f32 %v2776_v46, %v8800_v0  ;;  %4018 = vmatmul.bf16.vlgmr.msrb.gmra.mxu2 %v6708_v52  ;;  %v6739_v52 = vld [vmem:[%s7982_s3 + $0x188] sm:$0xf]  ;;  %v7647_v46 = vld [vmem:[%s7982_s3 + $0x194] sm:$0xf0] }
 0x2b1   : > { %4067 = vmatmul.bf16.vlgmr.msrb.gmra.mxu3 %v6712_v42  ;;  %v7737_v42 = vld [vmem:[%s9353_s1 + $0x620] sm:$0xff] }
 0x2b2   : > { %4580 = vmatpush.bf16.msra.mxu0 %v7737_v42  ;;  %v7759_v42 = vld [vmem:[%s9353_s1 + $0x6d0] sm:$0xff] }
 0x2b3   : > { %v3354_v26 = vpop.f32.mrf.mxu2  ;;  %v3258_v6 = vpop.f32.mrf.mxu0  ;;  %4729 = vmatpush.bf16.msra.mxu3 %v7759_v42  ;;  %v6789_v42 = vld [vmem:[%s7982_s3 + $0x1f8] sm:$0xf0] }
 0x2b4   : > { %v3403_v0 = vpop.f32.mrf.mxu3  ;;  %v3355_v53 = vadd.f32 %v3354_v26, %v3306_v3  ;;  %v3307_v10 = vpop.f32.mrf.mxu1  ;;  %v7745_v3 = vld [vmem:[%s9353_s1 + $0x660] sm:$0xff] }
 0x2b5   : > { %v3308_v49 = vadd.f32 %v3307_v10, %v3258_v6  ;;  %4629 = vmatpush.bf16.msra.mxu1 %v7745_v3  ;;  %v6736_v6 = vor.u32 %v7644_v41, %v6733_v27 }
 0x2b6   : > { %v3404_v7 = vadd.f32 %v3403_v0, %v3355_v53  ;;  %v6732_v53 = vor.u32 %v7646_v55, %v6731_v34  ;;  %v6760_v34 = vor.u32 %v7649_v37, %v6757_v25 }
 0x2b8   : > { %v9021_v22 = vadd.f32 %v3404_v7, %v8813_v18  ;;  %v6740_v7 = vor.u32 %v7647_v46, %v6739_v52  ;;  %v7751_v52 = vld [vmem:[%s9353_s1 + $0x690] sm:$0xff] }
 0x2b9   : > { %4680 = vmatpush.bf16.msra.mxu2 %v7751_v52  ;;  %v7657_v52 = vld [vmem:[%s7982_s3 + $0x1ec] sm:$0xf] }
 0x2bb   : > { %v3356_v33 = vpop.f32.mrf.mxu2  ;;  %v3261_v36 = vpop.f32.mrf.mxu0 }
 0x2bc   : > { %v3405_v23 = vpop.f32.mrf.mxu3  ;;  %v3357_v18 = vadd.f32 %v3356_v33, %v3308_v49  ;;  %v3310_v39 = vpop.f32.mrf.mxu1 }
 0x2bd   : > { %v3311_v40 = vadd.f32 %v3310_v39, %v3261_v36  ;;  %v6749_v36 = vld [vmem:[%s7982_s3 + $0x1b0] sm:$0xf0] }
 0x2be   : > { %v3406_v38 = vadd.f32 %v3405_v23, %v3357_v18  ;;  %3925 = vmatmul.bf16.gmra.mxu0 %v6716_v13  ;;  %v6747_v13 = vld [vmem:[%s7982_s3 + $0x1a0] sm:$0xf]  ;;  %v7648_v18 = vld [vmem:[%s7982_s3 + $0x1a4] sm:$0xf] }
 0x2bf   : > { %3974 = vmatmul.bf16.gmra.mxu1 %v6720_v32  ;;  %v7650_v32 = vld [vmem:[%s7982_s3 + $0x1ac] sm:$0xf0] }
 0x2c0   : > { %v9034_v43 = vadd.f32 %v3406_v38, %v8826_v17  ;;  %4023 = vmatmul.bf16.gmra.mxu2 %v6724_v30  ;;  %v6755_v30 = vld [vmem:[%s7982_s3 + $0x1a8] sm:$0xf]  ;;  %v7651_v38 = vld [vmem:[%s7982_s3 + $0x1b4] sm:$0xf0] }
 0x2c1   : > { %4072 = vmatmul.bf16.gmra.mxu3 %v6728_v16  ;;  %v7736_v16 = vld [vmem:[%s9353_s1 + $0x618] sm:$0xff] }
 0x2c2   : > { %4581 = vmatpush.bf16.msra.mxu0 %v7736_v16  ;;  %v7758_v16 = vld [vmem:[%s9353_s1 + $0x6c8] sm:$0xff] }
 0x2c3   : > { %v3359_v1 = vpop.f32.mrf.mxu2  ;;  %v3263_v44 = vpop.f32.mrf.mxu0  ;;  %4730 = vmatpush.bf16.msra.mxu3 %v7758_v16  ;;  %v6805_v16 = vld [vmem:[%s7982_s3 + $0x218] sm:$0xf0] }
 0x2c4   : > { %v3408_v17 = vpop.f32.mrf.mxu3  ;;  %v3360_v54 = vadd.f32 %v3359_v1, %v3311_v40  ;;  %v3312_v48 = vpop.f32.mrf.mxu1  ;;  %v7744_v40 = vld [vmem:[%s9353_s1 + $0x658] sm:$0xff] }
 0x2c5   : > { %v3313_v19 = vadd.f32 %v3312_v48, %v3263_v44  ;;  %4630 = vmatpush.bf16.msra.mxu1 %v7744_v40  ;;  %v6752_v44 = vor.u32 %v7648_v18, %v6749_v36 }
 0x2c6   : > { %v3409_v45 = vadd.f32 %v3408_v17, %v3360_v54  ;;  %v6748_v54 = vor.u32 %v7650_v32, %v6747_v13  ;;  %v6776_v13 = vor.u32 %v7653_v12, %v6773_v4 }
 0x2c8   : > { %v9047_v62 = vadd.f32 %v3409_v45, %v8839_v58  ;;  %v6756_v45 = vor.u32 %v7651_v38, %v6755_v30  ;;  %v7750_v30 = vld [vmem:[%s9353_s1 + $0x688] sm:$0xff] }
 0x2c9   : > { %4681 = vmatpush.bf16.msra.mxu2 %v7750_v30  ;;  %v7661_v30 = vld [vmem:[%s7982_s3 + $0x20c] sm:$0xf] }
 0x2cb   : > { %v3361_v26 = vpop.f32.mrf.mxu2  ;;  %v3266_v10 = vpop.f32.mrf.mxu0 }
 0x2cc   : > { %v3410_v0 = vpop.f32.mrf.mxu3  ;;  %v3362_v58 = vadd.f32 %v3361_v26, %v3313_v19  ;;  %v3315_v49 = vpop.f32.mrf.mxu1 }
 0x2cd   : > { %v3316_v14 = vadd.f32 %v3315_v49, %v3266_v10  ;;  %v6765_v10 = vld [vmem:[%s7982_s3 + $0x1d0] sm:$0xf0] }
 0x2ce   : > { %v3411_v50 = vadd.f32 %v3410_v0, %v3362_v58  ;;  %3930 = vmatmul.bf16.gmra.mxu0 %v6732_v53  ;;  %v6763_v53 = vld [vmem:[%s7982_s3 + $0x1c0] sm:$0xf]  ;;  %v7652_v58 = vld [vmem:[%s7982_s3 + $0x1c4] sm:$0xf] }
 0x2cf   : > { %3979 = vmatmul.bf16.gmra.mxu1 %v6736_v6  ;;  %v7654_v6 = vld [vmem:[%s7982_s3 + $0x1cc] sm:$0xf0] }
 0x2d0   : > { %v9060_v59 = vadd.f32 %v3411_v50, %v8852_v15  ;;  %4028 = vmatmul.bf16.gmra.mxu2 %v6740_v7  ;;  %v6771_v7 = vld [vmem:[%s7982_s3 + $0x1c8] sm:$0xf]  ;;  %v7655_v50 = vld [vmem:[%s7982_s3 + $0x1d4] sm:$0xf0] }
 0x2d1   : > { %4077 = vmatmul.bf16.gmra.mxu3 %v6744_v57  ;;  %v7735_v57 = vld [vmem:[%s9353_s1 + $0x610] sm:$0xff] }
 0x2d2   : > { %4582 = vmatpush.bf16.msra.mxu0 %v7735_v57  ;;  %v7757_v57 = vld [vmem:[%s9353_s1 + $0x6c0] sm:$0xff] }
 0x2d3   : > { %v3364_v20 = vpop.f32.mrf.mxu2  ;;  %v3268_v21 = vpop.f32.mrf.mxu0  ;;  %4731 = vmatpush.bf16.msra.mxu3 %v7757_v57 }
 0x2d4   : > { %v3413_v15 = vpop.f32.mrf.mxu3  ;;  %v3365_v8 = vadd.f32 %v3364_v20, %v3316_v14  ;;  %v3317_v11 = vpop.f32.mrf.mxu1  ;;  %v7743_v14 = vld [vmem:[%s9353_s1 + $0x650] sm:$0xff] }
 0x2d5   : > { %v3318_v33 = vadd.f32 %v3317_v11, %v3268_v21  ;;  %4631 = vmatpush.bf16.msra.mxu1 %v7743_v14  ;;  %v6768_v21 = vor.u32 %v7652_v58, %v6765_v10 }
 0x2d6   : > { %v3414_v23 = vadd.f32 %v3413_v15, %v3365_v8  ;;  %v6764_v8 = vor.u32 %v7654_v6, %v6763_v53  ;;  %v6792_v53 = vor.u32 %v7657_v52, %v6789_v42 }
 0x2d8   : > { %v9073_v39 = vadd.f32 %v3414_v23, %v8865_v60  ;;  %v6772_v23 = vor.u32 %v7655_v50, %v6771_v7  ;;  %v7749_v7 = vld [vmem:[%s9353_s1 + $0x680] sm:$0xff] }
 0x2d9   : > { %4682 = vmatpush.bf16.msra.mxu2 %v7749_v7 }
 0x2db   : > { %v3366_v1 = vpop.f32.mrf.mxu2  ;;  %v3271_v48 = vpop.f32.mrf.mxu0 }
 0x2dc   : > { %v3415_v17 = vpop.f32.mrf.mxu3  ;;  %v3367_v60 = vadd.f32 %v3366_v1, %v3318_v33  ;;  %v3320_v19 = vpop.f32.mrf.mxu1 }
 0x2dd   : > { %v3321_v55 = vadd.f32 %v3320_v19, %v3271_v48  ;;  %v6781_v48 = vld [vmem:[%s7982_s3 + $0x1f0] sm:$0xf0] }
 0x2de   : > { %v3416_v41 = vadd.f32 %v3415_v17, %v3367_v60  ;;  %3935 = vmatmul.bf16.gmra.mxu0 %v6748_v54  ;;  %v6779_v54 = vld [vmem:[%s7982_s3 + $0x1e0] sm:$0xf]  ;;  %v7656_v60 = vld [vmem:[%s7982_s3 + $0x1e4] sm:$0xf] }
 0x2df   : > { %3984 = vmatmul.bf16.gmra.mxu1 %v6752_v44  ;;  %v7658_v44 = vld [vmem:[%s7982_s3 + $0x1ec] sm:$0xf0] }
 0x2e0   : > { %v9086_v27 = vadd.f32 %v3416_v41, %v8878_v56  ;;  %4033 = vmatmul.bf16.gmra.mxu2 %v6756_v45  ;;  %v6787_v45 = vld [vmem:[%s7982_s3 + $0x1e8] sm:$0xf]  ;;  %v7659_v41 = vld [vmem:[%s7982_s3 + $0x1f4] sm:$0xf0] }
 0x2e1   : > { %4082 = vmatmul.bf16.gmra.mxu3 %v6760_v34  ;;  %v7734_v34 = vld [vmem:[%s9353_s1 + $0x608] sm:$0xff] }
 0x2e2   : > { %4583 = vmatpush.bf16.msra.mxu0 %v7734_v34 }
 0x2e3   : > { %v3369_v3 = vpop.f32.mrf.mxu2  ;;  %v3273_v61 = vpop.f32.mrf.mxu0 }
 0x2e4   : > { %v3418_v56 = vpop.f32.mrf.mxu3  ;;  %v3370_v46 = vadd.f32 %v3369_v3, %v3321_v55  ;;  %v3322_v51 = vpop.f32.mrf.mxu1  ;;  %v7742_v55 = vld [vmem:[%s9353_s1 + $0x648] sm:$0xff] }
 0x2e5   : > { %v3323_v26 = vadd.f32 %v3322_v51, %v3273_v61  ;;  %4632 = vmatpush.bf16.msra.mxu1 %v7742_v55  ;;  %v6784_v61 = vor.u32 %v7656_v60, %v6781_v48 }
 0x2e6   : > { %v3419_v0 = vadd.f32 %v3418_v56, %v3370_v46  ;;  %v6780_v46 = vor.u32 %v7658_v44, %v6779_v54  ;;  %v6808_v54 = vor.u32 %v7661_v30, %v6805_v16  ;;  %v7703_v30 = vld [vmem:[%s7982_s3 + $0x18c] sm:$0xf0] }
 0x2e8   : > { %v9099_v49 = vadd.f32 %v3419_v0, %v8891_v31  ;;  %v6788_v0 = vor.u32 %v7659_v41, %v6787_v45 }
 0x2eb   : > { %v3371_v20 = vpop.f32.mrf.mxu2  ;;  %v3276_v11 = vpop.f32.mrf.mxu0 }
 0x2ec   : > { %v3420_v15 = vpop.f32.mrf.mxu3  ;;  %v3372_v31 = vadd.f32 %v3371_v20, %v3323_v26  ;;  %v3325_v33 = vpop.f32.mrf.mxu1 }
 0x2ed   : > { %v3326_v32 = vadd.f32 %v3325_v33, %v3276_v11  ;;  %v6797_v11 = vld [vmem:[%s7982_s3 + $0x210] sm:$0xf0] }
 0x2ee   : > { %v3421_v18 = vadd.f32 %v3420_v15, %v3372_v31  ;;  %3940 = vmatmul.bf16.gmra.mxu0 %v6764_v8  ;;  %v6795_v8 = vld [vmem:[%s7982_s3 + $0x200] sm:$0xf]  ;;  %v7660_v31 = vld [vmem:[%s7982_s3 + $0x204] sm:$0xf] }
 0x2ef   : > { %3989 = vmatmul.bf16.gmra.mxu1 %v6768_v21  ;;  %v7662_v21 = vld [vmem:[%s7982_s3 + $0x20c] sm:$0xf0] }
 0x2f0   : > { %v9112_v36 = vadd.f32 %v3421_v18, %v8904_v35  ;;  %4038 = vmatmul.bf16.gmra.mxu2 %v6772_v23  ;;  %v6803_v23 = vld [vmem:[%s7982_s3 + $0x208] sm:$0xf]  ;;  %v7663_v18 = vld [vmem:[%s7982_s3 + $0x214] sm:$0xf0] }
 0x2f1   : > { %4087 = vmatmul.bf16.gmra.mxu3 %v6776_v13  ;;  %v7733_v13 = vld [vmem:[%s9353_s1 + $0x600] sm:$0xff] }
 0x2f2   : > { %4584 = vmatpush.bf16.msra.mxu0 %v7733_v13 }
 0x2f3   : > { %v3374_v40 = vpop.f32.mrf.mxu2  ;;  %v3278_v37 = vpop.f32.mrf.mxu0 }
 0x2f4   : > { %v3423_v35 = vpop.f32.mrf.mxu3  ;;  %v3375_v38 = vadd.f32 %v3374_v40, %v3326_v32  ;;  %v3327_v25 = vpop.f32.mrf.mxu1  ;;  %v7741_v32 = vld [vmem:[%s9353_s1 + $0x640] sm:$0xff] }
 0x2f5   : > { %v3328_v1 = vadd.f32 %v3327_v25, %v3278_v37  ;;  %4633 = vmatpush.bf16.msra.mxu1 %v7741_v32  ;;  %v6800_v37 = vor.u32 %v7660_v31, %v6797_v11 }
 0x2f6   : > { %v3424_v17 = vadd.f32 %v3423_v35, %v3375_v38  ;;  %v6796_v38 = vor.u32 %v7662_v21, %v6795_v8 }
 0x2f8   : > { %v9125_v19 = vadd.f32 %v3424_v17, %v8917_v47  ;;  %v6804_v17 = vor.u32 %v7663_v18, %v6803_v23  ;;  %v7053_v18 = vld [vmem:[%s7982_s3 + $0x180] sm:$0xf] }
 0x2fb   : > { %v3376_v3 = vpop.f32.mrf.mxu2  ;;  %v3281_v51 = vpop.f32.mrf.mxu0 }
 0x2fc   : > { %v3425_v56 = vpop.f32.mrf.mxu3  ;;  %v3377_v47 = vadd.f32 %v3376_v3, %v3328_v1  ;;  %v3330_v26 = vpop.f32.mrf.mxu1 }
 0x2fd   : > { %v3331_v6 = vadd.f32 %v3330_v26, %v3281_v51  ;;  %v6819_v51 = vld [vmem:[%s7982_s3 + $0x228] sm:$0xf]  ;;  %v7667_v26 = vld [vmem:[%s7982_s3 + $0x234] sm:$0xf0] }
 0x2fe   : > { %v3426_v58 = vadd.f32 %v3425_v56, %v3377_v47  ;;  %3945 = vmatmul.bf16.gmra.mxu0 %v6780_v46  ;;  %v6811_v56 = vld [vmem:[%s7982_s3 + $0x220] sm:$0xf]  ;;  %v7666_v46 = vld [vmem:[%s7982_s3 + $0x22c] sm:$0xf0]  ;;  %v7664_v47 = vld [vmem:[%s7982_s3 + $0x224] sm:$0xf] }
 0x2ff   : > { %3994 = vmatmul.bf16.gmra.mxu1 %v6784_v61  ;;  %v6812_v7 = vor.u32 %v7666_v46, %v6811_v56 }
 0x300   : > { %v9138_v10 = vadd.f32 %v3426_v58, %v8930_v9  ;;  %4043 = vmatmul.bf16.gmra.mxu2 %v6788_v0  ;;  %v7665_v0 = vld [vmem:[%s7982_s3 + $0x22c] sm:$0xf] }
 0x301   : > { %4092 = vmatmul.bf16.gmra.mxu3 %v6792_v53  ;;  %v6821_v53 = vld [vmem:[%s7982_s3 + $0x238] sm:$0xf0] }
 0x303   : > { %v3379_v14 = vpop.f32.mrf.mxu2  ;;  %v3283_v12 = vpop.f32.mrf.mxu0 }
 0x304   : > { %v3428_v9 = vpop.f32.mrf.mxu3  ;;  %v3380_v50 = vadd.f32 %v3379_v14, %v3331_v6  ;;  %v3332_v4 = vpop.f32.mrf.mxu1 }
 0x305   : > { %v3333_v20 = vadd.f32 %v3332_v4, %v3283_v12  ;;  %v6820_v12 = vor.u32 %v7667_v26, %v6819_v51  ;;  %v6824_v4 = vor.u32 %v7665_v0, %v6821_v53  ;;  %v7069_v26 = vld [vmem:[%s7982_s3 + $0x1a0] sm:$0xf]  ;;  %v7707_v0 = vld [vmem:[%s7982_s3 + $0x1ac] sm:$0xf0] }
 0x306   : > { %v3429_v15 = vadd.f32 %v3428_v9, %v3380_v50 }
 0x308   : > { %v9151_v33 = vadd.f32 %v3429_v15, %v8943_v28 }
 0x30b   : > { %v3381_v40 = vpop.f32.mrf.mxu2  ;;  %v3286_v25 = vpop.f32.mrf.mxu0 }
 0x30c   : > { %v3430_v35 = vpop.f32.mrf.mxu3  ;;  %v3382_v28 = vadd.f32 %v3381_v40, %v3333_v20  ;;  %v3335_v1 = vpop.f32.mrf.mxu1  ;;  %v7701_v40 = vld [vmem:[%s7982_s3 + $0x184] sm:$0xf] }
 0x30d   : > { %v3336_v44 = vadd.f32 %v3335_v1, %v3286_v25 }
 0x30e   : > { %v3431_v60 = vadd.f32 %v3430_v35, %v3382_v28  ;;  %3950 = vmatmul.bf16.gmra.mxu0 %v6796_v38  ;;  %v7061_v35 = vld [vmem:[%s7982_s3 + $0x188] sm:$0xf]  ;;  %v7704_v38 = vld [vmem:[%s7982_s3 + $0x194] sm:$0xf0]  ;;  %v7063_v28 = vld [vmem:[%s7982_s3 + $0x198] sm:$0xf0] }
 0x30f   : > { %3999 = vmatmul.bf16.gmra.mxu1 %v6800_v37  ;;  %v7702_v37 = vld [vmem:[%s7982_s3 + $0x18c] sm:$0xf] }
 0x310   : > { %v9164_v48 = vadd.f32 %v3431_v60, %v8956_v2  ;;  %4048 = vmatmul.bf16.gmra.mxu2 %v6804_v17  ;;  %v6813_v2 = vld [vmem:[%s7982_s3 + $0x230] sm:$0xf0]  ;;  %v7054_v17 = vor.u32 %v7703_v30, %v7053_v18 }
 0x311   : > { %4097 = vmatmul.bf16.gmra.mxu3 %v6808_v54  ;;  %v6816_v57 = vor.u32 %v7664_v47, %v6813_v2 }
 0x313   : > { %v3384_v45 = vpop.f32.mrf.mxu2  ;;  %v3288_v41 = vpop.f32.mrf.mxu0 }
 0x314   : > { %v3433_v34 = vpop.f32.mrf.mxu3  ;;  %v3385_v55 = vadd.f32 %v3384_v45, %v3336_v44  ;;  %v3337_v52 = vpop.f32.mrf.mxu1 }
 0x315   : > { %v3338_v42 = vadd.f32 %v3337_v52, %v3288_v41 }
 0x316   : > { %v3434_v3 = vadd.f32 %v3433_v34, %v3385_v55  ;;  %v7062_v34 = vor.u32 %v7704_v38, %v7061_v35  ;;  %v7066_v55 = vor.u32 %v7702_v37, %v7063_v28  ;;  %v7085_v38 = vld [vmem:[%s7982_s3 + $0x1c0] sm:$0xf]  ;;  %v7711_v37 = vld [vmem:[%s7982_s3 + $0x1cc] sm:$0xf0] }
 0x318   : > { %v9169_v61 = vadd.f32 %v3434_v3, %v8969_v63 }
 0x31b   : > { %v3386_v6 = vpop.f32.mrf.mxu2  ;;  %v3291_v9 = vpop.f32.mrf.mxu0 }
 0x31c   : > { %v3435_v58 = vpop.f32.mrf.mxu3  ;;  %v3387_v14 = vadd.f32 %v3386_v6, %v3338_v42  ;;  %v3340_v50 = vpop.f32.mrf.mxu1  ;;  %v7705_v6 = vld [vmem:[%s7982_s3 + $0x1a4] sm:$0xf] }
 0x31d   : > { %v3341_v20 = vadd.f32 %v3340_v50, %v3291_v9 }
 0x31e   : > { %v3436_v63 = vadd.f32 %v3435_v58, %v3387_v14  ;;  %3955 = vmatmul.bf16.gmra.mxu0 %v6812_v7  ;;  %v7077_v58 = vld [vmem:[%s7982_s3 + $0x1a8] sm:$0xf]  ;;  %v7708_v7 = vld [vmem:[%s7982_s3 + $0x1b4] sm:$0xf0]  ;;  %v7079_v14 = vld [vmem:[%s7982_s3 + $0x1b8] sm:$0xf0] }
 0x31f   : > { %4004 = vmatmul.bf16.gmra.mxu1 %v6816_v57  ;;  %v7706_v57 = vld [vmem:[%s7982_s3 + $0x1ac] sm:$0xf] }
 0x320   : > { %v9178_v15 = vadd.f32 %v3436_v63, %v8982_v24  ;;  %4053 = vmatmul.bf16.gmra.mxu2 %v6820_v12  ;;  %v7055_v24 = vld [vmem:[%s7982_s3 + $0x190] sm:$0xf0]  ;;  %v7070_v12 = vor.u32 %v7707_v0, %v7069_v26 }
 0x321   : > { %4102 = vmatmul.bf16.gmra.mxu3 %v6824_v4  ;;  %v7058_v54 = vor.u32 %v7701_v40, %v7055_v24 }
 0x323   : > { %v3389_v8 = vpop.f32.mrf.mxu2  ;;  %v3293_v11 = vpop.f32.mrf.mxu0 }
 0x324   : > { %v3438_v21 = vpop.f32.mrf.mxu3  ;;  %v3390_v31 = vadd.f32 %v3389_v8, %v3341_v20  ;;  %v3342_v23 = vpop.f32.mrf.mxu1 }
 0x325   : > { %v3343_v13 = vadd.f32 %v3342_v23, %v3293_v11 }
 0x326   : > { %v3439_v32 = vadd.f32 %v3438_v21, %v3390_v31  ;;  %v7078_v21 = vor.u32 %v7708_v7, %v7077_v58  ;;  %v7082_v31 = vor.u32 %v7706_v57, %v7079_v14  ;;  %v7101_v7 = vld [vmem:[%s7982_s3 + $0x1e0] sm:$0xf]  ;;  %v7715_v57 = vld [vmem:[%s7982_s3 + $0x1ec] sm:$0xf0] }
 0x328   : > { %v9183_v16 = vadd.f32 %v3439_v32, %v8995_v29 }
 0x32b   : > { %v3391_v25 = vpop.f32.mrf.mxu2  ;;  %v3921_v60 = vpop.f32.mrf.mxu0 }
 0x32c   : > { %v3440_v1 = vpop.f32.mrf.mxu3  ;;  %v3392_v44 = vadd.f32 %v3391_v25, %v3343_v13  ;;  %v3970_v45 = vpop.f32.mrf.mxu1  ;;  %v7709_v25 = vld [vmem:[%s7982_s3 + $0x1c4] sm:$0xf] }
 0x32d   : > { %v3971_v41 = vadd.f32 %v3970_v45, %v3921_v60 }
 0x32e   : > { %v3441_v29 = vadd.f32 %v3440_v1, %v3392_v44  ;;  %4585 = vmatmul.bf16.vlgmr.msra.gmra.mxu0 %v7054_v17  ;;  %v7093_v1 = vld [vmem:[%s7982_s3 + $0x1c8] sm:$0xf]  ;;  %v7712_v17 = vld [vmem:[%s7982_s3 + $0x1d4] sm:$0xf0]  ;;  %v7095_v44 = vld [vmem:[%s7982_s3 + $0x1d8] sm:$0xf0] }
 0x32f   : > { %4634 = vmatmul.bf16.vlgmr.msra.gmra.mxu1 %v7058_v54  ;;  %v7710_v54 = vld [vmem:[%s7982_s3 + $0x1cc] sm:$0xf] }
 0x330   : > { %v9192_v52 = vadd.f32 %v3441_v29, %v9008_v5  ;;  %4683 = vmatmul.bf16.vlgmr.msra.gmra.mxu2 %v7062_v34  ;;  %v7071_v5 = vld [vmem:[%s7982_s3 + $0x1b0] sm:$0xf0]  ;;  %v7086_v34 = vor.u32 %v7711_v37, %v7085_v38 }
 0x331   : > { %4732 = vmatmul.bf16.vlgmr.msra.gmra.mxu3 %v7066_v55  ;;  %v7074_v4 = vor.u32 %v7705_v6, %v7071_v5 }
 0x333   : > { %v4019_v42 = vpop.f32.mrf.mxu2  ;;  %v3923_v46 = vpop.f32.mrf.mxu0 }
 0x334   : > { %v4068_v3 = vpop.f32.mrf.mxu3  ;;  %v4020_v56 = vadd.f32 %v4019_v42, %v3971_v41  ;;  %v3972_v47 = vpop.f32.mrf.mxu1 }
 0x335   : > { %v3973_v2 = vadd.f32 %v3972_v47, %v3923_v46 }
 0x336   : > { %v4069_v51 = vadd.f32 %v4068_v3, %v4020_v56  ;;  %v7094_v3 = vor.u32 %v7712_v17, %v7093_v1  ;;  %v7098_v56 = vor.u32 %v7710_v54, %v7095_v44  ;;  %v7117_v17 = vld [vmem:[%s7982_s3 + $0x200] sm:$0xf]  ;;  %v7719_v54 = vld [vmem:[%s7982_s3 + $0x20c] sm:$0xf0] }
 0x338   : > { %v9197_v53 = vadd.f32 %v4069_v51, %v9021_v22 }
 0x33b   : > { %v4021_v9 = vpop.f32.mrf.mxu2  ;;  %v3926_v63 = vpop.f32.mrf.mxu0 }
 0x33c   : > { %v4070_v50 = vpop.f32.mrf.mxu3  ;;  %v4022_v20 = vadd.f32 %v4021_v9, %v3973_v2  ;;  %v3975_v8 = vpop.f32.mrf.mxu1  ;;  %v7713_v9 = vld [vmem:[%s7982_s3 + $0x1e4] sm:$0xf] }
 0x33d   : > { %v3976_v11 = vadd.f32 %v3975_v8, %v3926_v63 }
 0x33e   : > { %v4071_v22 = vadd.f32 %v4070_v50, %v4022_v20  ;;  %4590 = vmatmul.bf16.gmra.mxu0 %v7070_v12  ;;  %v7109_v50 = vld [vmem:[%s7982_s3 + $0x1e8] sm:$0xf]  ;;  %v7716_v12 = vld [vmem:[%s7982_s3 + $0x1f4] sm:$0xf0]  ;;  %v7111_v20 = vld [vmem:[%s7982_s3 + $0x1f8] sm:$0xf0] }
 0x33f   : > { %4639 = vmatmul.bf16.gmra.mxu1 %v7074_v4  ;;  %v7714_v4 = vld [vmem:[%s7982_s3 + $0x1ec] sm:$0xf] }
 0x340   : > { %v9206_v23 = vadd.f32 %v4071_v22, %v9034_v43  ;;  %4688 = vmatmul.bf16.gmra.mxu2 %v7078_v21  ;;  %v7087_v43 = vld [vmem:[%s7982_s3 + $0x1d0] sm:$0xf0]  ;;  %v7102_v21 = vor.u32 %v7715_v57, %v7101_v7 }
 0x341   : > { %4737 = vmatmul.bf16.gmra.mxu3 %v7082_v31  ;;  %v7090_v55 = vor.u32 %v7709_v25, %v7087_v43 }
 0x343   : > { %v4024_v13 = vpop.f32.mrf.mxu2  ;;  %v3928_v30 = vpop.f32.mrf.mxu0 }
 0x344   : > { %v4073_v32 = vpop.f32.mrf.mxu3  ;;  %v4025_v18 = vadd.f32 %v4024_v13, %v3976_v11  ;;  %v3977_v40 = vpop.f32.mrf.mxu1 }
 0x345   : > { %v3978_v24 = vadd.f32 %v3977_v40, %v3928_v30 }
 0x346   : > { %v4074_v35 = vadd.f32 %v4073_v32, %v4025_v18  ;;  %v7110_v32 = vor.u32 %v7716_v12, %v7109_v50  ;;  %v7114_v18 = vor.u32 %v7714_v4, %v7111_v20  ;;  %v7133_v12 = vld [vmem:[%s7982_s3 + $0x220] sm:$0xf]  ;;  %v7723_v4 = vld [vmem:[%s7982_s3 + $0x22c] sm:$0xf0] }
 0x348   : > { %v9211_v28 = vadd.f32 %v4074_v35, %v9047_v62 }
 0x34b   : > { %v4026_v60 = vpop.f32.mrf.mxu2  ;;  %v3931_v29 = vpop.f32.mrf.mxu0 }
 0x34c   : > { %v4075_v45 = vpop.f32.mrf.mxu3  ;;  %v4027_v41 = vadd.f32 %v4026_v60, %v3978_v24  ;;  %v3980_v42 = vpop.f32.mrf.mxu1  ;;  %v7717_v60 = vld [vmem:[%s7982_s3 + $0x204] sm:$0xf] }
 0x34d   : > { %v3981_v46 = vadd.f32 %v3980_v42, %v3931_v29 }
 0x34e   : > { %v4076_v62 = vadd.f32 %v4075_v45, %v4027_v41  ;;  %4595 = vmatmul.bf16.gmra.mxu0 %v7086_v34  ;;  %v7125_v45 = vld [vmem:[%s7982_s3 + $0x208] sm:$0xf]  ;;  %v7720_v34 = vld [vmem:[%s7982_s3 + $0x214] sm:$0xf0]  ;;  %v7127_v41 = vld [vmem:[%s7982_s3 + $0x218] sm:$0xf0] }
 0x34f   : > { %4644 = vmatmul.bf16.gmra.mxu1 %v7090_v55  ;;  %v7718_v55 = vld [vmem:[%s7982_s3 + $0x20c] sm:$0xf] }
 0x350   : > { %v9220_v47 = vadd.f32 %v4076_v62, %v9060_v59  ;;  %4693 = vmatmul.bf16.gmra.mxu2 %v7094_v3  ;;  %v7103_v59 = vld [vmem:[%s7982_s3 + $0x1f0] sm:$0xf0]  ;;  %v7118_v3 = vor.u32 %v7719_v54, %v7117_v17 }
 0x351   : > { %4742 = vmatmul.bf16.gmra.mxu3 %v7098_v56  ;;  %v7106_v31 = vor.u32 %v7713_v9, %v7103_v59 }
 0x353   : > { %v4029_v2 = vpop.f32.mrf.mxu2  ;;  %v3933_v0 = vpop.f32.mrf.mxu0 }
 0x354   : > { %v4078_v51 = vpop.f32.mrf.mxu3  ;;  %v4030_v26 = vadd.f32 %v4029_v2, %v3981_v46  ;;  %v3982_v6 = vpop.f32.mrf.mxu1 }
 0x355   : > { %v3983_v5 = vadd.f32 %v3982_v6, %v3933_v0 }
 0x356   : > { %v4079_v58 = vadd.f32 %v4078_v51, %v4030_v26  ;;  %v7126_v51 = vor.u32 %v7720_v34, %v7125_v45  ;;  %v7130_v26 = vor.u32 %v7718_v55, %v7127_v41  ;;  %v7149_v34 = vld [vmem:[%s7982_s3 + $0x240] sm:$0xf]  ;;  %v7727_v55 = vld [vmem:[%s7982_s3 + $0x24c] sm:$0xf0] }
 0x358   : > { %v9225_v14 = vadd.f32 %v4079_v58, %v9073_v39 }
 0x35b   : > { %v4031_v63 = vpop.f32.mrf.mxu2  ;;  %v3936_v22 = vpop.f32.mrf.mxu0 }
 0x35c   : > { %v4080_v8 = vpop.f32.mrf.mxu3  ;;  %v4032_v11 = vadd.f32 %v4031_v63, %v3983_v5  ;;  %v3985_v13 = vpop.f32.mrf.mxu1  ;;  %v7721_v63 = vld [vmem:[%s7982_s3 + $0x224] sm:$0xf] }
 0x35d   : > { %v3986_v30 = vadd.f32 %v3985_v13, %v3936_v22 }
 0x35e   : > { %v4081_v39 = vadd.f32 %v4080_v8, %v4032_v11  ;;  %4600 = vmatmul.bf16.gmra.mxu0 %v7102_v21  ;;  %v7141_v8 = vld [vmem:[%s7982_s3 + $0x228] sm:$0xf]  ;;  %v7724_v21 = vld [vmem:[%s7982_s3 + $0x234] sm:$0xf0]  ;;  %v7143_v11 = vld [vmem:[%s7982_s3 + $0x238] sm:$0xf0] }
 0x35f   : > { %4649 = vmatmul.bf16.gmra.mxu1 %v7106_v31  ;;  %v7722_v31 = vld [vmem:[%s7982_s3 + $0x22c] sm:$0xf] }
 0x360   : > { %v9234_v40 = vadd.f32 %v4081_v39, %v9086_v27  ;;  %4698 = vmatmul.bf16.gmra.mxu2 %v7110_v32  ;;  %v7119_v27 = vld [vmem:[%s7982_s3 + $0x210] sm:$0xf0]  ;;  %v7134_v32 = vor.u32 %v7723_v4, %v7133_v12 }
 0x361   : > { %4747 = vmatmul.bf16.gmra.mxu3 %v7114_v18  ;;  %v7122_v56 = vor.u32 %v7717_v60, %v7119_v27 }
 0x363   : > { %v4034_v24 = vpop.f32.mrf.mxu2  ;;  %v3938_v37 = vpop.f32.mrf.mxu0 }
 0x364   : > { %v4083_v35 = vpop.f32.mrf.mxu3  ;;  %v4035_v38 = vadd.f32 %v4034_v24, %v3986_v30  ;;  %v3987_v25 = vpop.f32.mrf.mxu1 }
 0x365   : > { %v3988_v43 = vadd.f32 %v3987_v25, %v3938_v37 }
 0x366   : > { %v4084_v1 = vadd.f32 %v4083_v35, %v4035_v38  ;;  %v7142_v35 = vor.u32 %v7724_v21, %v7141_v8  ;;  %v7146_v38 = vor.u32 %v7722_v31, %v7143_v11  ;;  %v7165_v21 = vld [vmem:[%s7982_s3 + $0x260] sm:$0xf]  ;;  %v7731_v31 = vld [vmem:[%s7982_s3 + $0x26c] sm:$0xf0] }
 0x368   : > { %v9239_v44 = vadd.f32 %v4084_v1, %v9099_v49 }
 0x36b   : > { %v4036_v29 = vpop.f32.mrf.mxu2  ;;  %v3941_v62 = vpop.f32.mrf.mxu0 }
 0x36c   : > { %v4085_v42 = vpop.f32.mrf.mxu3  ;;  %v4037_v46 = vadd.f32 %v4036_v29, %v3988_v43  ;;  %v3990_v2 = vpop.f32.mrf.mxu1  ;;  %v7725_v29 = vld [vmem:[%s7982_s3 + $0x244] sm:$0xf] }
 0x36d   : > { %v3991_v0 = vadd.f32 %v3990_v2, %v3941_v62 }
 0x36e   : > { %v4086_v49 = vadd.f32 %v4085_v42, %v4037_v46  ;;  %4605 = vmatmul.bf16.gmra.mxu0 %v7118_v3  ;;  %v7157_v42 = vld [vmem:[%s7982_s3 + $0x248] sm:$0xf]  ;;  %v7728_v3 = vld [vmem:[%s7982_s3 + $0x254] sm:$0xf0]  ;;  %v7159_v46 = vld [vmem:[%s7982_s3 + $0x258] sm:$0xf0] }
 0x36f   : > { %4654 = vmatmul.bf16.gmra.mxu1 %v7122_v56  ;;  %v7726_v56 = vld [vmem:[%s7982_s3 + $0x24c] sm:$0xf] }
 0x370   : > { %v9248_v6 = vadd.f32 %v4086_v49, %v9112_v36  ;;  %4703 = vmatmul.bf16.gmra.mxu2 %v7126_v51  ;;  %v7135_v36 = vld [vmem:[%s7982_s3 + $0x230] sm:$0xf0]  ;;  %v7150_v51 = vor.u32 %v7727_v55, %v7149_v34 }
 0x371   : > { %4752 = vmatmul.bf16.gmra.mxu3 %v7130_v26  ;;  %v7138_v18 = vor.u32 %v7721_v63, %v7135_v36 }
 0x373   : > { %v4039_v5 = vpop.f32.mrf.mxu2  ;;  %v3943_v57 = vpop.f32.mrf.mxu0 }
 0x374   : > { %v4088_v58 = vpop.f32.mrf.mxu3  ;;  %v4040_v7 = vadd.f32 %v4039_v5, %v3991_v0  ;;  %v3992_v9 = vpop.f32.mrf.mxu1 }
 0x375   : > { %v3993_v59 = vadd.f32 %v3992_v9, %v3943_v57 }
 0x376   : > { %v4089_v50 = vadd.f32 %v4088_v58, %v4040_v7  ;;  %v7158_v58 = vor.u32 %v7728_v3, %v7157_v42  ;;  %v7162_v7 = vor.u32 %v7726_v56, %v7159_v46 }
 0x378   : > { %v9253_v20 = vadd.f32 %v4089_v50, %v9125_v19 }
 0x37b   : > { %v4041_v22 = vpop.f32.mrf.mxu2  ;;  %v3946_v39 = vpop.f32.mrf.mxu0 }
 0x37c   : > { %v4090_v13 = vpop.f32.mrf.mxu3  ;;  %v4042_v30 = vadd.f32 %v4041_v22, %v3993_v59  ;;  %v3995_v24 = vpop.f32.mrf.mxu1  ;;  %v7729_v22 = vld [vmem:[%s7982_s3 + $0x264] sm:$0xf] }
 0x37d   : > { %v3996_v37 = vadd.f32 %v3995_v24, %v3946_v39 }
 0x37e   : > { %v4091_v19 = vadd.f32 %v4090_v13, %v4042_v30  ;;  %4610 = vmatmul.bf16.gmra.mxu0 %v7134_v32  ;;  %v7173_v13 = vld [vmem:[%s7982_s3 + $0x268] sm:$0xf]  ;;  %v7732_v32 = vld [vmem:[%s7982_s3 + $0x274] sm:$0xf0]  ;;  %v7175_v30 = vld [vmem:[%s7982_s3 + $0x278] sm:$0xf0] }
 0x37f   : > { %4659 = vmatmul.bf16.gmra.mxu1 %v7138_v18  ;;  %v7730_v18 = vld [vmem:[%s7982_s3 + $0x26c] sm:$0xf] }
 0x380   : > { %v9262_v25 = vadd.f32 %v4091_v19, %v9138_v10  ;;  %4708 = vmatmul.bf16.gmra.mxu2 %v7142_v35  ;;  %v7151_v10 = vld [vmem:[%s7982_s3 + $0x250] sm:$0xf0]  ;;  %v7166_v35 = vor.u32 %v7731_v31, %v7165_v21 }
 0x381   : > { %4757 = vmatmul.bf16.gmra.mxu3 %v7146_v38  ;;  %v7154_v26 = vor.u32 %v7725_v29, %v7151_v10 }
 0x383   : > { %v4044_v43 = vpop.f32.mrf.mxu2  ;;  %v3948_v54 = vpop.f32.mrf.mxu0 }
 0x384   : > { %v4093_v1 = vpop.f32.mrf.mxu3  ;;  %v4045_v17 = vadd.f32 %v4044_v43, %v3996_v37  ;;  %v3997_v60 = vpop.f32.mrf.mxu1 }
 0x385   : > { %v3998_v27 = vadd.f32 %v3997_v60, %v3948_v54 }
 0x386   : > { %v4094_v45 = vadd.f32 %v4093_v1, %v4045_v17  ;;  %v7174_v1 = vor.u32 %v7732_v32, %v7173_v13  ;;  %v7178_v17 = vor.u32 %v7730_v18, %v7175_v30 }
 0x388   : > { %v9267_v41 = vadd.f32 %v4094_v45, %v9151_v33 }
 0x38b   : > { %v4046_v62 = vpop.f32.mrf.mxu2  ;;  %v3951_v49 = vpop.f32.mrf.mxu0 }
 0x38c   : > { %v4095_v2 = vpop.f32.mrf.mxu3  ;;  %v4047_v0 = vadd.f32 %v4046_v62, %v3998_v27  ;;  %v4000_v5 = vpop.f32.mrf.mxu1 }
 0x38d   : > { %v4001_v57 = vadd.f32 %v4000_v5, %v3951_v49 }
 0x38e   : > { %v4096_v33 = vadd.f32 %v4095_v2, %v4047_v0  ;;  %4615 = vmatmul.bf16.gmra.mxu0 %v7150_v51 }
 0x38f   : > { %4664 = vmatmul.bf16.gmra.mxu1 %v7154_v26 }
 0x390   : > { %v9276_v9 = vadd.f32 %v4096_v33, %v9164_v48  ;;  %4713 = vmatmul.bf16.gmra.mxu2 %v7158_v58  ;;  %v7167_v48 = vld [vmem:[%s7982_s3 + $0x270] sm:$0xf0]  ;;  %s4921_s3 = sshll.u32 %s7828_s9, 4 }
 0x391   : > { %4762 = vmatmul.bf16.gmra.mxu3 %v7162_v7  ;;  %v7170_v38 = vor.u32 %v7729_v22, %v7167_v48  ;;  %p160_p6 = scmp.lt.s32.totalorder %s4921_s3, 127 }
 0x393   : > { %v4049_v59 = vpop.f32.mrf.mxu2  ;;  %v3953_v4 = vpop.f32.mrf.mxu0  ;;  %s9368_s3 = smov (!%p160_p6, %s4921_s3), 127 }
 0x394   : > { %v4098_v50 = vpop.f32.mrf.mxu3  ;;  %v4050_v12 = vadd.f32 %v4049_v59, %v4001_v57  ;;  %v4002_v63 = vpop.f32.mrf.mxu1  ;;  %s163_s28 = sadd.s32 %s4922_s27, %s9368_s3 }
 0x395   : > { %v4003_v36 = vadd.f32 %v4002_v63, %v3953_v4  ;;  %s4923_s9 = sshll.u32 %s163_s28, 3 }
 0x396   : > { %v4099_v8 = vadd.f32 %v4098_v50, %v4050_v12  ;;  %s9303_s4 = scalar_lea.vmem %s9354_s2, %s4923_s9 }
 0x398   : > { %v9281_v11 = vadd.f32 %v4099_v8, %v9169_v61 }
 0x39b   : > { %v4051_v39 = vpop.f32.mrf.mxu2  ;;  %v3956_v19 = vpop.f32.mrf.mxu0 }
 0x39c   : > { %v4100_v24 = vpop.f32.mrf.mxu3  ;;  %v4052_v37 = vadd.f32 %v4051_v39, %v4003_v36  ;;  %v4005_v43 = vpop.f32.mrf.mxu1 }
 0x39d   : > { %v4006_v54 = vadd.f32 %v4005_v43, %v3956_v19 }
 0x39e   : > { %v4101_v60 = vadd.f32 %v4100_v24, %v4052_v37  ;;  %4620 = vmatmul.bf16.gmra.mxu0 %v7166_v35 }
 0x39f   : > { %4669 = vmatmul.bf16.gmra.mxu1 %v7170_v38 }
 0x3a0   : > { %v9290_v61 = vadd.f32 %v4101_v60, %v9178_v15  ;;  %4718 = vmatmul.bf16.gmra.mxu2 %v7174_v1 }
 0x3a1   : > { %4767 = vmatmul.bf16.gmra.mxu3 %v7178_v17 }
 0x3a3   : > { %v4054_v27 = vpop.f32.mrf.mxu2  ;;  %v3958_v55 = vpop.f32.mrf.mxu0 }
 0x3a4   : > { %v4103_v45 = vpop.f32.mrf.mxu3  ;;  %v4055_v34 = vadd.f32 %v4054_v27, %v4006_v54  ;;  %v4007_v29 = vpop.f32.mrf.mxu1 }
 0x3a5   : > { %v4008_v10 = vadd.f32 %v4007_v29, %v3958_v55 }
 0x3a6   : > { %v4104_v42 = vadd.f32 %v4103_v45, %v4055_v34 }
 0x3a8   : > { %v9294_v3 = vadd.f32 %v4104_v42, %v9183_v16 }
 0x3ab   : > { %v4056_v56 = vpop.f32.mrf.mxu2  ;;  %v4586_v15 = vpop.f32.mrf.mxu0 }
 0x3ac   : > { %v4105_v46 = vpop.f32.mrf.mxu3  ;;  %v4057_v62 = vadd.f32 %v4056_v56, %v4008_v10  ;;  %v4635_v2 = vpop.f32.mrf.mxu1 }
 0x3ad   : > { %v4636_v0 = vadd.f32 %v4635_v2, %v4586_v15 }
 0x3ae   : > { %v4106_v51 = vadd.f32 %v4105_v46, %v4057_v62 }
 0x3b0   : > { %v9298_v26 = vadd.f32 %v4106_v51, %v9192_v52 }
 0x3b3   : > { %v4684_v49 = vpop.f32.mrf.mxu2  ;;  %v4588_v16 = vpop.f32.mrf.mxu0 }
 0x3b4   : > { %v4733_v5 = vpop.f32.mrf.mxu3  ;;  %v4685_v58 = vadd.f32 %v4684_v49, %v4636_v0  ;;  %v4637_v7 = vpop.f32.mrf.mxu1 }
 0x3b5   : > { %v4638_v52 = vadd.f32 %v4637_v7, %v4588_v16 }
 0x3b6   : > { %v4734_v57 = vadd.f32 %v4733_v5, %v4685_v58 }
 0x3b8   : > { %v4773_v33 = vadd.f32 %v4734_v57, %v9197_v53 }
 0x3ba   : > { %4789 = vst [vmem:[%s9303_s4] sm:$0xff] %v4773_v33 }
 0x3bb   : > { %v4686_v59 = vpop.f32.mrf.mxu2  ;;  %v4591_v4 = vpop.f32.mrf.mxu0 }
 0x3bc   : > { %v4735_v50 = vpop.f32.mrf.mxu3  ;;  %v4687_v12 = vadd.f32 %v4686_v59, %v4638_v52  ;;  %v4640_v63 = vpop.f32.mrf.mxu1 }
 0x3bd   : > { %v4641_v21 = vadd.f32 %v4640_v63, %v4591_v4 }
 0x3be   : > { %v4736_v36 = vadd.f32 %v4735_v50, %v4687_v12 }
 0x3c0   : > { %v4774_v8 = vadd.f32 %v4736_v36, %v9206_v23 }
 0x3c2   : > { %4790 = vst [vmem:[%s9303_s4 + $0x8] sm:$0xff] %v4774_v8 }
 0x3c3   : > { %v4689_v31 = vpop.f32.mrf.mxu2  ;;  %v4593_v13 = vpop.f32.mrf.mxu0 }
 0x3c4   : > { %v4738_v22 = vpop.f32.mrf.mxu3  ;;  %v4690_v48 = vadd.f32 %v4689_v31, %v4641_v21  ;;  %v4642_v32 = vpop.f32.mrf.mxu1 }
 0x3c5   : > { %v4643_v30 = vadd.f32 %v4642_v32, %v4593_v13 }
 0x3c6   : > { %v4739_v53 = vadd.f32 %v4738_v22, %v4690_v48 }
 0x3c8   : > { %v4775_v18 = vadd.f32 %v4739_v53, %v9211_v28 }
 0x3ca   : > { %4791 = vst [vmem:[%s9303_s4 + $0x10] sm:$0xff] %v4775_v18 }
 0x3cb   : > { %v4691_v39 = vpop.f32.mrf.mxu2  ;;  %v4596_v38 = vpop.f32.mrf.mxu0 }
 0x3cc   : > { %v4740_v24 = vpop.f32.mrf.mxu3  ;;  %v4692_v35 = vadd.f32 %v4691_v39, %v4643_v30  ;;  %v4645_v37 = vpop.f32.mrf.mxu1 }
 0x3cd   : > { %v4646_v43 = vadd.f32 %v4645_v37, %v4596_v38 }
 0x3ce   : > { %v4741_v23 = vadd.f32 %v4740_v24, %v4692_v35 }
 0x3d0   : > { %v4776_v19 = vadd.f32 %v4741_v23, %v9220_v47 }
 0x3d2   : > { %4792 = vst [vmem:[%s9303_s4 + $0x18] sm:$0xff] %v4776_v19 }
 0x3d3   : > { %v4694_v1 = vpop.f32.mrf.mxu2  ;;  %v4598_v60 = vpop.f32.mrf.mxu0 }
 0x3d4   : > { %v4743_v17 = vpop.f32.mrf.mxu3  ;;  %v4695_v54 = vadd.f32 %v4694_v1, %v4646_v43  ;;  %v4647_v27 = vpop.f32.mrf.mxu1 }
 0x3d5   : > { %v4648_v34 = vadd.f32 %v4647_v27, %v4598_v60 }
 0x3d6   : > { %v4744_v28 = vadd.f32 %v4743_v17, %v4695_v54 }
 0x3d8   : > { %v4777_v45 = vadd.f32 %v4744_v28, %v9225_v14 }
 0x3da   : > { %4793 = vst [vmem:[%s9303_s4 + $0x20] sm:$0xff] %v4777_v45 }
 0x3db   : > { %v4696_v55 = vpop.f32.mrf.mxu2  ;;  %v4601_v42 = vpop.f32.mrf.mxu0 }
 0x3dc   : > { %v4745_v29 = vpop.f32.mrf.mxu3  ;;  %v4697_v10 = vadd.f32 %v4696_v55, %v4648_v34  ;;  %v4650_v56 = vpop.f32.mrf.mxu1 }
 0x3dd   : > { %v4651_v62 = vadd.f32 %v4650_v56, %v4601_v42 }
 0x3de   : > { %v4746_v47 = vadd.f32 %v4745_v29, %v4697_v10 }
 0x3e0   : > { %v4778_v46 = vadd.f32 %v4746_v47, %v9234_v40 }
 0x3e2   : > { %4794 = vst [vmem:[%s9303_s4 + $0x28] sm:$0xff] %v4778_v46 }
 0x3e3   : > { %v4699_v15 = vpop.f32.mrf.mxu2  ;;  %v4603_v0 = vpop.f32.mrf.mxu0 }
 0x3e4   : > { %v4748_v2 = vpop.f32.mrf.mxu3  ;;  %v4700_v51 = vadd.f32 %v4699_v15, %v4651_v62  ;;  %v4652_v49 = vpop.f32.mrf.mxu1 }
 0x3e5   : > { %v4653_v58 = vadd.f32 %v4652_v49, %v4603_v0 }
 0x3e6   : > { %v4749_v14 = vadd.f32 %v4748_v2, %v4700_v51 }
 0x3e8   : > { %v4779_v5 = vadd.f32 %v4749_v14, %v9239_v44 }
 0x3ea   : > { %4795 = vst [vmem:[%s9303_s4 + $0x30] sm:$0xff] %v4779_v5 }
 0x3eb   : > { %v4701_v16 = vpop.f32.mrf.mxu2  ;;  %v4606_v33 = vpop.f32.mrf.mxu0 }
 0x3ec   : > { %v4750_v7 = vpop.f32.mrf.mxu3  ;;  %v4702_v57 = vadd.f32 %v4701_v16, %v4653_v58  ;;  %v4655_v52 = vpop.f32.mrf.mxu1 }
 0x3ed   : > { %v4656_v50 = vadd.f32 %v4655_v52, %v4606_v33 }
 0x3ee   : > { %v4751_v40 = vadd.f32 %v4750_v7, %v4702_v57 }
 0x3f0   : > { %v4780_v59 = vadd.f32 %v4751_v40, %v9248_v6 }
 0x3f2   : > { %4796 = vst [vmem:[%s9303_s4 + $0x38] sm:$0xff] %v4780_v59 }
 0x3f3   : > { %v4704_v12 = vpop.f32.mrf.mxu2  ;;  %v4608_v36 = vpop.f32.mrf.mxu0 }
 0x3f4   : > { %v4753_v4 = vpop.f32.mrf.mxu3  ;;  %v4705_v63 = vadd.f32 %v4704_v12, %v4656_v50  ;;  %v4657_v8 = vpop.f32.mrf.mxu1 }
 0x3f5   : > { %v4658_v31 = vadd.f32 %v4657_v8, %v4608_v36 }
 0x3f6   : > { %v4754_v44 = vadd.f32 %v4753_v4, %v4705_v63 }
 0x3f8   : > { %v4781_v21 = vadd.f32 %v4754_v44, %v9253_v20 }
 0x3fa   : > { %4797 = vst [vmem:[%s9303_s4 + $0x40] sm:$0xff] %v4781_v21 }
 0x3fb   : > { %v4706_v22 = vpop.f32.mrf.mxu2  ;;  %v4611_v32 = vpop.f32.mrf.mxu0 }
 0x3fc   : > { %v4755_v48 = vpop.f32.mrf.mxu3  ;;  %v4707_v13 = vadd.f32 %v4706_v22, %v4658_v31  ;;  %v4660_v53 = vpop.f32.mrf.mxu1 }
 0x3fd   : > { %v4661_v30 = vadd.f32 %v4660_v53, %v4611_v32 }
 0x3fe   : > { %v4756_v6 = vadd.f32 %v4755_v48, %v4707_v13 }
 0x400   : > { %v4782_v18 = vadd.f32 %v4756_v6, %v9262_v25 }
 0x402   : > { %4798 = vst [vmem:[%s9303_s4 + $0x48] sm:$0xff] %v4782_v18 }
 0x403   : > { %v4709_v39 = vpop.f32.mrf.mxu2  ;;  %v4613_v38 = vpop.f32.mrf.mxu0 }
 0x404   : > { %v4758_v24 = vpop.f32.mrf.mxu3  ;;  %v4710_v35 = vadd.f32 %v4709_v39, %v4661_v30  ;;  %v4662_v37 = vpop.f32.mrf.mxu1 }
 0x405   : > { %v4663_v19 = vadd.f32 %v4662_v37, %v4613_v38 }
 0x406   : > { %v4759_v20 = vadd.f32 %v4758_v24, %v4710_v35 }
 0x408   : > { %v4783_v23 = vadd.f32 %v4759_v20, %v9267_v41 }
 0x40a   : > { %4799 = vst [vmem:[%s9303_s4 + $0x50] sm:$0xff] %v4783_v23 }
 0x40b   : > { %v4711_v43 = vpop.f32.mrf.mxu2  ;;  %v4616_v54 = vpop.f32.mrf.mxu0 }
 0x40c   : > { %v4760_v1 = vpop.f32.mrf.mxu3  ;;  %v4712_v17 = vadd.f32 %v4711_v43, %v4663_v19  ;;  %v4665_v60 = vpop.f32.mrf.mxu1 }
 0x40d   : > { %v4666_v28 = vadd.f32 %v4665_v60, %v4616_v54 }
 0x40e   : > { %v4761_v25 = vadd.f32 %v4760_v1, %v4712_v17 }
 0x410   : > { %v4784_v27 = vadd.f32 %v4761_v25, %v9276_v9 }
 0x412   : > { %4800 = vst [vmem:[%s9303_s4 + $0x58] sm:$0xff] %v4784_v27 }
 0x413   : > { %v4714_v45 = vpop.f32.mrf.mxu2  ;;  %v4618_v29 = vpop.f32.mrf.mxu0 }
 0x414   : > { %v4763_v34 = vpop.f32.mrf.mxu3  ;;  %v4715_v55 = vadd.f32 %v4714_v45, %v4666_v28  ;;  %v4667_v10 = vpop.f32.mrf.mxu1 }
 0x415   : > { %v4668_v56 = vadd.f32 %v4667_v10, %v4618_v29 }
 0x416   : > { %v4764_v41 = vadd.f32 %v4763_v34, %v4715_v55 }
 0x418   : > { %v4785_v42 = vadd.f32 %v4764_v41, %v9281_v11 }
 0x41a   : > { %4801 = vst [vmem:[%s9303_s4 + $0x60] sm:$0xff] %v4785_v42 }
 0x41b   : > { %v4716_v47 = vpop.f32.mrf.mxu2  ;;  %v4621_v15 = vpop.f32.mrf.mxu0 }
 0x41c   : > { %v4765_v46 = vpop.f32.mrf.mxu3  ;;  %v4717_v62 = vadd.f32 %v4716_v47, %v4668_v56  ;;  %v4670_v2 = vpop.f32.mrf.mxu1 }
 0x41d   : > { %v4671_v0 = vadd.f32 %v4670_v2, %v4621_v15 }
 0x41e   : > { %v4766_v9 = vadd.f32 %v4765_v46, %v4717_v62 }
 0x420   : > { %v4786_v51 = vadd.f32 %v4766_v9, %v9290_v61 }
 0x422   : > { %4802 = vst [vmem:[%s9303_s4 + $0x68] sm:$0xff] %v4786_v51 }
 0x423   : > { %v4719_v49 = vpop.f32.mrf.mxu2  ;;  %v4623_v16 = vpop.f32.mrf.mxu0 }
 0x424   : > { %v4768_v14 = vpop.f32.mrf.mxu3  ;;  %v4720_v5 = vadd.f32 %v4719_v49, %v4671_v0  ;;  %v4672_v11 = vpop.f32.mrf.mxu1 }
 0x425   : > { %v4673_v57 = vadd.f32 %v4672_v11, %v4623_v16 }
 0x426   : > { %v4769_v58 = vadd.f32 %v4768_v14, %v4720_v5 }
 0x428   : > { %v4787_v7 = vadd.f32 %v4769_v58, %v9294_v3 }
 0x42a   : > { %4803 = vst [vmem:[%s9303_s4 + $0x70] sm:$0xff] %v4787_v7 }
 0x42b   : > { %v4721_v33 = vpop.f32.mrf.mxu2 }
 0x42c   : > { %v4722_v52 = vadd.f32 %v4721_v33, %v4673_v57  ;;  %v4770_v40 = vpop.f32.mrf.mxu3 }
 0x42e   : > { %v4771_v59 = vadd.f32 %v4770_v40, %v4722_v52 }
 0x430   : > { %v4788_v50 = vadd.f32 %v4771_v59, %v9298_v26 }
 0x432   : > { %4804 = vst [vmem:[%s9303_s4 + $0x78] sm:$0xff] %v4788_v50 }
 0x433 PF: > { %s12_s13 = sadd.s32 1, %s7844_s13   ;;  %s9355_s9 = smov %s7836_s11 }
 0x434   : > { %p9_p7 = scmp.ge.s32.totalorder %s12_s13, 18   ;;  %s9356_s10 = smov %s7840_s12 }
 0x435   : > { %s9357_s11 = smov %s9360_s14  ;;  %s9358_s12 = smov %s9364_s15 }
 0x436   :  { %11 = sbr.rel (!%p9_p7) target bundleno = 3 (0x3), region = 71 }

</bundles_post_ra>
